<compile_context>
chip_gen: v7x
topology: tpu7x:2x2x1
jax: 0.10.0
libtpu: 0.0.40
codegen_flags: <defaults>
</compile_context>

<pallas_src>
import functools

import jax
import jax.numpy as jnp
import numpy as np
from jax.experimental import pallas as pl
from jax.experimental.pallas import tpu as pltpu

INPUT_SIZE = 28
HIDDEN = 64
G = 4 * HIDDEN        # 256: gates packed [i | f | g | o], no per-gate padding
OUT = 10
OUT_P = 128           # head output padded to a full lane tile (lane-dense store)


def _round_up(x, m):
    return (x + m - 1) // m * m


def _lstm_head_kernel(x_ref, wih_ref, whh_ref, b_ref, wout_ref, bout_ref,
                      out_ref, xproj_scr):
    """One grid step == one batch tile; the whole time recurrence runs inside.

    x_ref:     (T*BT, IN)   bf16  time-major inputs for this batch tile
    wih_ref:   (IN, G)      bf16  input->gates weights, gate order i,f,g,o
    whh_ref:   (H, G)       bf16  hidden->gates weights
    b_ref:     (1, G)       f32   b_ih + b_hh
    wout_ref:  (H, OUT_P)   bf16  head weights (zero-padded cols 10..127)
    bout_ref:  (1, OUT_P)   f32   head bias (zero-padded)
    out_ref:   (BT, OUT_P)  f32   logits for this batch tile
    xproj_scr: (T*BT, G)    bf16  hoisted input projection (off the serial chain)
    """
    TB = x_ref.shape[0]
    BT = out_ref.shape[0]
    T = TB // BT
    H = HIDDEN

    # ---- Phase 1: ONE flat MXU matmul for the input projection of all steps.
    xproj = jnp.dot(x_ref[...], wih_ref[...],
                    preferred_element_type=jnp.float32)
    xproj_scr[...] = (xproj + b_ref[...]).astype(jnp.bfloat16)

    whh = whh_ref[...]
    # (Optional further tuning: hold W_hh in MXU staging registers across the
    #  T steps via pltpu.matmul_push_rhs / matmul_acc_lhs; measure first.)

    # ---- Phase 2: sequential recurrence; only h @ W_hh sits on the chain.
    def step(t, carry):
        h, c = carry                          # h: (BT, H) bf16, c: (BT, H) f32
        start = pl.multiple_of(t * BT, BT)
        gates = (jnp.dot(h, whh, preferred_element_type=jnp.float32)
                 + xproj_scr[pl.ds(start, BT), :].astype(jnp.float32))
        sig_if = jax.nn.sigmoid(gates[:, 0:2 * H])     # [sigma(i) | sigma(f)]
        g_t = jnp.tanh(gates[:, 2 * H:3 * H])
        o_s = jax.nn.sigmoid(gates[:, 3 * H:4 * H])
        i_s = sig_if[:, 0:H]
        f_s = sig_if[:, H:2 * H]
        c_new = f_s * c + i_s * g_t
        h_new = (o_s * jnp.tanh(c_new)).astype(jnp.bfloat16)
        return h_new, c_new

    h0 = jnp.zeros((BT, H), jnp.bfloat16)
    c0 = jnp.zeros((BT, H), jnp.float32)
    if BT <= 128:
        unroll = True                          # small live state: full unroll
    else:
        unroll = 7 if T % 7 == 0 else (4 if T % 4 == 0 else True)
    h_last, _ = jax.lax.fori_loop(0, T, step, (h0, c0), unroll=unroll)

    # ---- Head: logits from the last hidden state (lane-dense padded store).
    out_ref[...] = (jnp.dot(h_last, wout_ref[...],
                            preferred_element_type=jnp.float32)
                    + bout_ref[...]).astype(out_ref.dtype)


def rnn_forward(x, w_ih, w_hh, b_ih, b_hh, w_out, b_out, *, batch_tile=256):
    """x: (B, T, INPUT_SIZE) float32 (batch_first). Returns logits (B, 10).

    batch_tile: main tuning knob. ~128 on v5e, ~256 on v6e/v7x; on v7x prefer
    a value that yields >= 2 tiles so both TensorCores are used.
    """
    B, T, IN = x.shape
    assert IN == INPUT_SIZE

    # Tile size: sublane-aligned, clamped to the (rounded) batch.
    BT = min(_round_up(batch_tile, 8), _round_up(B, 8))
    pad = (-B) % BT
    B_pad = B + pad
    num_tiles = B_pad // BT

    if pad:
        x = jnp.pad(x, ((0, pad), (0, 0), (0, 0)))

    # Layout prep (cheap, one-time, plain XLA):
    #   x: (B_pad, T, IN) -> per-tile time-major flat slabs (tiles, T*BT, IN), bf16.
    x_tiles = (x.reshape(num_tiles, BT, T, IN)
                 .transpose(0, 2, 1, 3)
                 .reshape(num_tiles, T * BT, IN)
                 .astype(jnp.bfloat16))

    # PyTorch stacks gates as [i; f; g; o] along dim 0 -> transpose gives the
    # packed (K, 4H) layout directly, no per-gate padding.
    wih_p = jnp.transpose(w_ih).astype(jnp.bfloat16)                    # (IN, G)
    whh_p = jnp.transpose(w_hh).astype(jnp.bfloat16)                    # (H, G)
    b_p = (b_ih + b_hh).reshape(1, G).astype(jnp.float32)               # (1, G)
    wout_p = jnp.pad(jnp.transpose(w_out),
                     ((0, 0), (0, OUT_P - OUT))).astype(jnp.bfloat16)   # (H, OUT_P)
    bout_p = jnp.pad(b_out, (0, OUT_P - OUT)).reshape(1, OUT_P)
    bout_p = bout_p.astype(jnp.float32)                                 # (1, OUT_P)

    # Rough resident-VMEM estimate; raise the scoped limit only when a large
    # batch tile actually needs it (capped at 64 MiB: safe on v7x as well).
    vmem_est = (2 * T * BT * IN * 2                 # x tile, double-buffered, bf16
                + T * BT * G * (2 + 4)              # xproj scratch bf16 + f32 temp
                + 2 * BT * OUT_P * 4                # output tile, double-buffered
                + (IN + HIDDEN) * G * 2             # gate weights (bf16)
                + HIDDEN * OUT_P * 2 + (G + OUT_P) * 4)
    vmem_limit = None
    if vmem_est > (24 << 20):
        vmem_limit = int(min(vmem_est + (8 << 20), 64 << 20))

    grid_spec = pltpu.PrefetchScalarGridSpec(
        num_scalar_prefetch=0,
        grid=(num_tiles,),                   # batch tiles only; time is in-kernel
        in_specs=[
            pl.BlockSpec((None, T * BT, IN), lambda b: (b, 0, 0)),
            pl.BlockSpec((IN, G), lambda b: (0, 0)),
            pl.BlockSpec((HIDDEN, G), lambda b: (0, 0)),
            pl.BlockSpec((1, G), lambda b: (0, 0)),
            pl.BlockSpec((HIDDEN, OUT_P), lambda b: (0, 0)),
            pl.BlockSpec((1, OUT_P), lambda b: (0, 0)),
        ],
        out_specs=pl.BlockSpec((BT, OUT_P), lambda b: (b, 0)),
        scratch_shapes=[
            pltpu.VMEM((T * BT, G), jnp.bfloat16),   # hoisted input projection
        ],
    )

    logits = pl.pallas_call(
        _lstm_head_kernel,
        out_shape=jax.ShapeDtypeStruct((B_pad, OUT_P), jnp.float32),
        grid_spec=grid_spec,
        compiler_params=pltpu.CompilerParams(
            dimension_semantics=("parallel",),       # batch tiles are independent
            vmem_limit_bytes=vmem_limit),
    )(x_tiles, wih_p, whh_p, b_p, wout_p, bout_p)

    return logits[:B, :OUT]


def reference_forward(x, w_ih, w_hh, b_ih, b_hh, w_out, b_out):
    """Pure-JAX replica of PyTorch LSTM(batch_first) + Linear on last step."""
    B, T, _ = x.shape
    h = jnp.zeros((B, HIDDEN), jnp.float32)
    c = jnp.zeros((B, HIDDEN), jnp.float32)
    for t in range(T):
        gates = x[:, t, :] @ w_ih.T + b_ih + h @ w_hh.T + b_hh
        i = jax.nn.sigmoid(gates[:, 0 * HIDDEN:1 * HIDDEN])
        f = jax.nn.sigmoid(gates[:, 1 * HIDDEN:2 * HIDDEN])
        g = jnp.tanh(gates[:, 2 * HIDDEN:3 * HIDDEN])
        o = jax.nn.sigmoid(gates[:, 3 * HIDDEN:4 * HIDDEN])
        c = f * c + i * g
        h = o * jnp.tanh(c)
    return h @ w_out.T + b_out


if __name__ == "__main__":
    key = jax.random.PRNGKey(0)
    kx, k1, k2, k3, k4, k5, k6 = jax.random.split(key, 7)

    # Small config (MNIST rows: T = 28). B = 28 also exercises batch padding.
    B, T = 28, 28
    bound = 1.0 / np.sqrt(HIDDEN)

    x = jax.random.normal(kx, (B, T, INPUT_SIZE), jnp.float32)
    w_ih = jax.random.uniform(k1, (4 * HIDDEN, INPUT_SIZE), jnp.float32, -bound, bound)
    w_hh = jax.random.uniform(k2, (4 * HIDDEN, HIDDEN), jnp.float32, -bound, bound)
    b_ih = jax.random.uniform(k3, (4 * HIDDEN,), jnp.float32, -bound, bound)
    b_hh = jax.random.uniform(k4, (4 * HIDDEN,), jnp.float32, -bound, bound)
    w_out = jax.random.uniform(k5, (OUT, HIDDEN), jnp.float32, -bound, bound)
    b_out = jax.random.uniform(k6, (OUT,), jnp.float32, -bound, bound)

    ref = reference_forward(x, w_ih, w_hh, b_ih, b_hh, w_out, b_out)

    fwd = jax.jit(rnn_forward, static_argnames=("batch_tile",))

    # Multi-tile path: BT=16 -> B padded 28->32, grid of 2 parallel tiles.
    out_small = jax.block_until_ready(
        fwd(x, w_ih, w_hh, b_ih, b_hh, w_out, b_out, batch_tile=16))
    np.testing.assert_allclose(np.asarray(out_small), np.asarray(ref),
                               rtol=5e-2, atol=5e-2)

    # Default (large-tile) path: tile clamps to the padded batch, grid of 1.
    out_big = jax.block_until_ready(
        fwd(x, w_ih, w_hh, b_ih, b_hh, w_out, b_out))
    np.testing.assert_allclose(np.asarray(out_big), np.asarray(ref),
                               rtol=5e-2, atol=5e-2)

    print("KERNEL_OK")
</pallas_src>

<mosaic_0001>
module attributes {stable_mosaic.version = 11 : i64} {
  func.func @_lstm_head_kernel(%arg0: i32, %arg1: memref<1x448x28xbf16, #tpu.memory_space<vmem>>, %arg2: memref<28x256xbf16, #tpu.memory_space<vmem>>, %arg3: memref<64x256xbf16, #tpu.memory_space<vmem>>, %arg4: memref<1x256xf32, #tpu.memory_space<vmem>>, %arg5: memref<64x128xbf16, #tpu.memory_space<vmem>>, %arg6: memref<1x128xf32, #tpu.memory_space<vmem>>, %arg7: memref<16x128xf32, #tpu.memory_space<vmem>>, %arg8: memref<448x256xbf16, #tpu.memory_space<vmem>>) attributes {dimension_semantics = [#tpu.dimension_semantics<parallel>], iteration_bounds = array<i64: 2>, scalar_prefetch = 0 : i64, scratch_operands = 1 : i64, tpu.core_type = #tpu.core_type<tc>, window_params = [{transform_indices = @transform_0, window_bounds = array<i64: 1, 448, 28>}, {pipeline_mode = #tpu.pipeline_mode<synchronous>, transform_indices = @transform_1, window_bounds = array<i64: 28, 256>}, {pipeline_mode = #tpu.pipeline_mode<synchronous>, transform_indices = @transform_2, window_bounds = array<i64: 64, 256>}, {pipeline_mode = #tpu.pipeline_mode<synchronous>, transform_indices = @transform_3, window_bounds = array<i64: 1, 256>}, {pipeline_mode = #tpu.pipeline_mode<synchronous>, transform_indices = @transform_4, window_bounds = array<i64: 64, 128>}, {pipeline_mode = #tpu.pipeline_mode<synchronous>, transform_indices = @transform_5, window_bounds = array<i64: 1, 128>}, {transform_indices = @transform_6, window_bounds = array<i64: 16, 128>}]} {
    %c0 = arith.constant 0 : index
    %c0_0 = arith.constant 0 : index
    %c0_1 = arith.constant 0 : index
    %0 = vector.load %arg1[%c0, %c0_0, %c0_1] : memref<1x448x28xbf16, #tpu.memory_space<vmem>>, vector<1x448x28xbf16>
    %1 = vector.shape_cast %0 : vector<1x448x28xbf16> to vector<448x28xbf16>
    %c0_2 = arith.constant 0 : index
    %c0_3 = arith.constant 0 : index
    %2 = vector.load %arg2[%c0_2, %c0_3] : memref<28x256xbf16, #tpu.memory_space<vmem>>, vector<28x256xbf16>
    %cst = arith.constant dense<0.000000e+00> : vector<448x256xf32>
    %3 = tpu.matmul %1, %2, %cst {dimension_numbers = #tpu.dot_dimension_numbers<[1], [0], [0], [1], [0, 0, 1, 1], [], []>} : vector<448x28xbf16>, vector<28x256xbf16>, vector<448x256xf32> -> vector<448x256xf32>
    %c0_4 = arith.constant 0 : index
    %c0_5 = arith.constant 0 : index
    %4 = vector.load %arg4[%c0_4, %c0_5] : memref<1x256xf32, #tpu.memory_space<vmem>>, vector<1x256xf32>
    %5 = vector.broadcast %4 : vector<1x256xf32> to vector<448x256xf32>
    %6 = arith.addf %3, %5 : vector<448x256xf32>
    %7 = arith.truncf %6 : vector<448x256xf32> to vector<448x256xbf16>
    %c0_6 = arith.constant 0 : index
    %c0_7 = arith.constant 0 : index
    %8 = vector.load %arg8[%c0_6, %c0_7] : memref<448x256xbf16, #tpu.memory_space<vmem>>, vector<448x256xbf16>
    tpu.vector_store %arg8[%c0_6, %c0_7], %7 {strides = array<i32>} : memref<448x256xbf16, #tpu.memory_space<vmem>>, vector<448x256xbf16>,
    %c0_8 = arith.constant 0 : index
    %c0_9 = arith.constant 0 : index
    %9 = vector.load %arg3[%c0_8, %c0_9] : memref<64x256xbf16, #tpu.memory_space<vmem>>, vector<64x256xbf16>
    %cst_10 = arith.constant 0.000000e+00 : bf16
    %10 = vector.broadcast %cst_10 : bf16 to vector<16x64xbf16>
    %cst_11 = arith.constant 0.000000e+00 : f32
    %11 = vector.broadcast %cst_11 : f32 to vector<16x64xf32>
    %c0_i32 = arith.constant 0 : i32
    %c16_i32 = arith.constant 16 : i32
    %12 = arith.muli %c0_i32, %c16_i32 : i32
    %13 = tpu.assume_multiple %12, 16 : i32
    %cst_12 = arith.constant dense<0.000000e+00> : vector<16x256xf32>
    %14 = tpu.matmul %10, %9, %cst_12 {dimension_numbers = #tpu.dot_dimension_numbers<[1], [0], [0], [1], [0, 0, 1, 1], [], []>} : vector<16x64xbf16>, vector<64x256xbf16>, vector<16x256xf32> -> vector<16x256xf32>
    %15 = arith.index_cast %13 : i32 to index
    %c0_13 = arith.constant 0 : index
    %16 = vector.load %arg8[%15, %c0_13] : memref<448x256xbf16, #tpu.memory_space<vmem>>, vector<16x256xbf16>
    %17 = arith.extf %16 : vector<16x256xbf16> to vector<16x256xf32>
    %18 = arith.addf %14, %17 : vector<16x256xf32>
    %19 = vector.extract_strided_slice %18 {offsets = [0, 0], sizes = [16, 128], strides = [1, 1]} : vector<16x256xf32> to vector<16x128xf32>
    %20 = arith.negf %19 : vector<16x128xf32>
    %21 = math.exp %20 : vector<16x128xf32>
    %cst_14 = arith.constant 1.000000e+00 : f32
    %22 = vector.broadcast %cst_14 : f32 to vector<16x128xf32>
    %23 = arith.addf %22, %21 : vector<16x128xf32>
    %24 = arith.divf %22, %23 : vector<16x128xf32>
    %25 = vector.extract_strided_slice %18 {offsets = [0, 128], sizes = [16, 64], strides = [1, 1]} : vector<16x256xf32> to vector<16x64xf32>
    %26 = math.tanh %25 : vector<16x64xf32>
    %27 = vector.extract_strided_slice %18 {offsets = [0, 192], sizes = [16, 64], strides = [1, 1]} : vector<16x256xf32> to vector<16x64xf32>
    %28 = arith.negf %27 : vector<16x64xf32>
    %29 = math.exp %28 : vector<16x64xf32>
    %cst_15 = arith.constant 1.000000e+00 : f32
    %30 = vector.broadcast %cst_15 : f32 to vector<16x64xf32>
    %31 = arith.addf %30, %29 : vector<16x64xf32>
    %32 = arith.divf %30, %31 : vector<16x64xf32>
    %33 = vector.extract_strided_slice %24 {offsets = [0, 0], sizes = [16, 64], strides = [1, 1]} : vector<16x128xf32> to vector<16x64xf32>
    %34 = vector.extract_strided_slice %24 {offsets = [0, 64], sizes = [16, 64], strides = [1, 1]} : vector<16x128xf32> to vector<16x64xf32>
    %35 = arith.mulf %34, %11 : vector<16x64xf32>
    %36 = arith.mulf %33, %26 : vector<16x64xf32>
    %37 = arith.addf %35, %36 : vector<16x64xf32>
    %38 = math.tanh %37 : vector<16x64xf32>
    %39 = arith.mulf %32, %38 : vector<16x64xf32>
    %40 = arith.truncf %39 : vector<16x64xf32> to vector<16x64xbf16>
    %c1_i32 = arith.constant 1 : i32
    %c16_i32_16 = arith.constant 16 : i32
    %41 = arith.muli %c1_i32, %c16_i32_16 : i32
    %42 = tpu.assume_multiple %41, 16 : i32
    %cst_17 = arith.constant dense<0.000000e+00> : vector<16x256xf32>
    %43 = tpu.matmul %40, %9, %cst_17 {dimension_numbers = #tpu.dot_dimension_numbers<[1], [0], [0], [1], [0, 0, 1, 1], [], []>} : vector<16x64xbf16>, vector<64x256xbf16>, vector<16x256xf32> -> vector<16x256xf32>
    %44 = arith.index_cast %42 : i32 to index
    %c0_18 = arith.constant 0 : index
    %45 = vector.load %arg8[%44, %c0_18] : memref<448x256xbf16, #tpu.memory_space<vmem>>, vector<16x256xbf16>
    %46 = arith.extf %45 : vector<16x256xbf16> to vector<16x256xf32>
    %47 = arith.addf %43, %46 : vector<16x256xf32>
    %48 = vector.extract_strided_slice %47 {offsets = [0, 0], sizes = [16, 128], strides = [1, 1]} : vector<16x256xf32> to vector<16x128xf32>
    %49 = arith.negf %48 : vector<16x128xf32>
    %50 = math.exp %49 : vector<16x128xf32>
    %cst_19 = arith.constant 1.000000e+00 : f32
    %51 = vector.broadcast %cst_19 : f32 to vector<16x128xf32>
    %52 = arith.addf %51, %50 : vector<16x128xf32>
    %53 = arith.divf %51, %52 : vector<16x128xf32>
    %54 = vector.extract_strided_slice %47 {offsets = [0, 128], sizes = [16, 64], strides = [1, 1]} : vector<16x256xf32> to vector<16x64xf32>
    %55 = math.tanh %54 : vector<16x64xf32>
    %56 = vector.extract_strided_slice %47 {offsets = [0, 192], sizes = [16, 64], strides = [1, 1]} : vector<16x256xf32> to vector<16x64xf32>
    %57 = arith.negf %56 : vector<16x64xf32>
    %58 = math.exp %57 : vector<16x64xf32>
    %cst_20 = arith.constant 1.000000e+00 : f32
    %59 = vector.broadcast %cst_20 : f32 to vector<16x64xf32>
    %60 = arith.addf %59, %58 : vector<16x64xf32>
    %61 = arith.divf %59, %60 : vector<16x64xf32>
    %62 = vector.extract_strided_slice %53 {offsets = [0, 0], sizes = [16, 64], strides = [1, 1]} : vector<16x128xf32> to vector<16x64xf32>
    %63 = vector.extract_strided_slice %53 {offsets = [0, 64], sizes = [16, 64], strides = [1, 1]} : vector<16x128xf32> to vector<16x64xf32>
    %64 = arith.mulf %63, %37 : vector<16x64xf32>
    %65 = arith.mulf %62, %55 : vector<16x64xf32>
    %66 = arith.addf %64, %65 : vector<16x64xf32>
    %67 = math.tanh %66 : vector<16x64xf32>
    %68 = arith.mulf %61, %67 : vector<16x64xf32>
    %69 = arith.truncf %68 : vector<16x64xf32> to vector<16x64xbf16>
    %c2_i32 = arith.constant 2 : i32
    %c16_i32_21 = arith.constant 16 : i32
    %70 = arith.muli %c2_i32, %c16_i32_21 : i32
    %71 = tpu.assume_multiple %70, 16 : i32
    %cst_22 = arith.constant dense<0.000000e+00> : vector<16x256xf32>
    %72 = tpu.matmul %69, %9, %cst_22 {dimension_numbers = #tpu.dot_dimension_numbers<[1], [0], [0], [1], [0, 0, 1, 1], [], []>} : vector<16x64xbf16>, vector<64x256xbf16>, vector<16x256xf32> -> vector<16x256xf32>
    %73 = arith.index_cast %71 : i32 to index
    %c0_23 = arith.constant 0 : index
    %74 = vector.load %arg8[%73, %c0_23] : memref<448x256xbf16, #tpu.memory_space<vmem>>, vector<16x256xbf16>
    %75 = arith.extf %74 : vector<16x256xbf16> to vector<16x256xf32>
    %76 = arith.addf %72, %75 : vector<16x256xf32>
    %77 = vector.extract_strided_slice %76 {offsets = [0, 0], sizes = [16, 128], strides = [1, 1]} : vector<16x256xf32> to vector<16x128xf32>
    %78 = arith.negf %77 : vector<16x128xf32>
    %79 = math.exp %78 : vector<16x128xf32>
    %cst_24 = arith.constant 1.000000e+00 : f32
    %80 = vector.broadcast %cst_24 : f32 to vector<16x128xf32>
    %81 = arith.addf %80, %79 : vector<16x128xf32>
    %82 = arith.divf %80, %81 : vector<16x128xf32>
    %83 = vector.extract_strided_slice %76 {offsets = [0, 128], sizes = [16, 64], strides = [1, 1]} : vector<16x256xf32> to vector<16x64xf32>
    %84 = math.tanh %83 : vector<16x64xf32>
    %85 = vector.extract_strided_slice %76 {offsets = [0, 192], sizes = [16, 64], strides = [1, 1]} : vector<16x256xf32> to vector<16x64xf32>
    %86 = arith.negf %85 : vector<16x64xf32>
    %87 = math.exp %86 : vector<16x64xf32>
    %cst_25 = arith.constant 1.000000e+00 : f32
    %88 = vector.broadcast %cst_25 : f32 to vector<16x64xf32>
    %89 = arith.addf %88, %87 : vector<16x64xf32>
    %90 = arith.divf %88, %89 : vector<16x64xf32>
    %91 = vector.extract_strided_slice %82 {offsets = [0, 0], sizes = [16, 64], strides = [1, 1]} : vector<16x128xf32> to vector<16x64xf32>
    %92 = vector.extract_strided_slice %82 {offsets = [0, 64], sizes = [16, 64], strides = [1, 1]} : vector<16x128xf32> to vector<16x64xf32>
    %93 = arith.mulf %92, %66 : vector<16x64xf32>
    %94 = arith.mulf %91, %84 : vector<16x64xf32>
    %95 = arith.addf %93, %94 : vector<16x64xf32>
    %96 = math.tanh %95 : vector<16x64xf32>
    %97 = arith.mulf %90, %96 : vector<16x64xf32>
    %98 = arith.truncf %97 : vector<16x64xf32> to vector<16x64xbf16>
    %c3_i32 = arith.constant 3 : i32
    %c16_i32_26 = arith.constant 16 : i32
    %99 = arith.muli %c3_i32, %c16_i32_26 : i32
    %100 = tpu.assume_multiple %99, 16 : i32
    %cst_27 = arith.constant dense<0.000000e+00> : vector<16x256xf32>
    %101 = tpu.matmul %98, %9, %cst_27 {dimension_numbers = #tpu.dot_dimension_numbers<[1], [0], [0], [1], [0, 0, 1, 1], [], []>} : vector<16x64xbf16>, vector<64x256xbf16>, vector<16x256xf32> -> vector<16x256xf32>
    %102 = arith.index_cast %100 : i32 to index
    %c0_28 = arith.constant 0 : index
    %103 = vector.load %arg8[%102, %c0_28] : memref<448x256xbf16, #tpu.memory_space<vmem>>, vector<16x256xbf16>
    %104 = arith.extf %103 : vector<16x256xbf16> to vector<16x256xf32>
    %105 = arith.addf %101, %104 : vector<16x256xf32>
    %106 = vector.extract_strided_slice %105 {offsets = [0, 0], sizes = [16, 128], strides = [1, 1]} : vector<16x256xf32> to vector<16x128xf32>
    %107 = arith.negf %106 : vector<16x128xf32>
    %108 = math.exp %107 : vector<16x128xf32>
    %cst_29 = arith.constant 1.000000e+00 : f32
    %109 = vector.broadcast %cst_29 : f32 to vector<16x128xf32>
    %110 = arith.addf %109, %108 : vector<16x128xf32>
    %111 = arith.divf %109, %110 : vector<16x128xf32>
    %112 = vector.extract_strided_slice %105 {offsets = [0, 128], sizes = [16, 64], strides = [1, 1]} : vector<16x256xf32> to vector<16x64xf32>
    %113 = math.tanh %112 : vector<16x64xf32>
    %114 = vector.extract_strided_slice %105 {offsets = [0, 192], sizes = [16, 64], strides = [1, 1]} : vector<16x256xf32> to vector<16x64xf32>
    %115 = arith.negf %114 : vector<16x64xf32>
    %116 = math.exp %115 : vector<16x64xf32>
    %cst_30 = arith.constant 1.000000e+00 : f32
    %117 = vector.broadcast %cst_30 : f32 to vector<16x64xf32>
    %118 = arith.addf %117, %116 : vector<16x64xf32>
    %119 = arith.divf %117, %118 : vector<16x64xf32>
    %120 = vector.extract_strided_slice %111 {offsets = [0, 0], sizes = [16, 64], strides = [1, 1]} : vector<16x128xf32> to vector<16x64xf32>
    %121 = vector.extract_strided_slice %111 {offsets = [0, 64], sizes = [16, 64], strides = [1, 1]} : vector<16x128xf32> to vector<16x64xf32>
    %122 = arith.mulf %121, %95 : vector<16x64xf32>
    %123 = arith.mulf %120, %113 : vector<16x64xf32>
    %124 = arith.addf %122, %123 : vector<16x64xf32>
    %125 = math.tanh %124 : vector<16x64xf32>
    %126 = arith.mulf %119, %125 : vector<16x64xf32>
    %127 = arith.truncf %126 : vector<16x64xf32> to vector<16x64xbf16>
    %c4_i32 = arith.constant 4 : i32
    %c16_i32_31 = arith.constant 16 : i32
    %128 = arith.muli %c4_i32, %c16_i32_31 : i32
    %129 = tpu.assume_multiple %128, 16 : i32
    %cst_32 = arith.constant dense<0.000000e+00> : vector<16x256xf32>
    %130 = tpu.matmul %127, %9, %cst_32 {dimension_numbers = #tpu.dot_dimension_numbers<[1], [0], [0], [1], [0, 0, 1, 1], [], []>} : vector<16x64xbf16>, vector<64x256xbf16>, vector<16x256xf32> -> vector<16x256xf32>
    %131 = arith.index_cast %129 : i32 to index
    %c0_33 = arith.constant 0 : index
    %132 = vector.load %arg8[%131, %c0_33] : memref<448x256xbf16, #tpu.memory_space<vmem>>, vector<16x256xbf16>
    %133 = arith.extf %132 : vector<16x256xbf16> to vector<16x256xf32>
    %134 = arith.addf %130, %133 : vector<16x256xf32>
    %135 = vector.extract_strided_slice %134 {offsets = [0, 0], sizes = [16, 128], strides = [1, 1]} : vector<16x256xf32> to vector<16x128xf32>
    %136 = arith.negf %135 : vector<16x128xf32>
    %137 = math.exp %136 : vector<16x128xf32>
    %cst_34 = arith.constant 1.000000e+00 : f32
    %138 = vector.broadcast %cst_34 : f32 to vector<16x128xf32>
    %139 = arith.addf %138, %137 : vector<16x128xf32>
    %140 = arith.divf %138, %139 : vector<16x128xf32>
    %141 = vector.extract_strided_slice %134 {offsets = [0, 128], sizes = [16, 64], strides = [1, 1]} : vector<16x256xf32> to vector<16x64xf32>
    %142 = math.tanh %141 : vector<16x64xf32>
    %143 = vector.extract_strided_slice %134 {offsets = [0, 192], sizes = [16, 64], strides = [1, 1]} : vector<16x256xf32> to vector<16x64xf32>
    %144 = arith.negf %143 : vector<16x64xf32>
    %145 = math.exp %144 : vector<16x64xf32>
    %cst_35 = arith.constant 1.000000e+00 : f32
    %146 = vector.broadcast %cst_35 : f32 to vector<16x64xf32>
    %147 = arith.addf %146, %145 : vector<16x64xf32>
    %148 = arith.divf %146, %147 : vector<16x64xf32>
    %149 = vector.extract_strided_slice %140 {offsets = [0, 0], sizes = [16, 64], strides = [1, 1]} : vector<16x128xf32> to vector<16x64xf32>
    %150 = vector.extract_strided_slice %140 {offsets = [0, 64], sizes = [16, 64], strides = [1, 1]} : vector<16x128xf32> to vector<16x64xf32>
    %151 = arith.mulf %150, %124 : vector<16x64xf32>
    %152 = arith.mulf %149, %142 : vector<16x64xf32>
    %153 = arith.addf %151, %152 : vector<16x64xf32>
    %154 = math.tanh %153 : vector<16x64xf32>
    %155 = arith.mulf %148, %154 : vector<16x64xf32>
    %156 = arith.truncf %155 : vector<16x64xf32> to vector<16x64xbf16>
    %c5_i32 = arith.constant 5 : i32
    %c16_i32_36 = arith.constant 16 : i32
    %157 = arith.muli %c5_i32, %c16_i32_36 : i32
    %158 = tpu.assume_multiple %157, 16 : i32
    %cst_37 = arith.constant dense<0.000000e+00> : vector<16x256xf32>
    %159 = tpu.matmul %156, %9, %cst_37 {dimension_numbers = #tpu.dot_dimension_numbers<[1], [0], [0], [1], [0, 0, 1, 1], [], []>} : vector<16x64xbf16>, vector<64x256xbf16>, vector<16x256xf32> -> vector<16x256xf32>
    %160 = arith.index_cast %158 : i32 to index
    %c0_38 = arith.constant 0 : index
    %161 = vector.load %arg8[%160, %c0_38] : memref<448x256xbf16, #tpu.memory_space<vmem>>, vector<16x256xbf16>
    %162 = arith.extf %161 : vector<16x256xbf16> to vector<16x256xf32>
    %163 = arith.addf %159, %162 : vector<16x256xf32>
    %164 = vector.extract_strided_slice %163 {offsets = [0, 0], sizes = [16, 128], strides = [1, 1]} : vector<16x256xf32> to vector<16x128xf32>
    %165 = arith.negf %164 : vector<16x128xf32>
    %166 = math.exp %165 : vector<16x128xf32>
    %cst_39 = arith.constant 1.000000e+00 : f32
    %167 = vector.broadcast %cst_39 : f32 to vector<16x128xf32>
    %168 = arith.addf %167, %166 : vector<16x128xf32>
    %169 = arith.divf %167, %168 : vector<16x128xf32>
    %170 = vector.extract_strided_slice %163 {offsets = [0, 128], sizes = [16, 64], strides = [1, 1]} : vector<16x256xf32> to vector<16x64xf32>
    %171 = math.tanh %170 : vector<16x64xf32>
    %172 = vector.extract_strided_slice %163 {offsets = [0, 192], sizes = [16, 64], strides = [1, 1]} : vector<16x256xf32> to vector<16x64xf32>
    %173 = arith.negf %172 : vector<16x64xf32>
    %174 = math.exp %173 : vector<16x64xf32>
    %cst_40 = arith.constant 1.000000e+00 : f32
    %175 = vector.broadcast %cst_40 : f32 to vector<16x64xf32>
    %176 = arith.addf %175, %174 : vector<16x64xf32>
    %177 = arith.divf %175, %176 : vector<16x64xf32>
    %178 = vector.extract_strided_slice %169 {offsets = [0, 0], sizes = [16, 64], strides = [1, 1]} : vector<16x128xf32> to vector<16x64xf32>
    %179 = vector.extract_strided_slice %169 {offsets = [0, 64], sizes = [16, 64], strides = [1, 1]} : vector<16x128xf32> to vector<16x64xf32>
    %180 = arith.mulf %179, %153 : vector<16x64xf32>
    %181 = arith.mulf %178, %171 : vector<16x64xf32>
    %182 = arith.addf %180, %181 : vector<16x64xf32>
    %183 = math.tanh %182 : vector<16x64xf32>
    %184 = arith.mulf %177, %183 : vector<16x64xf32>
    %185 = arith.truncf %184 : vector<16x64xf32> to vector<16x64xbf16>
    %c6_i32 = arith.constant 6 : i32
    %c16_i32_41 = arith.constant 16 : i32
    %186 = arith.muli %c6_i32, %c16_i32_41 : i32
    %187 = tpu.assume_multiple %186, 16 : i32
    %cst_42 = arith.constant dense<0.000000e+00> : vector<16x256xf32>
    %188 = tpu.matmul %185, %9, %cst_42 {dimension_numbers = #tpu.dot_dimension_numbers<[1], [0], [0], [1], [0, 0, 1, 1], [], []>} : vector<16x64xbf16>, vector<64x256xbf16>, vector<16x256xf32> -> vector<16x256xf32>
    %189 = arith.index_cast %187 : i32 to index
    %c0_43 = arith.constant 0 : index
    %190 = vector.load %arg8[%189, %c0_43] : memref<448x256xbf16, #tpu.memory_space<vmem>>, vector<16x256xbf16>
    %191 = arith.extf %190 : vector<16x256xbf16> to vector<16x256xf32>
    %192 = arith.addf %188, %191 : vector<16x256xf32>
    %193 = vector.extract_strided_slice %192 {offsets = [0, 0], sizes = [16, 128], strides = [1, 1]} : vector<16x256xf32> to vector<16x128xf32>
    %194 = arith.negf %193 : vector<16x128xf32>
    %195 = math.exp %194 : vector<16x128xf32>
    %cst_44 = arith.constant 1.000000e+00 : f32
    %196 = vector.broadcast %cst_44 : f32 to vector<16x128xf32>
    %197 = arith.addf %196, %195 : vector<16x128xf32>
    %198 = arith.divf %196, %197 : vector<16x128xf32>
    %199 = vector.extract_strided_slice %192 {offsets = [0, 128], sizes = [16, 64], strides = [1, 1]} : vector<16x256xf32> to vector<16x64xf32>
    %200 = math.tanh %199 : vector<16x64xf32>
    %201 = vector.extract_strided_slice %192 {offsets = [0, 192], sizes = [16, 64], strides = [1, 1]} : vector<16x256xf32> to vector<16x64xf32>
    %202 = arith.negf %201 : vector<16x64xf32>
    %203 = math.exp %202 : vector<16x64xf32>
    %cst_45 = arith.constant 1.000000e+00 : f32
    %204 = vector.broadcast %cst_45 : f32 to vector<16x64xf32>
    %205 = arith.addf %204, %203 : vector<16x64xf32>
    %206 = arith.divf %204, %205 : vector<16x64xf32>
    %207 = vector.extract_strided_slice %198 {offsets = [0, 0], sizes = [16, 64], strides = [1, 1]} : vector<16x128xf32> to vector<16x64xf32>
    %208 = vector.extract_strided_slice %198 {offsets = [0, 64], sizes = [16, 64], strides = [1, 1]} : vector<16x128xf32> to vector<16x64xf32>
    %209 = arith.mulf %208, %182 : vector<16x64xf32>
    %210 = arith.mulf %207, %200 : vector<16x64xf32>
    %211 = arith.addf %209, %210 : vector<16x64xf32>
    %212 = math.tanh %211 : vector<16x64xf32>
    %213 = arith.mulf %206, %212 : vector<16x64xf32>
    %214 = arith.truncf %213 : vector<16x64xf32> to vector<16x64xbf16>
    %c7_i32 = arith.constant 7 : i32
    %c16_i32_46 = arith.constant 16 : i32
    %215 = arith.muli %c7_i32, %c16_i32_46 : i32
    %216 = tpu.assume_multiple %215, 16 : i32
    %cst_47 = arith.constant dense<0.000000e+00> : vector<16x256xf32>
    %217 = tpu.matmul %214, %9, %cst_47 {dimension_numbers = #tpu.dot_dimension_numbers<[1], [0], [0], [1], [0, 0, 1, 1], [], []>} : vector<16x64xbf16>, vector<64x256xbf16>, vector<16x256xf32> -> vector<16x256xf32>
    %218 = arith.index_cast %216 : i32 to index
    %c0_48 = arith.constant 0 : index
    %219 = vector.load %arg8[%218, %c0_48] : memref<448x256xbf16, #tpu.memory_space<vmem>>, vector<16x256xbf16>
    %220 = arith.extf %219 : vector<16x256xbf16> to vector<16x256xf32>
    %221 = arith.addf %217, %220 : vector<16x256xf32>
    %222 = vector.extract_strided_slice %221 {offsets = [0, 0], sizes = [16, 128], strides = [1, 1]} : vector<16x256xf32> to vector<16x128xf32>
    %223 = arith.negf %222 : vector<16x128xf32>
    %224 = math.exp %223 : vector<16x128xf32>
    %cst_49 = arith.constant 1.000000e+00 : f32
    %225 = vector.broadcast %cst_49 : f32 to vector<16x128xf32>
    %226 = arith.addf %225, %224 : vector<16x128xf32>
    %227 = arith.divf %225, %226 : vector<16x128xf32>
    %228 = vector.extract_strided_slice %221 {offsets = [0, 128], sizes = [16, 64], strides = [1, 1]} : vector<16x256xf32> to vector<16x64xf32>
    %229 = math.tanh %228 : vector<16x64xf32>
    %230 = vector.extract_strided_slice %221 {offsets = [0, 192], sizes = [16, 64], strides = [1, 1]} : vector<16x256xf32> to vector<16x64xf32>
    %231 = arith.negf %230 : vector<16x64xf32>
    %232 = math.exp %231 : vector<16x64xf32>
    %cst_50 = arith.constant 1.000000e+00 : f32
    %233 = vector.broadcast %cst_50 : f32 to vector<16x64xf32>
    %234 = arith.addf %233, %232 : vector<16x64xf32>
    %235 = arith.divf %233, %234 : vector<16x64xf32>
    %236 = vector.extract_strided_slice %227 {offsets = [0, 0], sizes = [16, 64], strides = [1, 1]} : vector<16x128xf32> to vector<16x64xf32>
    %237 = vector.extract_strided_slice %227 {offsets = [0, 64], sizes = [16, 64], strides = [1, 1]} : vector<16x128xf32> to vector<16x64xf32>
    %238 = arith.mulf %237, %211 : vector<16x64xf32>
    %239 = arith.mulf %236, %229 : vector<16x64xf32>
    %240 = arith.addf %238, %239 : vector<16x64xf32>
    %241 = math.tanh %240 : vector<16x64xf32>
    %242 = arith.mulf %235, %241 : vector<16x64xf32>
    %243 = arith.truncf %242 : vector<16x64xf32> to vector<16x64xbf16>
    %c8_i32 = arith.constant 8 : i32
    %c16_i32_51 = arith.constant 16 : i32
    %244 = arith.muli %c8_i32, %c16_i32_51 : i32
    %245 = tpu.assume_multiple %244, 16 : i32
    %cst_52 = arith.constant dense<0.000000e+00> : vector<16x256xf32>
    %246 = tpu.matmul %243, %9, %cst_52 {dimension_numbers = #tpu.dot_dimension_numbers<[1], [0], [0], [1], [0, 0, 1, 1], [], []>} : vector<16x64xbf16>, vector<64x256xbf16>, vector<16x256xf32> -> vector<16x256xf32>
    %247 = arith.index_cast %245 : i32 to index
    %c0_53 = arith.constant 0 : index
    %248 = vector.load %arg8[%247, %c0_53] : memref<448x256xbf16, #tpu.memory_space<vmem>>, vector<16x256xbf16>
    %249 = arith.extf %248 : vector<16x256xbf16> to vector<16x256xf32>
    %250 = arith.addf %246, %249 : vector<16x256xf32>
    %251 = vector.extract_strided_slice %250 {offsets = [0, 0], sizes = [16, 128], strides = [1, 1]} : vector<16x256xf32> to vector<16x128xf32>
    %252 = arith.negf %251 : vector<16x128xf32>
    %253 = math.exp %252 : vector<16x128xf32>
    %cst_54 = arith.constant 1.000000e+00 : f32
    %254 = vector.broadcast %cst_54 : f32 to vector<16x128xf32>
    %255 = arith.addf %254, %253 : vector<16x128xf32>
    %256 = arith.divf %254, %255 : vector<16x128xf32>
    %257 = vector.extract_strided_slice %250 {offsets = [0, 128], sizes = [16, 64], strides = [1, 1]} : vector<16x256xf32> to vector<16x64xf32>
    %258 = math.tanh %257 : vector<16x64xf32>
    %259 = vector.extract_strided_slice %250 {offsets = [0, 192], sizes = [16, 64], strides = [1, 1]} : vector<16x256xf32> to vector<16x64xf32>
    %260 = arith.negf %259 : vector<16x64xf32>
    %261 = math.exp %260 : vector<16x64xf32>
    %cst_55 = arith.constant 1.000000e+00 : f32
    %262 = vector.broadcast %cst_55 : f32 to vector<16x64xf32>
    %263 = arith.addf %262, %261 : vector<16x64xf32>
    %264 = arith.divf %262, %263 : vector<16x64xf32>
    %265 = vector.extract_strided_slice %256 {offsets = [0, 0], sizes = [16, 64], strides = [1, 1]} : vector<16x128xf32> to vector<16x64xf32>
    %266 = vector.extract_strided_slice %256 {offsets = [0, 64], sizes = [16, 64], strides = [1, 1]} : vector<16x128xf32> to vector<16x64xf32>
    %267 = arith.mulf %266, %240 : vector<16x64xf32>
    %268 = arith.mulf %265, %258 : vector<16x64xf32>
    %269 = arith.addf %267, %268 : vector<16x64xf32>
    %270 = math.tanh %269 : vector<16x64xf32>
    %271 = arith.mulf %264, %270 : vector<16x64xf32>
    %272 = arith.truncf %271 : vector<16x64xf32> to vector<16x64xbf16>
    %c9_i32 = arith.constant 9 : i32
    %c16_i32_56 = arith.constant 16 : i32
    %273 = arith.muli %c9_i32, %c16_i32_56 : i32
    %274 = tpu.assume_multiple %273, 16 : i32
    %cst_57 = arith.constant dense<0.000000e+00> : vector<16x256xf32>
    %275 = tpu.matmul %272, %9, %cst_57 {dimension_numbers = #tpu.dot_dimension_numbers<[1], [0], [0], [1], [0, 0, 1, 1], [], []>} : vector<16x64xbf16>, vector<64x256xbf16>, vector<16x256xf32> -> vector<16x256xf32>
    %276 = arith.index_cast %274 : i32 to index
    %c0_58 = arith.constant 0 : index
    %277 = vector.load %arg8[%276, %c0_58] : memref<448x256xbf16, #tpu.memory_space<vmem>>, vector<16x256xbf16>
    %278 = arith.extf %277 : vector<16x256xbf16> to vector<16x256xf32>
    %279 = arith.addf %275, %278 : vector<16x256xf32>
    %280 = vector.extract_strided_slice %279 {offsets = [0, 0], sizes = [16, 128], strides = [1, 1]} : vector<16x256xf32> to vector<16x128xf32>
    %281 = arith.negf %280 : vector<16x128xf32>
    %282 = math.exp %281 : vector<16x128xf32>
    %cst_59 = arith.constant 1.000000e+00 : f32
    %283 = vector.broadcast %cst_59 : f32 to vector<16x128xf32>
    %284 = arith.addf %283, %282 : vector<16x128xf32>
    %285 = arith.divf %283, %284 : vector<16x128xf32>
    %286 = vector.extract_strided_slice %279 {offsets = [0, 128], sizes = [16, 64], strides = [1, 1]} : vector<16x256xf32> to vector<16x64xf32>
    %287 = math.tanh %286 : vector<16x64xf32>
    %288 = vector.extract_strided_slice %279 {offsets = [0, 192], sizes = [16, 64], strides = [1, 1]} : vector<16x256xf32> to vector<16x64xf32>
    %289 = arith.negf %288 : vector<16x64xf32>
    %290 = math.exp %289 : vector<16x64xf32>
    %cst_60 = arith.constant 1.000000e+00 : f32
    %291 = vector.broadcast %cst_60 : f32 to vector<16x64xf32>
    %292 = arith.addf %291, %290 : vector<16x64xf32>
    %293 = arith.divf %291, %292 : vector<16x64xf32>
    %294 = vector.extract_strided_slice %285 {offsets = [0, 0], sizes = [16, 64], strides = [1, 1]} : vector<16x128xf32> to vector<16x64xf32>
    %295 = vector.extract_strided_slice %285 {offsets = [0, 64], sizes = [16, 64], strides = [1, 1]} : vector<16x128xf32> to vector<16x64xf32>
    %296 = arith.mulf %295, %269 : vector<16x64xf32>
    %297 = arith.mulf %294, %287 : vector<16x64xf32>
    %298 = arith.addf %296, %297 : vector<16x64xf32>
    %299 = math.tanh %298 : vector<16x64xf32>
    %300 = arith.mulf %293, %299 : vector<16x64xf32>
    %301 = arith.truncf %300 : vector<16x64xf32> to vector<16x64xbf16>
    %c10_i32 = arith.constant 10 : i32
    %c16_i32_61 = arith.constant 16 : i32
    %302 = arith.muli %c10_i32, %c16_i32_61 : i32
    %303 = tpu.assume_multiple %302, 16 : i32
    %cst_62 = arith.constant dense<0.000000e+00> : vector<16x256xf32>
    %304 = tpu.matmul %301, %9, %cst_62 {dimension_numbers = #tpu.dot_dimension_numbers<[1], [0], [0], [1], [0, 0, 1, 1], [], []>} : vector<16x64xbf16>, vector<64x256xbf16>, vector<16x256xf32> -> vector<16x256xf32>
    %305 = arith.index_cast %303 : i32 to index
    %c0_63 = arith.constant 0 : index
    %306 = vector.load %arg8[%305, %c0_63] : memref<448x256xbf16, #tpu.memory_space<vmem>>, vector<16x256xbf16>
    %307 = arith.extf %306 : vector<16x256xbf16> to vector<16x256xf32>
    %308 = arith.addf %304, %307 : vector<16x256xf32>
    %309 = vector.extract_strided_slice %308 {offsets = [0, 0], sizes = [16, 128], strides = [1, 1]} : vector<16x256xf32> to vector<16x128xf32>
    %310 = arith.negf %309 : vector<16x128xf32>
    %311 = math.exp %310 : vector<16x128xf32>
    %cst_64 = arith.constant 1.000000e+00 : f32
    %312 = vector.broadcast %cst_64 : f32 to vector<16x128xf32>
    %313 = arith.addf %312, %311 : vector<16x128xf32>
    %314 = arith.divf %312, %313 : vector<16x128xf32>
    %315 = vector.extract_strided_slice %308 {offsets = [0, 128], sizes = [16, 64], strides = [1, 1]} : vector<16x256xf32> to vector<16x64xf32>
    %316 = math.tanh %315 : vector<16x64xf32>
    %317 = vector.extract_strided_slice %308 {offsets = [0, 192], sizes = [16, 64], strides = [1, 1]} : vector<16x256xf32> to vector<16x64xf32>
    %318 = arith.negf %317 : vector<16x64xf32>
    %319 = math.exp %318 : vector<16x64xf32>
    %cst_65 = arith.constant 1.000000e+00 : f32
    %320 = vector.broadcast %cst_65 : f32 to vector<16x64xf32>
    %321 = arith.addf %320, %319 : vector<16x64xf32>
    %322 = arith.divf %320, %321 : vector<16x64xf32>
    %323 = vector.extract_strided_slice %314 {offsets = [0, 0], sizes = [16, 64], strides = [1, 1]} : vector<16x128xf32> to vector<16x64xf32>
    %324 = vector.extract_strided_slice %314 {offsets = [0, 64], sizes = [16, 64], strides = [1, 1]} : vector<16x128xf32> to vector<16x64xf32>
    %325 = arith.mulf %324, %298 : vector<16x64xf32>
    %326 = arith.mulf %323, %316 : vector<16x64xf32>
    %327 = arith.addf %325, %326 : vector<16x64xf32>
    %328 = math.tanh %327 : vector<16x64xf32>
    %329 = arith.mulf %322, %328 : vector<16x64xf32>
    %330 = arith.truncf %329 : vector<16x64xf32> to vector<16x64xbf16>
    %c11_i32 = arith.constant 11 : i32
    %c16_i32_66 = arith.constant 16 : i32
    %331 = arith.muli %c11_i32, %c16_i32_66 : i32
    %332 = tpu.assume_multiple %331, 16 : i32
    %cst_67 = arith.constant dense<0.000000e+00> : vector<16x256xf32>
    %333 = tpu.matmul %330, %9, %cst_67 {dimension_numbers = #tpu.dot_dimension_numbers<[1], [0], [0], [1], [0, 0, 1, 1], [], []>} : vector<16x64xbf16>, vector<64x256xbf16>, vector<16x256xf32> -> vector<16x256xf32>
    %334 = arith.index_cast %332 : i32 to index
    %c0_68 = arith.constant 0 : index
    %335 = vector.load %arg8[%334, %c0_68] : memref<448x256xbf16, #tpu.memory_space<vmem>>, vector<16x256xbf16>
    %336 = arith.extf %335 : vector<16x256xbf16> to vector<16x256xf32>
    %337 = arith.addf %333, %336 : vector<16x256xf32>
    %338 = vector.extract_strided_slice %337 {offsets = [0, 0], sizes = [16, 128], strides = [1, 1]} : vector<16x256xf32> to vector<16x128xf32>
    %339 = arith.negf %338 : vector<16x128xf32>
    %340 = math.exp %339 : vector<16x128xf32>
    %cst_69 = arith.constant 1.000000e+00 : f32
    %341 = vector.broadcast %cst_69 : f32 to vector<16x128xf32>
    %342 = arith.addf %341, %340 : vector<16x128xf32>
    %343 = arith.divf %341, %342 : vector<16x128xf32>
    %344 = vector.extract_strided_slice %337 {offsets = [0, 128], sizes = [16, 64], strides = [1, 1]} : vector<16x256xf32> to vector<16x64xf32>
    %345 = math.tanh %344 : vector<16x64xf32>
    %346 = vector.extract_strided_slice %337 {offsets = [0, 192], sizes = [16, 64], strides = [1, 1]} : vector<16x256xf32> to vector<16x64xf32>
    %347 = arith.negf %346 : vector<16x64xf32>
    %348 = math.exp %347 : vector<16x64xf32>
    %cst_70 = arith.constant 1.000000e+00 : f32
    %349 = vector.broadcast %cst_70 : f32 to vector<16x64xf32>
    %350 = arith.addf %349, %348 : vector<16x64xf32>
    %351 = arith.divf %349, %350 : vector<16x64xf32>
    %352 = vector.extract_strided_slice %343 {offsets = [0, 0], sizes = [16, 64], strides = [1, 1]} : vector<16x128xf32> to vector<16x64xf32>
    %353 = vector.extract_strided_slice %343 {offsets = [0, 64], sizes = [16, 64], strides = [1, 1]} : vector<16x128xf32> to vector<16x64xf32>
    %354 = arith.mulf %353, %327 : vector<16x64xf32>
    %355 = arith.mulf %352, %345 : vector<16x64xf32>
    %356 = arith.addf %354, %355 : vector<16x64xf32>
    %357 = math.tanh %356 : vector<16x64xf32>
    %358 = arith.mulf %351, %357 : vector<16x64xf32>
    %359 = arith.truncf %358 : vector<16x64xf32> to vector<16x64xbf16>
    %c12_i32 = arith.constant 12 : i32
    %c16_i32_71 = arith.constant 16 : i32
    %360 = arith.muli %c12_i32, %c16_i32_71 : i32
    %361 = tpu.assume_multiple %360, 16 : i32
    %cst_72 = arith.constant dense<0.000000e+00> : vector<16x256xf32>
    %362 = tpu.matmul %359, %9, %cst_72 {dimension_numbers = #tpu.dot_dimension_numbers<[1], [0], [0], [1], [0, 0, 1, 1], [], []>} : vector<16x64xbf16>, vector<64x256xbf16>, vector<16x256xf32> -> vector<16x256xf32>
    %363 = arith.index_cast %361 : i32 to index
    %c0_73 = arith.constant 0 : index
    %364 = vector.load %arg8[%363, %c0_73] : memref<448x256xbf16, #tpu.memory_space<vmem>>, vector<16x256xbf16>
    %365 = arith.extf %364 : vector<16x256xbf16> to vector<16x256xf32>
    %366 = arith.addf %362, %365 : vector<16x256xf32>
    %367 = vector.extract_strided_slice %366 {offsets = [0, 0], sizes = [16, 128], strides = [1, 1]} : vector<16x256xf32> to vector<16x128xf32>
    %368 = arith.negf %367 : vector<16x128xf32>
    %369 = math.exp %368 : vector<16x128xf32>
    %cst_74 = arith.constant 1.000000e+00 : f32
    %370 = vector.broadcast %cst_74 : f32 to vector<16x128xf32>
    %371 = arith.addf %370, %369 : vector<16x128xf32>
    %372 = arith.divf %370, %371 : vector<16x128xf32>
    %373 = vector.extract_strided_slice %366 {offsets = [0, 128], sizes = [16, 64], strides = [1, 1]} : vector<16x256xf32> to vector<16x64xf32>
    %374 = math.tanh %373 : vector<16x64xf32>
    %375 = vector.extract_strided_slice %366 {offsets = [0, 192], sizes = [16, 64], strides = [1, 1]} : vector<16x256xf32> to vector<16x64xf32>
    %376 = arith.negf %375 : vector<16x64xf32>
    %377 = math.exp %376 : vector<16x64xf32>
    %cst_75 = arith.constant 1.000000e+00 : f32
    %378 = vector.broadcast %cst_75 : f32 to vector<16x64xf32>
    %379 = arith.addf %378, %377 : vector<16x64xf32>
    %380 = arith.divf %378, %379 : vector<16x64xf32>
    %381 = vector.extract_strided_slice %372 {offsets = [0, 0], sizes = [16, 64], strides = [1, 1]} : vector<16x128xf32> to vector<16x64xf32>
    %382 = vector.extract_strided_slice %372 {offsets = [0, 64], sizes = [16, 64], strides = [1, 1]} : vector<16x128xf32> to vector<16x64xf32>
    %383 = arith.mulf %382, %356 : vector<16x64xf32>
    %384 = arith.mulf %381, %374 : vector<16x64xf32>
    %385 = arith.addf %383, %384 : vector<16x64xf32>
    %386 = math.tanh %385 : vector<16x64xf32>
    %387 = arith.mulf %380, %386 : vector<16x64xf32>
    %388 = arith.truncf %387 : vector<16x64xf32> to vector<16x64xbf16>
    %c13_i32 = arith.constant 13 : i32
    %c16_i32_76 = arith.constant 16 : i32
    %389 = arith.muli %c13_i32, %c16_i32_76 : i32
    %390 = tpu.assume_multiple %389, 16 : i32
    %cst_77 = arith.constant dense<0.000000e+00> : vector<16x256xf32>
    %391 = tpu.matmul %388, %9, %cst_77 {dimension_numbers = #tpu.dot_dimension_numbers<[1], [0], [0], [1], [0, 0, 1, 1], [], []>} : vector<16x64xbf16>, vector<64x256xbf16>, vector<16x256xf32> -> vector<16x256xf32>
    %392 = arith.index_cast %390 : i32 to index
    %c0_78 = arith.constant 0 : index
    %393 = vector.load %arg8[%392, %c0_78] : memref<448x256xbf16, #tpu.memory_space<vmem>>, vector<16x256xbf16>
    %394 = arith.extf %393 : vector<16x256xbf16> to vector<16x256xf32>
    %395 = arith.addf %391, %394 : vector<16x256xf32>
    %396 = vector.extract_strided_slice %395 {offsets = [0, 0], sizes = [16, 128], strides = [1, 1]} : vector<16x256xf32> to vector<16x128xf32>
    %397 = arith.negf %396 : vector<16x128xf32>
    %398 = math.exp %397 : vector<16x128xf32>
    %cst_79 = arith.constant 1.000000e+00 : f32
    %399 = vector.broadcast %cst_79 : f32 to vector<16x128xf32>
    %400 = arith.addf %399, %398 : vector<16x128xf32>
    %401 = arith.divf %399, %400 : vector<16x128xf32>
    %402 = vector.extract_strided_slice %395 {offsets = [0, 128], sizes = [16, 64], strides = [1, 1]} : vector<16x256xf32> to vector<16x64xf32>
    %403 = math.tanh %402 : vector<16x64xf32>
    %404 = vector.extract_strided_slice %395 {offsets = [0, 192], sizes = [16, 64], strides = [1, 1]} : vector<16x256xf32> to vector<16x64xf32>
    %405 = arith.negf %404 : vector<16x64xf32>
    %406 = math.exp %405 : vector<16x64xf32>
    %cst_80 = arith.constant 1.000000e+00 : f32
    %407 = vector.broadcast %cst_80 : f32 to vector<16x64xf32>
    %408 = arith.addf %407, %406 : vector<16x64xf32>
    %409 = arith.divf %407, %408 : vector<16x64xf32>
    %410 = vector.extract_strided_slice %401 {offsets = [0, 0], sizes = [16, 64], strides = [1, 1]} : vector<16x128xf32> to vector<16x64xf32>
    %411 = vector.extract_strided_slice %401 {offsets = [0, 64], sizes = [16, 64], strides = [1, 1]} : vector<16x128xf32> to vector<16x64xf32>
    %412 = arith.mulf %411, %385 : vector<16x64xf32>
    %413 = arith.mulf %410, %403 : vector<16x64xf32>
    %414 = arith.addf %412, %413 : vector<16x64xf32>
    %415 = math.tanh %414 : vector<16x64xf32>
    %416 = arith.mulf %409, %415 : vector<16x64xf32>
    %417 = arith.truncf %416 : vector<16x64xf32> to vector<16x64xbf16>
    %c14_i32 = arith.constant 14 : i32
    %c16_i32_81 = arith.constant 16 : i32
    %418 = arith.muli %c14_i32, %c16_i32_81 : i32
    %419 = tpu.assume_multiple %418, 16 : i32
    %cst_82 = arith.constant dense<0.000000e+00> : vector<16x256xf32>
    %420 = tpu.matmul %417, %9, %cst_82 {dimension_numbers = #tpu.dot_dimension_numbers<[1], [0], [0], [1], [0, 0, 1, 1], [], []>} : vector<16x64xbf16>, vector<64x256xbf16>, vector<16x256xf32> -> vector<16x256xf32>
    %421 = arith.index_cast %419 : i32 to index
    %c0_83 = arith.constant 0 : index
    %422 = vector.load %arg8[%421, %c0_83] : memref<448x256xbf16, #tpu.memory_space<vmem>>, vector<16x256xbf16>
    %423 = arith.extf %422 : vector<16x256xbf16> to vector<16x256xf32>
    %424 = arith.addf %420, %423 : vector<16x256xf32>
    %425 = vector.extract_strided_slice %424 {offsets = [0, 0], sizes = [16, 128], strides = [1, 1]} : vector<16x256xf32> to vector<16x128xf32>
    %426 = arith.negf %425 : vector<16x128xf32>
    %427 = math.exp %426 : vector<16x128xf32>
    %cst_84 = arith.constant 1.000000e+00 : f32
    %428 = vector.broadcast %cst_84 : f32 to vector<16x128xf32>
    %429 = arith.addf %428, %427 : vector<16x128xf32>
    %430 = arith.divf %428, %429 : vector<16x128xf32>
    %431 = vector.extract_strided_slice %424 {offsets = [0, 128], sizes = [16, 64], strides = [1, 1]} : vector<16x256xf32> to vector<16x64xf32>
    %432 = math.tanh %431 : vector<16x64xf32>
    %433 = vector.extract_strided_slice %424 {offsets = [0, 192], sizes = [16, 64], strides = [1, 1]} : vector<16x256xf32> to vector<16x64xf32>
    %434 = arith.negf %433 : vector<16x64xf32>
    %435 = math.exp %434 : vector<16x64xf32>
    %cst_85 = arith.constant 1.000000e+00 : f32
    %436 = vector.broadcast %cst_85 : f32 to vector<16x64xf32>
    %437 = arith.addf %436, %435 : vector<16x64xf32>
    %438 = arith.divf %436, %437 : vector<16x64xf32>
    %439 = vector.extract_strided_slice %430 {offsets = [0, 0], sizes = [16, 64], strides = [1, 1]} : vector<16x128xf32> to vector<16x64xf32>
    %440 = vector.extract_strided_slice %430 {offsets = [0, 64], sizes = [16, 64], strides = [1, 1]} : vector<16x128xf32> to vector<16x64xf32>
    %441 = arith.mulf %440, %414 : vector<16x64xf32>
    %442 = arith.mulf %439, %432 : vector<16x64xf32>
    %443 = arith.addf %441, %442 : vector<16x64xf32>
    %444 = math.tanh %443 : vector<16x64xf32>
    %445 = arith.mulf %438, %444 : vector<16x64xf32>
    %446 = arith.truncf %445 : vector<16x64xf32> to vector<16x64xbf16>
    %c15_i32 = arith.constant 15 : i32
    %c16_i32_86 = arith.constant 16 : i32
    %447 = arith.muli %c15_i32, %c16_i32_86 : i32
    %448 = tpu.assume_multiple %447, 16 : i32
    %cst_87 = arith.constant dense<0.000000e+00> : vector<16x256xf32>
    %449 = tpu.matmul %446, %9, %cst_87 {dimension_numbers = #tpu.dot_dimension_numbers<[1], [0], [0], [1], [0, 0, 1, 1], [], []>} : vector<16x64xbf16>, vector<64x256xbf16>, vector<16x256xf32> -> vector<16x256xf32>
    %450 = arith.index_cast %448 : i32 to index
    %c0_88 = arith.constant 0 : index
    %451 = vector.load %arg8[%450, %c0_88] : memref<448x256xbf16, #tpu.memory_space<vmem>>, vector<16x256xbf16>
    %452 = arith.extf %451 : vector<16x256xbf16> to vector<16x256xf32>
    %453 = arith.addf %449, %452 : vector<16x256xf32>
    %454 = vector.extract_strided_slice %453 {offsets = [0, 0], sizes = [16, 128], strides = [1, 1]} : vector<16x256xf32> to vector<16x128xf32>
    %455 = arith.negf %454 : vector<16x128xf32>
    %456 = math.exp %455 : vector<16x128xf32>
    %cst_89 = arith.constant 1.000000e+00 : f32
    %457 = vector.broadcast %cst_89 : f32 to vector<16x128xf32>
    %458 = arith.addf %457, %456 : vector<16x128xf32>
    %459 = arith.divf %457, %458 : vector<16x128xf32>
    %460 = vector.extract_strided_slice %453 {offsets = [0, 128], sizes = [16, 64], strides = [1, 1]} : vector<16x256xf32> to vector<16x64xf32>
    %461 = math.tanh %460 : vector<16x64xf32>
    %462 = vector.extract_strided_slice %453 {offsets = [0, 192], sizes = [16, 64], strides = [1, 1]} : vector<16x256xf32> to vector<16x64xf32>
    %463 = arith.negf %462 : vector<16x64xf32>
    %464 = math.exp %463 : vector<16x64xf32>
    %cst_90 = arith.constant 1.000000e+00 : f32
    %465 = vector.broadcast %cst_90 : f32 to vector<16x64xf32>
    %466 = arith.addf %465, %464 : vector<16x64xf32>
    %467 = arith.divf %465, %466 : vector<16x64xf32>
    %468 = vector.extract_strided_slice %459 {offsets = [0, 0], sizes = [16, 64], strides = [1, 1]} : vector<16x128xf32> to vector<16x64xf32>
    %469 = vector.extract_strided_slice %459 {offsets = [0, 64], sizes = [16, 64], strides = [1, 1]} : vector<16x128xf32> to vector<16x64xf32>
    %470 = arith.mulf %469, %443 : vector<16x64xf32>
    %471 = arith.mulf %468, %461 : vector<16x64xf32>
    %472 = arith.addf %470, %471 : vector<16x64xf32>
    %473 = math.tanh %472 : vector<16x64xf32>
    %474 = arith.mulf %467, %473 : vector<16x64xf32>
    %475 = arith.truncf %474 : vector<16x64xf32> to vector<16x64xbf16>
    %c16_i32_91 = arith.constant 16 : i32
    %c16_i32_92 = arith.constant 16 : i32
    %476 = arith.muli %c16_i32_91, %c16_i32_92 : i32
    %477 = tpu.assume_multiple %476, 16 : i32
    %cst_93 = arith.constant dense<0.000000e+00> : vector<16x256xf32>
    %478 = tpu.matmul %475, %9, %cst_93 {dimension_numbers = #tpu.dot_dimension_numbers<[1], [0], [0], [1], [0, 0, 1, 1], [], []>} : vector<16x64xbf16>, vector<64x256xbf16>, vector<16x256xf32> -> vector<16x256xf32>
    %479 = arith.index_cast %477 : i32 to index
    %c0_94 = arith.constant 0 : index
    %480 = vector.load %arg8[%479, %c0_94] : memref<448x256xbf16, #tpu.memory_space<vmem>>, vector<16x256xbf16>
    %481 = arith.extf %480 : vector<16x256xbf16> to vector<16x256xf32>
    %482 = arith.addf %478, %481 : vector<16x256xf32>
    %483 = vector.extract_strided_slice %482 {offsets = [0, 0], sizes = [16, 128], strides = [1, 1]} : vector<16x256xf32> to vector<16x128xf32>
    %484 = arith.negf %483 : vector<16x128xf32>
    %485 = math.exp %484 : vector<16x128xf32>
    %cst_95 = arith.constant 1.000000e+00 : f32
    %486 = vector.broadcast %cst_95 : f32 to vector<16x128xf32>
    %487 = arith.addf %486, %485 : vector<16x128xf32>
    %488 = arith.divf %486, %487 : vector<16x128xf32>
    %489 = vector.extract_strided_slice %482 {offsets = [0, 128], sizes = [16, 64], strides = [1, 1]} : vector<16x256xf32> to vector<16x64xf32>
    %490 = math.tanh %489 : vector<16x64xf32>
    %491 = vector.extract_strided_slice %482 {offsets = [0, 192], sizes = [16, 64], strides = [1, 1]} : vector<16x256xf32> to vector<16x64xf32>
    %492 = arith.negf %491 : vector<16x64xf32>
    %493 = math.exp %492 : vector<16x64xf32>
    %cst_96 = arith.constant 1.000000e+00 : f32
    %494 = vector.broadcast %cst_96 : f32 to vector<16x64xf32>
    %495 = arith.addf %494, %493 : vector<16x64xf32>
    %496 = arith.divf %494, %495 : vector<16x64xf32>
    %497 = vector.extract_strided_slice %488 {offsets = [0, 0], sizes = [16, 64], strides = [1, 1]} : vector<16x128xf32> to vector<16x64xf32>
    %498 = vector.extract_strided_slice %488 {offsets = [0, 64], sizes = [16, 64], strides = [1, 1]} : vector<16x128xf32> to vector<16x64xf32>
    %499 = arith.mulf %498, %472 : vector<16x64xf32>
    %500 = arith.mulf %497, %490 : vector<16x64xf32>
    %501 = arith.addf %499, %500 : vector<16x64xf32>
    %502 = math.tanh %501 : vector<16x64xf32>
    %503 = arith.mulf %496, %502 : vector<16x64xf32>
    %504 = arith.truncf %503 : vector<16x64xf32> to vector<16x64xbf16>
    %c17_i32 = arith.constant 17 : i32
    %c16_i32_97 = arith.constant 16 : i32
    %505 = arith.muli %c17_i32, %c16_i32_97 : i32
    %506 = tpu.assume_multiple %505, 16 : i32
    %cst_98 = arith.constant dense<0.000000e+00> : vector<16x256xf32>
    %507 = tpu.matmul %504, %9, %cst_98 {dimension_numbers = #tpu.dot_dimension_numbers<[1], [0], [0], [1], [0, 0, 1, 1], [], []>} : vector<16x64xbf16>, vector<64x256xbf16>, vector<16x256xf32> -> vector<16x256xf32>
    %508 = arith.index_cast %506 : i32 to index
    %c0_99 = arith.constant 0 : index
    %509 = vector.load %arg8[%508, %c0_99] : memref<448x256xbf16, #tpu.memory_space<vmem>>, vector<16x256xbf16>
    %510 = arith.extf %509 : vector<16x256xbf16> to vector<16x256xf32>
    %511 = arith.addf %507, %510 : vector<16x256xf32>
    %512 = vector.extract_strided_slice %511 {offsets = [0, 0], sizes = [16, 128], strides = [1, 1]} : vector<16x256xf32> to vector<16x128xf32>
    %513 = arith.negf %512 : vector<16x128xf32>
    %514 = math.exp %513 : vector<16x128xf32>
    %cst_100 = arith.constant 1.000000e+00 : f32
    %515 = vector.broadcast %cst_100 : f32 to vector<16x128xf32>
    %516 = arith.addf %515, %514 : vector<16x128xf32>
    %517 = arith.divf %515, %516 : vector<16x128xf32>
    %518 = vector.extract_strided_slice %511 {offsets = [0, 128], sizes = [16, 64], strides = [1, 1]} : vector<16x256xf32> to vector<16x64xf32>
    %519 = math.tanh %518 : vector<16x64xf32>
    %520 = vector.extract_strided_slice %511 {offsets = [0, 192], sizes = [16, 64], strides = [1, 1]} : vector<16x256xf32> to vector<16x64xf32>
    %521 = arith.negf %520 : vector<16x64xf32>
    %522 = math.exp %521 : vector<16x64xf32>
    %cst_101 = arith.constant 1.000000e+00 : f32
    %523 = vector.broadcast %cst_101 : f32 to vector<16x64xf32>
    %524 = arith.addf %523, %522 : vector<16x64xf32>
    %525 = arith.divf %523, %524 : vector<16x64xf32>
    %526 = vector.extract_strided_slice %517 {offsets = [0, 0], sizes = [16, 64], strides = [1, 1]} : vector<16x128xf32> to vector<16x64xf32>
    %527 = vector.extract_strided_slice %517 {offsets = [0, 64], sizes = [16, 64], strides = [1, 1]} : vector<16x128xf32> to vector<16x64xf32>
    %528 = arith.mulf %527, %501 : vector<16x64xf32>
    %529 = arith.mulf %526, %519 : vector<16x64xf32>
    %530 = arith.addf %528, %529 : vector<16x64xf32>
    %531 = math.tanh %530 : vector<16x64xf32>
    %532 = arith.mulf %525, %531 : vector<16x64xf32>
    %533 = arith.truncf %532 : vector<16x64xf32> to vector<16x64xbf16>
    %c18_i32 = arith.constant 18 : i32
    %c16_i32_102 = arith.constant 16 : i32
    %534 = arith.muli %c18_i32, %c16_i32_102 : i32
    %535 = tpu.assume_multiple %534, 16 : i32
    %cst_103 = arith.constant dense<0.000000e+00> : vector<16x256xf32>
    %536 = tpu.matmul %533, %9, %cst_103 {dimension_numbers = #tpu.dot_dimension_numbers<[1], [0], [0], [1], [0, 0, 1, 1], [], []>} : vector<16x64xbf16>, vector<64x256xbf16>, vector<16x256xf32> -> vector<16x256xf32>
    %537 = arith.index_cast %535 : i32 to index
    %c0_104 = arith.constant 0 : index
    %538 = vector.load %arg8[%537, %c0_104] : memref<448x256xbf16, #tpu.memory_space<vmem>>, vector<16x256xbf16>
    %539 = arith.extf %538 : vector<16x256xbf16> to vector<16x256xf32>
    %540 = arith.addf %536, %539 : vector<16x256xf32>
    %541 = vector.extract_strided_slice %540 {offsets = [0, 0], sizes = [16, 128], strides = [1, 1]} : vector<16x256xf32> to vector<16x128xf32>
    %542 = arith.negf %541 : vector<16x128xf32>
    %543 = math.exp %542 : vector<16x128xf32>
    %cst_105 = arith.constant 1.000000e+00 : f32
    %544 = vector.broadcast %cst_105 : f32 to vector<16x128xf32>
    %545 = arith.addf %544, %543 : vector<16x128xf32>
    %546 = arith.divf %544, %545 : vector<16x128xf32>
    %547 = vector.extract_strided_slice %540 {offsets = [0, 128], sizes = [16, 64], strides = [1, 1]} : vector<16x256xf32> to vector<16x64xf32>
    %548 = math.tanh %547 : vector<16x64xf32>
    %549 = vector.extract_strided_slice %540 {offsets = [0, 192], sizes = [16, 64], strides = [1, 1]} : vector<16x256xf32> to vector<16x64xf32>
    %550 = arith.negf %549 : vector<16x64xf32>
    %551 = math.exp %550 : vector<16x64xf32>
    %cst_106 = arith.constant 1.000000e+00 : f32
    %552 = vector.broadcast %cst_106 : f32 to vector<16x64xf32>
    %553 = arith.addf %552, %551 : vector<16x64xf32>
    %554 = arith.divf %552, %553 : vector<16x64xf32>
    %555 = vector.extract_strided_slice %546 {offsets = [0, 0], sizes = [16, 64], strides = [1, 1]} : vector<16x128xf32> to vector<16x64xf32>
    %556 = vector.extract_strided_slice %546 {offsets = [0, 64], sizes = [16, 64], strides = [1, 1]} : vector<16x128xf32> to vector<16x64xf32>
    %557 = arith.mulf %556, %530 : vector<16x64xf32>
    %558 = arith.mulf %555, %548 : vector<16x64xf32>
    %559 = arith.addf %557, %558 : vector<16x64xf32>
    %560 = math.tanh %559 : vector<16x64xf32>
    %561 = arith.mulf %554, %560 : vector<16x64xf32>
    %562 = arith.truncf %561 : vector<16x64xf32> to vector<16x64xbf16>
    %c19_i32 = arith.constant 19 : i32
    %c16_i32_107 = arith.constant 16 : i32
    %563 = arith.muli %c19_i32, %c16_i32_107 : i32
    %564 = tpu.assume_multiple %563, 16 : i32
    %cst_108 = arith.constant dense<0.000000e+00> : vector<16x256xf32>
    %565 = tpu.matmul %562, %9, %cst_108 {dimension_numbers = #tpu.dot_dimension_numbers<[1], [0], [0], [1], [0, 0, 1, 1], [], []>} : vector<16x64xbf16>, vector<64x256xbf16>, vector<16x256xf32> -> vector<16x256xf32>
    %566 = arith.index_cast %564 : i32 to index
    %c0_109 = arith.constant 0 : index
    %567 = vector.load %arg8[%566, %c0_109] : memref<448x256xbf16, #tpu.memory_space<vmem>>, vector<16x256xbf16>
    %568 = arith.extf %567 : vector<16x256xbf16> to vector<16x256xf32>
    %569 = arith.addf %565, %568 : vector<16x256xf32>
    %570 = vector.extract_strided_slice %569 {offsets = [0, 0], sizes = [16, 128], strides = [1, 1]} : vector<16x256xf32> to vector<16x128xf32>
    %571 = arith.negf %570 : vector<16x128xf32>
    %572 = math.exp %571 : vector<16x128xf32>
    %cst_110 = arith.constant 1.000000e+00 : f32
    %573 = vector.broadcast %cst_110 : f32 to vector<16x128xf32>
    %574 = arith.addf %573, %572 : vector<16x128xf32>
    %575 = arith.divf %573, %574 : vector<16x128xf32>
    %576 = vector.extract_strided_slice %569 {offsets = [0, 128], sizes = [16, 64], strides = [1, 1]} : vector<16x256xf32> to vector<16x64xf32>
    %577 = math.tanh %576 : vector<16x64xf32>
    %578 = vector.extract_strided_slice %569 {offsets = [0, 192], sizes = [16, 64], strides = [1, 1]} : vector<16x256xf32> to vector<16x64xf32>
    %579 = arith.negf %578 : vector<16x64xf32>
    %580 = math.exp %579 : vector<16x64xf32>
    %cst_111 = arith.constant 1.000000e+00 : f32
    %581 = vector.broadcast %cst_111 : f32 to vector<16x64xf32>
    %582 = arith.addf %581, %580 : vector<16x64xf32>
    %583 = arith.divf %581, %582 : vector<16x64xf32>
    %584 = vector.extract_strided_slice %575 {offsets = [0, 0], sizes = [16, 64], strides = [1, 1]} : vector<16x128xf32> to vector<16x64xf32>
    %585 = vector.extract_strided_slice %575 {offsets = [0, 64], sizes = [16, 64], strides = [1, 1]} : vector<16x128xf32> to vector<16x64xf32>
    %586 = arith.mulf %585, %559 : vector<16x64xf32>
    %587 = arith.mulf %584, %577 : vector<16x64xf32>
    %588 = arith.addf %586, %587 : vector<16x64xf32>
    %589 = math.tanh %588 : vector<16x64xf32>
    %590 = arith.mulf %583, %589 : vector<16x64xf32>
    %591 = arith.truncf %590 : vector<16x64xf32> to vector<16x64xbf16>
    %c20_i32 = arith.constant 20 : i32
    %c16_i32_112 = arith.constant 16 : i32
    %592 = arith.muli %c20_i32, %c16_i32_112 : i32
    %593 = tpu.assume_multiple %592, 16 : i32
    %cst_113 = arith.constant dense<0.000000e+00> : vector<16x256xf32>
    %594 = tpu.matmul %591, %9, %cst_113 {dimension_numbers = #tpu.dot_dimension_numbers<[1], [0], [0], [1], [0, 0, 1, 1], [], []>} : vector<16x64xbf16>, vector<64x256xbf16>, vector<16x256xf32> -> vector<16x256xf32>
    %595 = arith.index_cast %593 : i32 to index
    %c0_114 = arith.constant 0 : index
    %596 = vector.load %arg8[%595, %c0_114] : memref<448x256xbf16, #tpu.memory_space<vmem>>, vector<16x256xbf16>
    %597 = arith.extf %596 : vector<16x256xbf16> to vector<16x256xf32>
    %598 = arith.addf %594, %597 : vector<16x256xf32>
    %599 = vector.extract_strided_slice %598 {offsets = [0, 0], sizes = [16, 128], strides = [1, 1]} : vector<16x256xf32> to vector<16x128xf32>
    %600 = arith.negf %599 : vector<16x128xf32>
    %601 = math.exp %600 : vector<16x128xf32>
    %cst_115 = arith.constant 1.000000e+00 : f32
    %602 = vector.broadcast %cst_115 : f32 to vector<16x128xf32>
    %603 = arith.addf %602, %601 : vector<16x128xf32>
    %604 = arith.divf %602, %603 : vector<16x128xf32>
    %605 = vector.extract_strided_slice %598 {offsets = [0, 128], sizes = [16, 64], strides = [1, 1]} : vector<16x256xf32> to vector<16x64xf32>
    %606 = math.tanh %605 : vector<16x64xf32>
    %607 = vector.extract_strided_slice %598 {offsets = [0, 192], sizes = [16, 64], strides = [1, 1]} : vector<16x256xf32> to vector<16x64xf32>
    %608 = arith.negf %607 : vector<16x64xf32>
    %609 = math.exp %608 : vector<16x64xf32>
    %cst_116 = arith.constant 1.000000e+00 : f32
    %610 = vector.broadcast %cst_116 : f32 to vector<16x64xf32>
    %611 = arith.addf %610, %609 : vector<16x64xf32>
    %612 = arith.divf %610, %611 : vector<16x64xf32>
    %613 = vector.extract_strided_slice %604 {offsets = [0, 0], sizes = [16, 64], strides = [1, 1]} : vector<16x128xf32> to vector<16x64xf32>
    %614 = vector.extract_strided_slice %604 {offsets = [0, 64], sizes = [16, 64], strides = [1, 1]} : vector<16x128xf32> to vector<16x64xf32>
    %615 = arith.mulf %614, %588 : vector<16x64xf32>
    %616 = arith.mulf %613, %606 : vector<16x64xf32>
    %617 = arith.addf %615, %616 : vector<16x64xf32>
    %618 = math.tanh %617 : vector<16x64xf32>
    %619 = arith.mulf %612, %618 : vector<16x64xf32>
    %620 = arith.truncf %619 : vector<16x64xf32> to vector<16x64xbf16>
    %c21_i32 = arith.constant 21 : i32
    %c16_i32_117 = arith.constant 16 : i32
    %621 = arith.muli %c21_i32, %c16_i32_117 : i32
    %622 = tpu.assume_multiple %621, 16 : i32
    %cst_118 = arith.constant dense<0.000000e+00> : vector<16x256xf32>
    %623 = tpu.matmul %620, %9, %cst_118 {dimension_numbers = #tpu.dot_dimension_numbers<[1], [0], [0], [1], [0, 0, 1, 1], [], []>} : vector<16x64xbf16>, vector<64x256xbf16>, vector<16x256xf32> -> vector<16x256xf32>
    %624 = arith.index_cast %622 : i32 to index
    %c0_119 = arith.constant 0 : index
    %625 = vector.load %arg8[%624, %c0_119] : memref<448x256xbf16, #tpu.memory_space<vmem>>, vector<16x256xbf16>
    %626 = arith.extf %625 : vector<16x256xbf16> to vector<16x256xf32>
    %627 = arith.addf %623, %626 : vector<16x256xf32>
    %628 = vector.extract_strided_slice %627 {offsets = [0, 0], sizes = [16, 128], strides = [1, 1]} : vector<16x256xf32> to vector<16x128xf32>
    %629 = arith.negf %628 : vector<16x128xf32>
    %630 = math.exp %629 : vector<16x128xf32>
    %cst_120 = arith.constant 1.000000e+00 : f32
    %631 = vector.broadcast %cst_120 : f32 to vector<16x128xf32>
    %632 = arith.addf %631, %630 : vector<16x128xf32>
    %633 = arith.divf %631, %632 : vector<16x128xf32>
    %634 = vector.extract_strided_slice %627 {offsets = [0, 128], sizes = [16, 64], strides = [1, 1]} : vector<16x256xf32> to vector<16x64xf32>
    %635 = math.tanh %634 : vector<16x64xf32>
    %636 = vector.extract_strided_slice %627 {offsets = [0, 192], sizes = [16, 64], strides = [1, 1]} : vector<16x256xf32> to vector<16x64xf32>
    %637 = arith.negf %636 : vector<16x64xf32>
    %638 = math.exp %637 : vector<16x64xf32>
    %cst_121 = arith.constant 1.000000e+00 : f32
    %639 = vector.broadcast %cst_121 : f32 to vector<16x64xf32>
    %640 = arith.addf %639, %638 : vector<16x64xf32>
    %641 = arith.divf %639, %640 : vector<16x64xf32>
    %642 = vector.extract_strided_slice %633 {offsets = [0, 0], sizes = [16, 64], strides = [1, 1]} : vector<16x128xf32> to vector<16x64xf32>
    %643 = vector.extract_strided_slice %633 {offsets = [0, 64], sizes = [16, 64], strides = [1, 1]} : vector<16x128xf32> to vector<16x64xf32>
    %644 = arith.mulf %643, %617 : vector<16x64xf32>
    %645 = arith.mulf %642, %635 : vector<16x64xf32>
    %646 = arith.addf %644, %645 : vector<16x64xf32>
    %647 = math.tanh %646 : vector<16x64xf32>
    %648 = arith.mulf %641, %647 : vector<16x64xf32>
    %649 = arith.truncf %648 : vector<16x64xf32> to vector<16x64xbf16>
    %c22_i32 = arith.constant 22 : i32
    %c16_i32_122 = arith.constant 16 : i32
    %650 = arith.muli %c22_i32, %c16_i32_122 : i32
    %651 = tpu.assume_multiple %650, 16 : i32
    %cst_123 = arith.constant dense<0.000000e+00> : vector<16x256xf32>
    %652 = tpu.matmul %649, %9, %cst_123 {dimension_numbers = #tpu.dot_dimension_numbers<[1], [0], [0], [1], [0, 0, 1, 1], [], []>} : vector<16x64xbf16>, vector<64x256xbf16>, vector<16x256xf32> -> vector<16x256xf32>
    %653 = arith.index_cast %651 : i32 to index
    %c0_124 = arith.constant 0 : index
    %654 = vector.load %arg8[%653, %c0_124] : memref<448x256xbf16, #tpu.memory_space<vmem>>, vector<16x256xbf16>
    %655 = arith.extf %654 : vector<16x256xbf16> to vector<16x256xf32>
    %656 = arith.addf %652, %655 : vector<16x256xf32>
    %657 = vector.extract_strided_slice %656 {offsets = [0, 0], sizes = [16, 128], strides = [1, 1]} : vector<16x256xf32> to vector<16x128xf32>
    %658 = arith.negf %657 : vector<16x128xf32>
    %659 = math.exp %658 : vector<16x128xf32>
    %cst_125 = arith.constant 1.000000e+00 : f32
    %660 = vector.broadcast %cst_125 : f32 to vector<16x128xf32>
    %661 = arith.addf %660, %659 : vector<16x128xf32>
    %662 = arith.divf %660, %661 : vector<16x128xf32>
    %663 = vector.extract_strided_slice %656 {offsets = [0, 128], sizes = [16, 64], strides = [1, 1]} : vector<16x256xf32> to vector<16x64xf32>
    %664 = math.tanh %663 : vector<16x64xf32>
    %665 = vector.extract_strided_slice %656 {offsets = [0, 192], sizes = [16, 64], strides = [1, 1]} : vector<16x256xf32> to vector<16x64xf32>
    %666 = arith.negf %665 : vector<16x64xf32>
    %667 = math.exp %666 : vector<16x64xf32>
    %cst_126 = arith.constant 1.000000e+00 : f32
    %668 = vector.broadcast %cst_126 : f32 to vector<16x64xf32>
    %669 = arith.addf %668, %667 : vector<16x64xf32>
    %670 = arith.divf %668, %669 : vector<16x64xf32>
    %671 = vector.extract_strided_slice %662 {offsets = [0, 0], sizes = [16, 64], strides = [1, 1]} : vector<16x128xf32> to vector<16x64xf32>
    %672 = vector.extract_strided_slice %662 {offsets = [0, 64], sizes = [16, 64], strides = [1, 1]} : vector<16x128xf32> to vector<16x64xf32>
    %673 = arith.mulf %672, %646 : vector<16x64xf32>
    %674 = arith.mulf %671, %664 : vector<16x64xf32>
    %675 = arith.addf %673, %674 : vector<16x64xf32>
    %676 = math.tanh %675 : vector<16x64xf32>
    %677 = arith.mulf %670, %676 : vector<16x64xf32>
    %678 = arith.truncf %677 : vector<16x64xf32> to vector<16x64xbf16>
    %c23_i32 = arith.constant 23 : i32
    %c16_i32_127 = arith.constant 16 : i32
    %679 = arith.muli %c23_i32, %c16_i32_127 : i32
    %680 = tpu.assume_multiple %679, 16 : i32
    %cst_128 = arith.constant dense<0.000000e+00> : vector<16x256xf32>
    %681 = tpu.matmul %678, %9, %cst_128 {dimension_numbers = #tpu.dot_dimension_numbers<[1], [0], [0], [1], [0, 0, 1, 1], [], []>} : vector<16x64xbf16>, vector<64x256xbf16>, vector<16x256xf32> -> vector<16x256xf32>
    %682 = arith.index_cast %680 : i32 to index
    %c0_129 = arith.constant 0 : index
    %683 = vector.load %arg8[%682, %c0_129] : memref<448x256xbf16, #tpu.memory_space<vmem>>, vector<16x256xbf16>
    %684 = arith.extf %683 : vector<16x256xbf16> to vector<16x256xf32>
    %685 = arith.addf %681, %684 : vector<16x256xf32>
    %686 = vector.extract_strided_slice %685 {offsets = [0, 0], sizes = [16, 128], strides = [1, 1]} : vector<16x256xf32> to vector<16x128xf32>
    %687 = arith.negf %686 : vector<16x128xf32>
    %688 = math.exp %687 : vector<16x128xf32>
    %cst_130 = arith.constant 1.000000e+00 : f32
    %689 = vector.broadcast %cst_130 : f32 to vector<16x128xf32>
    %690 = arith.addf %689, %688 : vector<16x128xf32>
    %691 = arith.divf %689, %690 : vector<16x128xf32>
    %692 = vector.extract_strided_slice %685 {offsets = [0, 128], sizes = [16, 64], strides = [1, 1]} : vector<16x256xf32> to vector<16x64xf32>
    %693 = math.tanh %692 : vector<16x64xf32>
    %694 = vector.extract_strided_slice %685 {offsets = [0, 192], sizes = [16, 64], strides = [1, 1]} : vector<16x256xf32> to vector<16x64xf32>
    %695 = arith.negf %694 : vector<16x64xf32>
    %696 = math.exp %695 : vector<16x64xf32>
    %cst_131 = arith.constant 1.000000e+00 : f32
    %697 = vector.broadcast %cst_131 : f32 to vector<16x64xf32>
    %698 = arith.addf %697, %696 : vector<16x64xf32>
    %699 = arith.divf %697, %698 : vector<16x64xf32>
    %700 = vector.extract_strided_slice %691 {offsets = [0, 0], sizes = [16, 64], strides = [1, 1]} : vector<16x128xf32> to vector<16x64xf32>
    %701 = vector.extract_strided_slice %691 {offsets = [0, 64], sizes = [16, 64], strides = [1, 1]} : vector<16x128xf32> to vector<16x64xf32>
    %702 = arith.mulf %701, %675 : vector<16x64xf32>
    %703 = arith.mulf %700, %693 : vector<16x64xf32>
    %704 = arith.addf %702, %703 : vector<16x64xf32>
    %705 = math.tanh %704 : vector<16x64xf32>
    %706 = arith.mulf %699, %705 : vector<16x64xf32>
    %707 = arith.truncf %706 : vector<16x64xf32> to vector<16x64xbf16>
    %c24_i32 = arith.constant 24 : i32
    %c16_i32_132 = arith.constant 16 : i32
    %708 = arith.muli %c24_i32, %c16_i32_132 : i32
    %709 = tpu.assume_multiple %708, 16 : i32
    %cst_133 = arith.constant dense<0.000000e+00> : vector<16x256xf32>
    %710 = tpu.matmul %707, %9, %cst_133 {dimension_numbers = #tpu.dot_dimension_numbers<[1], [0], [0], [1], [0, 0, 1, 1], [], []>} : vector<16x64xbf16>, vector<64x256xbf16>, vector<16x256xf32> -> vector<16x256xf32>
    %711 = arith.index_cast %709 : i32 to index
    %c0_134 = arith.constant 0 : index
    %712 = vector.load %arg8[%711, %c0_134] : memref<448x256xbf16, #tpu.memory_space<vmem>>, vector<16x256xbf16>
    %713 = arith.extf %712 : vector<16x256xbf16> to vector<16x256xf32>
    %714 = arith.addf %710, %713 : vector<16x256xf32>
    %715 = vector.extract_strided_slice %714 {offsets = [0, 0], sizes = [16, 128], strides = [1, 1]} : vector<16x256xf32> to vector<16x128xf32>
    %716 = arith.negf %715 : vector<16x128xf32>
    %717 = math.exp %716 : vector<16x128xf32>
    %cst_135 = arith.constant 1.000000e+00 : f32
    %718 = vector.broadcast %cst_135 : f32 to vector<16x128xf32>
    %719 = arith.addf %718, %717 : vector<16x128xf32>
    %720 = arith.divf %718, %719 : vector<16x128xf32>
    %721 = vector.extract_strided_slice %714 {offsets = [0, 128], sizes = [16, 64], strides = [1, 1]} : vector<16x256xf32> to vector<16x64xf32>
    %722 = math.tanh %721 : vector<16x64xf32>
    %723 = vector.extract_strided_slice %714 {offsets = [0, 192], sizes = [16, 64], strides = [1, 1]} : vector<16x256xf32> to vector<16x64xf32>
    %724 = arith.negf %723 : vector<16x64xf32>
    %725 = math.exp %724 : vector<16x64xf32>
    %cst_136 = arith.constant 1.000000e+00 : f32
    %726 = vector.broadcast %cst_136 : f32 to vector<16x64xf32>
    %727 = arith.addf %726, %725 : vector<16x64xf32>
    %728 = arith.divf %726, %727 : vector<16x64xf32>
    %729 = vector.extract_strided_slice %720 {offsets = [0, 0], sizes = [16, 64], strides = [1, 1]} : vector<16x128xf32> to vector<16x64xf32>
    %730 = vector.extract_strided_slice %720 {offsets = [0, 64], sizes = [16, 64], strides = [1, 1]} : vector<16x128xf32> to vector<16x64xf32>
    %731 = arith.mulf %730, %704 : vector<16x64xf32>
    %732 = arith.mulf %729, %722 : vector<16x64xf32>
    %733 = arith.addf %731, %732 : vector<16x64xf32>
    %734 = math.tanh %733 : vector<16x64xf32>
    %735 = arith.mulf %728, %734 : vector<16x64xf32>
    %736 = arith.truncf %735 : vector<16x64xf32> to vector<16x64xbf16>
    %c25_i32 = arith.constant 25 : i32
    %c16_i32_137 = arith.constant 16 : i32
    %737 = arith.muli %c25_i32, %c16_i32_137 : i32
    %738 = tpu.assume_multiple %737, 16 : i32
    %cst_138 = arith.constant dense<0.000000e+00> : vector<16x256xf32>
    %739 = tpu.matmul %736, %9, %cst_138 {dimension_numbers = #tpu.dot_dimension_numbers<[1], [0], [0], [1], [0, 0, 1, 1], [], []>} : vector<16x64xbf16>, vector<64x256xbf16>, vector<16x256xf32> -> vector<16x256xf32>
    %740 = arith.index_cast %738 : i32 to index
    %c0_139 = arith.constant 0 : index
    %741 = vector.load %arg8[%740, %c0_139] : memref<448x256xbf16, #tpu.memory_space<vmem>>, vector<16x256xbf16>
    %742 = arith.extf %741 : vector<16x256xbf16> to vector<16x256xf32>
    %743 = arith.addf %739, %742 : vector<16x256xf32>
    %744 = vector.extract_strided_slice %743 {offsets = [0, 0], sizes = [16, 128], strides = [1, 1]} : vector<16x256xf32> to vector<16x128xf32>
    %745 = arith.negf %744 : vector<16x128xf32>
    %746 = math.exp %745 : vector<16x128xf32>
    %cst_140 = arith.constant 1.000000e+00 : f32
    %747 = vector.broadcast %cst_140 : f32 to vector<16x128xf32>
    %748 = arith.addf %747, %746 : vector<16x128xf32>
    %749 = arith.divf %747, %748 : vector<16x128xf32>
    %750 = vector.extract_strided_slice %743 {offsets = [0, 128], sizes = [16, 64], strides = [1, 1]} : vector<16x256xf32> to vector<16x64xf32>
    %751 = math.tanh %750 : vector<16x64xf32>
    %752 = vector.extract_strided_slice %743 {offsets = [0, 192], sizes = [16, 64], strides = [1, 1]} : vector<16x256xf32> to vector<16x64xf32>
    %753 = arith.negf %752 : vector<16x64xf32>
    %754 = math.exp %753 : vector<16x64xf32>
    %cst_141 = arith.constant 1.000000e+00 : f32
    %755 = vector.broadcast %cst_141 : f32 to vector<16x64xf32>
    %756 = arith.addf %755, %754 : vector<16x64xf32>
    %757 = arith.divf %755, %756 : vector<16x64xf32>
    %758 = vector.extract_strided_slice %749 {offsets = [0, 0], sizes = [16, 64], strides = [1, 1]} : vector<16x128xf32> to vector<16x64xf32>
    %759 = vector.extract_strided_slice %749 {offsets = [0, 64], sizes = [16, 64], strides = [1, 1]} : vector<16x128xf32> to vector<16x64xf32>
    %760 = arith.mulf %759, %733 : vector<16x64xf32>
    %761 = arith.mulf %758, %751 : vector<16x64xf32>
    %762 = arith.addf %760, %761 : vector<16x64xf32>
    %763 = math.tanh %762 : vector<16x64xf32>
    %764 = arith.mulf %757, %763 : vector<16x64xf32>
    %765 = arith.truncf %764 : vector<16x64xf32> to vector<16x64xbf16>
    %c26_i32 = arith.constant 26 : i32
    %c16_i32_142 = arith.constant 16 : i32
    %766 = arith.muli %c26_i32, %c16_i32_142 : i32
    %767 = tpu.assume_multiple %766, 16 : i32
    %cst_143 = arith.constant dense<0.000000e+00> : vector<16x256xf32>
    %768 = tpu.matmul %765, %9, %cst_143 {dimension_numbers = #tpu.dot_dimension_numbers<[1], [0], [0], [1], [0, 0, 1, 1], [], []>} : vector<16x64xbf16>, vector<64x256xbf16>, vector<16x256xf32> -> vector<16x256xf32>
    %769 = arith.index_cast %767 : i32 to index
    %c0_144 = arith.constant 0 : index
    %770 = vector.load %arg8[%769, %c0_144] : memref<448x256xbf16, #tpu.memory_space<vmem>>, vector<16x256xbf16>
    %771 = arith.extf %770 : vector<16x256xbf16> to vector<16x256xf32>
    %772 = arith.addf %768, %771 : vector<16x256xf32>
    %773 = vector.extract_strided_slice %772 {offsets = [0, 0], sizes = [16, 128], strides = [1, 1]} : vector<16x256xf32> to vector<16x128xf32>
    %774 = arith.negf %773 : vector<16x128xf32>
    %775 = math.exp %774 : vector<16x128xf32>
    %cst_145 = arith.constant 1.000000e+00 : f32
    %776 = vector.broadcast %cst_145 : f32 to vector<16x128xf32>
    %777 = arith.addf %776, %775 : vector<16x128xf32>
    %778 = arith.divf %776, %777 : vector<16x128xf32>
    %779 = vector.extract_strided_slice %772 {offsets = [0, 128], sizes = [16, 64], strides = [1, 1]} : vector<16x256xf32> to vector<16x64xf32>
    %780 = math.tanh %779 : vector<16x64xf32>
    %781 = vector.extract_strided_slice %772 {offsets = [0, 192], sizes = [16, 64], strides = [1, 1]} : vector<16x256xf32> to vector<16x64xf32>
    %782 = arith.negf %781 : vector<16x64xf32>
    %783 = math.exp %782 : vector<16x64xf32>
    %cst_146 = arith.constant 1.000000e+00 : f32
    %784 = vector.broadcast %cst_146 : f32 to vector<16x64xf32>
    %785 = arith.addf %784, %783 : vector<16x64xf32>
    %786 = arith.divf %784, %785 : vector<16x64xf32>
    %787 = vector.extract_strided_slice %778 {offsets = [0, 0], sizes = [16, 64], strides = [1, 1]} : vector<16x128xf32> to vector<16x64xf32>
    %788 = vector.extract_strided_slice %778 {offsets = [0, 64], sizes = [16, 64], strides = [1, 1]} : vector<16x128xf32> to vector<16x64xf32>
    %789 = arith.mulf %788, %762 : vector<16x64xf32>
    %790 = arith.mulf %787, %780 : vector<16x64xf32>
    %791 = arith.addf %789, %790 : vector<16x64xf32>
    %792 = math.tanh %791 : vector<16x64xf32>
    %793 = arith.mulf %786, %792 : vector<16x64xf32>
    %794 = arith.truncf %793 : vector<16x64xf32> to vector<16x64xbf16>
    %c27_i32 = arith.constant 27 : i32
    %c16_i32_147 = arith.constant 16 : i32
    %795 = arith.muli %c27_i32, %c16_i32_147 : i32
    %796 = tpu.assume_multiple %795, 16 : i32
    %cst_148 = arith.constant dense<0.000000e+00> : vector<16x256xf32>
    %797 = tpu.matmul %794, %9, %cst_148 {dimension_numbers = #tpu.dot_dimension_numbers<[1], [0], [0], [1], [0, 0, 1, 1], [], []>} : vector<16x64xbf16>, vector<64x256xbf16>, vector<16x256xf32> -> vector<16x256xf32>
    %798 = arith.index_cast %796 : i32 to index
    %c0_149 = arith.constant 0 : index
    %799 = vector.load %arg8[%798, %c0_149] : memref<448x256xbf16, #tpu.memory_space<vmem>>, vector<16x256xbf16>
    %800 = arith.extf %799 : vector<16x256xbf16> to vector<16x256xf32>
    %801 = arith.addf %797, %800 : vector<16x256xf32>
    %802 = vector.extract_strided_slice %801 {offsets = [0, 0], sizes = [16, 128], strides = [1, 1]} : vector<16x256xf32> to vector<16x128xf32>
    %803 = arith.negf %802 : vector<16x128xf32>
    %804 = math.exp %803 : vector<16x128xf32>
    %cst_150 = arith.constant 1.000000e+00 : f32
    %805 = vector.broadcast %cst_150 : f32 to vector<16x128xf32>
    %806 = arith.addf %805, %804 : vector<16x128xf32>
    %807 = arith.divf %805, %806 : vector<16x128xf32>
    %808 = vector.extract_strided_slice %801 {offsets = [0, 128], sizes = [16, 64], strides = [1, 1]} : vector<16x256xf32> to vector<16x64xf32>
    %809 = math.tanh %808 : vector<16x64xf32>
    %810 = vector.extract_strided_slice %801 {offsets = [0, 192], sizes = [16, 64], strides = [1, 1]} : vector<16x256xf32> to vector<16x64xf32>
    %811 = arith.negf %810 : vector<16x64xf32>
    %812 = math.exp %811 : vector<16x64xf32>
    %cst_151 = arith.constant 1.000000e+00 : f32
    %813 = vector.broadcast %cst_151 : f32 to vector<16x64xf32>
    %814 = arith.addf %813, %812 : vector<16x64xf32>
    %815 = arith.divf %813, %814 : vector<16x64xf32>
    %816 = vector.extract_strided_slice %807 {offsets = [0, 0], sizes = [16, 64], strides = [1, 1]} : vector<16x128xf32> to vector<16x64xf32>
    %817 = vector.extract_strided_slice %807 {offsets = [0, 64], sizes = [16, 64], strides = [1, 1]} : vector<16x128xf32> to vector<16x64xf32>
    %818 = arith.mulf %817, %791 : vector<16x64xf32>
    %819 = arith.mulf %816, %809 : vector<16x64xf32>
    %820 = arith.addf %818, %819 : vector<16x64xf32>
    %821 = math.tanh %820 : vector<16x64xf32>
    %822 = arith.mulf %815, %821 : vector<16x64xf32>
    %823 = arith.truncf %822 : vector<16x64xf32> to vector<16x64xbf16>
    %c28_i32 = arith.constant 28 : i32
    %c0_152 = arith.constant 0 : index
    %c0_153 = arith.constant 0 : index
    %824 = vector.load %arg5[%c0_152, %c0_153] : memref<64x128xbf16, #tpu.memory_space<vmem>>, vector<64x128xbf16>
    %cst_154 = arith.constant dense<0.000000e+00> : vector<16x128xf32>
    %825 = tpu.matmul %823, %824, %cst_154 {dimension_numbers = #tpu.dot_dimension_numbers<[1], [0], [0], [1], [0, 0, 1, 1], [], []>} : vector<16x64xbf16>, vector<64x128xbf16>, vector<16x128xf32> -> vector<16x128xf32>
    %c0_155 = arith.constant 0 : index
    %c0_156 = arith.constant 0 : index
    %826 = vector.load %arg6[%c0_155, %c0_156] : memref<1x128xf32, #tpu.memory_space<vmem>>, vector<1x128xf32>
    %827 = vector.broadcast %826 : vector<1x128xf32> to vector<16x128xf32>
    %828 = arith.addf %825, %827 : vector<16x128xf32>
    %c0_157 = arith.constant 0 : index
    %c0_158 = arith.constant 0 : index
    %829 = vector.load %arg7[%c0_157, %c0_158] : memref<16x128xf32, #tpu.memory_space<vmem>>, vector<16x128xf32>
    tpu.vector_store %arg7[%c0_157, %c0_158], %828 {strides = array<i32>} : memref<16x128xf32, #tpu.memory_space<vmem>>, vector<16x128xf32>,
    return
  }
  func.func @transform_0(%arg0: i32) -> (i32, i32, i32) {
    %c0_i32 = arith.constant 0 : i32
    %c0_i32_0 = arith.constant 0 : i32
    %c0_i32_1 = arith.constant 0 : i32
    return %arg0, %c0_i32, %c0_i32_0 : i32, i32, i32
  }
  func.func @transform_1(%arg0: i32) -> (i32, i32) {
    %c0_i32 = arith.constant 0 : i32
    %c0_i32_0 = arith.constant 0 : i32
    %c0_i32_1 = arith.constant 0 : i32
    return %c0_i32, %c0_i32_0 : i32, i32
  }
  func.func @transform_2(%arg0: i32) -> (i32, i32) {
    %c0_i32 = arith.constant 0 : i32
    %c0_i32_0 = arith.constant 0 : i32
    %c0_i32_1 = arith.constant 0 : i32
    return %c0_i32, %c0_i32_0 : i32, i32
  }
  func.func @transform_3(%arg0: i32) -> (i32, i32) {
    %c0_i32 = arith.constant 0 : i32
    %c0_i32_0 = arith.constant 0 : i32
    %c0_i32_1 = arith.constant 0 : i32
    return %c0_i32, %c0_i32_0 : i32, i32
  }
  func.func @transform_4(%arg0: i32) -> (i32, i32) {
    %c0_i32 = arith.constant 0 : i32
    %c0_i32_0 = arith.constant 0 : i32
    %c0_i32_1 = arith.constant 0 : i32
    return %c0_i32, %c0_i32_0 : i32, i32
  }
  func.func @transform_5(%arg0: i32) -> (i32, i32) {
    %c0_i32 = arith.constant 0 : i32
    %c0_i32_0 = arith.constant 0 : i32
    %c0_i32_1 = arith.constant 0 : i32
    return %c0_i32, %c0_i32_0 : i32, i32
  }
  func.func @transform_6(%arg0: i32) -> (i32, i32) {
    %c0_i32 = arith.constant 0 : i32
    %c0_i32_0 = arith.constant 0 : i32
    return %arg0, %c0_i32 : i32, i32
  }
}

</mosaic_0001>

<bundles_post_ra>
// kernel: rnn_forward.1
= control target key start
LH: loop header
LB: loop body
LE: loop exit
PB: predicated region body
PF: predicated region fallthrough
CT: control target
= control target key end

     0   :  { %s5155_s21 = smov 0   ;;  %s6268_s0 = inlined_call_operand.vmem [shape: bf16[2,448,28], index: 0, kind: input, shape index: {}]   ;;  %s6269_s1 = inlined_call_operand.vmem [shape: bf16[28,256], index: 1, kind: input, shape index: {}]   ;;  %s6270_s2 = inlined_call_operand.vmem [shape: bf16[64,256], index: 2, kind: input, shape index: {}]   ;;  %s6271_s3 = inlined_call_operand.vmem [shape: f32[1,256], index: 3, kind: input, shape index: {}]   ;;  %s6272_s4 = inlined_call_operand.vmem [shape: bf16[64,128], index: 4, kind: input, shape index: {}]   ;;  %s6273_s5 = inlined_call_operand.vmem [shape: f32[1,128], index: 5, kind: input, shape index: {}]   ;;  %s6274_s6 = inlined_call_operand.vmem [shape: f32[32,128], index: 6, kind: output, shape index: {}]  }
   0x1 LB: > { %s5161_s22 = sadd.s32 4294967295, %s5114_s21   ;;  %p4106_p0 = scmp.ge.s32.totalorder %s5114_s21, 1  ;;  %s5114_s21 = sphi %s5155_s21, %s16_s21  }
   0x2   : > { %p212_p1 = scmp.lt.s32.totalorder %s5114_s21, 3 }
   0x4   : > { %p213_p2 = pnand %p4106_p0, %p212_p1 }
   0x5   : > { %v4356_v0 = vld [vmem:[%s6269_s1 + $0x4] ss:$8 sps:$4 sm:$0xff] (!%p213_p2)   ;;  %v5116_v2 = vmov (!%p213_p2), 0   ;;  %p242_p3 = scmp.lt.s32.totalorder (!%p213_p2), %s5161_s22, 1  ;;  %v4360_v3 = vld [vmem:[%s6269_s1] ss:$8 sps:$4 sm:$0xff] (!%p213_p2)   ;;  %v316_v15 = vlaneseq (!%p213_p2) }
   0x6   : > { %216 = sbr.rel (%p213_p2) target bundleno = 13994 (0x36aa), region = 44  ;;  %v5171_v1 = vld [vmem:[%s6270_s2 + $0x4] ss:$8 sps:$4 sm:$0xff] (!%p213_p2)   ;;  %608 = vmatprep.mubr.bf16.mxu0 (!%p213_p2), %v5116_v2  ;;  %1094 = vmatprep.mubr.bf16.mxu1 (!%p213_p2), %v5116_v2  ;;  %v5182_v4 = vld [vmem:[%s6270_s2] ss:$8 sps:$4 sm:$0xff] (!%p213_p2)   ;;  %vm569_vm0 = vcmask (!%p213_p2), 1045504  }
   0x7   : > { %576 = vmatprep.subr.bf16.mxu0 (!%p213_p2), %v4356_v0  ;;  %1062 = vmatprep.subr.bf16.mxu1 (!%p213_p2), %v5171_v1  ;;  %v4362_v5 = vld [vmem:[%s6269_s1 + $0x14] ss:$8 sps:$4 sm:$0x3f] (!%p213_p2)   ;;  %v4366_v7 = vld [vmem:[%s6269_s1 + $0x10] ss:$8 sps:$4 sm:$0x3f] (!%p213_p2)  }
   0x8   : > { %577 = vmatpush1.bf16.msra.mxu0 (!%p213_p2), %v4360_v3  ;;  %1063 = vmatpush1.bf16.msra.mxu1 (!%p213_p2), %v5182_v4  ;;  %v5192_v6 = vld [vmem:[%s6270_s2 + $0x14] ss:$8 sps:$4 sm:$0xff] (!%p213_p2)   ;;  %v5200_v8 = vld [vmem:[%s6270_s2 + $0x10] ss:$8 sps:$4 sm:$0xff] (!%p213_p2)   ;;  %v571_v9 = vsel (!%p213_p2), %vm569_vm0, %v4366_v7, 0  ;;  %vm484_vm1 = vcmask (!%p213_p2), 228352  }
   0x9   : > { %4142 = vmatprep.subr.msk.bf16.mxu0 (!%p213_p2), %vm569_vm0, %v4362_v5  ;;  %1064 = vmatprep.subr.bf16.mxu1 (!%p213_p2), %v5192_v6  ;;  %v5209_v10 = vld [vmem:[%s6270_s2 + $0x24] ss:$8 sps:$4 sm:$0xff] (!%p213_p2)   ;;  %v5214_v11 = vld [vmem:[%s6270_s2 + $0x20] ss:$8 sps:$4 sm:$0xff] (!%p213_p2)   ;;  %v5220_v12 = vld [vmem:[%s6270_s2 + $0x34] ss:$8 sps:$4 sm:$0xff] (!%p213_p2)  }
   0xa   : > { %v5233_v14 = vld [vmem:[%s6270_s2 + $0x30] ss:$8 sps:$4 sm:$0xff] (!%p213_p2)   ;;  %v317_v16 = vshrl.u32 (!%p213_p2), %v316_v15, 7  ;;  %v314_v18 = vld [vmem:[%s6271_s3] sm:$0x3] (!%p213_p2)  ;;  %s5117_s8 = smov (!%p213_p2), 64  }
   0xb   : > { %vm1058_vm2 = vcmask (!%p213_p2), 523264   ;;  %vm5119_vm3 = vmmov (!%p213_p2), 0  }
   0xc   : > { %579 = vmatpush1.bf16.msra.mxu0 (!%p213_p2), %v571_v9  ;;  %1065 = vmatpush1.bf16.msra.mxu1 (!%p213_p2), %v5200_v8  ;;  %v318_v17 = vsub.s32 (!%p213_p2), 0, %v317_v16  ;;  %v322_v19 = vsub.s32 (!%p213_p2), 1, %v317_v16 }
   0xd   : > { %s243_s15 = scalar_select %p242_p3, %s5161_s22, 1  ;;  %1066 = vmatprep.subr.bf16.mxu1 %v5209_v10  ;;  %2504 = vmatprep.subr.bf16.mxu0 %v5171_v1 }
   0xe   : > { %v5262_v20 = vrot.slane %v314_v18, %v318_v17  ;;  %v5264_v22 = vrot.slane %v314_v18, %v322_v19 }
   0xf   : > { %s4343_s18 = smul.u32 224, %s243_s15  ;;  %s4108_s15 = sshll.u32 %s5161_s22, 1 }
  0x10   : > { %1067 = vmatpush1.bf16.msra.mxu1 %v5214_v11  ;;  %p248_p4 = scmp.lt.s32.totalorder %s4108_s15, 3 }
  0x11   : > { %s5225_s27 = scalar_lea.vmem %s6268_s0, %s4343_s18  ;;  %1068 = vmatprep.subr.bf16.mxu1 %v5220_v12 }
  0x12   : > { %v4368_v13 = vld [vmem:[%s5225_s27] sm:$0xff]   ;;  %v4375_v56 = vld [vmem:[%s5225_s27 + $0x8] sm:$0xff]   ;;  %s6276_s15 = smov (!%p248_p4, %s4108_s15), 3 }
  0x13   : > { %4143 = vmatmul.mubr.msk.bf16.vlgmr.msra.gmra.mrb[0].mxu0 %vm484_vm1, %v4368_v13  ;;  %s4109_s16 = sshll.u32 %s6276_s15, 3 }
  0x14   : > { %618 = vmatprep.mubr.bf16.mxu0 %v5116_v2  ;;  %2505 = vmatpush1.bf16.msra.mxu0 %v5182_v4 }
  0x15   : > { %2506 = vmatprep.subr.bf16.mxu0 %v5192_v6  ;;  %1069 = vmatpush1.bf16.msra.mxu1 %v5233_v14 }
  0x16   : > { %1165 = vmatprep.subr.bf16.mxu1 %v5171_v1 }
  0x18   : > { %2507 = vmatpush1.bf16.msra.mxu0 %v5200_v8  ;;  %1095 = vmatmul.mubr.bf16.vlgmr.msra.gmra.mrb[0].mxu1 %v5116_v2 }
  0x19   : > { %2508 = vmatprep.subr.bf16.mxu0 %v5209_v10  ;;  %1166 = vmatpush1.bf16.msra.mxu1 %v5182_v4 }
  0x1a   : > { %1197 = vmatprep.mubr.bf16.mxu1 %v5116_v2  ;;  %1167 = vmatprep.subr.bf16.mxu1 %v5192_v6 }
  0x1b   : > { %4144 = vmatmul.mubr.msk.bf16.gmra.mrb[4].mxu0 %vm484_vm1, %v4375_v56 }
  0x1c   : > { %2509 = vmatpush1.bf16.msra.mxu0 %v5214_v11  ;;  %628 = vmatprep.mubr.bf16.mxu0 %v5116_v2 }
  0x1d   : > { %2510 = vmatprep.subr.bf16.mxu0 %v5220_v12  ;;  %1168 = vmatpush1.bf16.msra.mxu1 %v5200_v8 }
  0x1e   : > { %1169 = vmatprep.subr.bf16.mxu1 %v5209_v10 }
  0x20   : > { %2511 = vmatpush1.bf16.msra.mxu0 %v5233_v14 }
  0x21   : > { %2710 = vmatprep.subr.bf16.mxu0 %v5171_v1  ;;  %1170 = vmatpush1.bf16.msra.mxu1 %v5214_v11 }
  0x22   : > { %1171 = vmatprep.subr.bf16.mxu1 %v5220_v12 }
  0x25   : > { %1172 = vmatpush1.bf16.msra.mxu1 %v5233_v14 }
  0x26   : > { %1268 = vmatprep.subr.bf16.mxu1 %v5171_v1 }
  0xe6   : > { %v610_v21 = vpop.f32.mrb[0].mxu0 }
  0xe7   : > { %v612_v23 = vpop.f32.mrb[1].mxu0  ;;  %v611_v25 = vadd.f32 %v610_v21, %v5262_v20 }
  0xe8   : > { %v614_v24 = vpop.f32.mrb[2].mxu0  ;;  %v613_v28 = vadd.f32 %v612_v23, %v5264_v22 }
  0xe9   : > { %v615_v26 = vadd.f32 %v614_v24, %v5262_v20  ;;  %v616_v27 = vpop.f32.mrb[3].mxu0 }
  0xea   : > { %v617_v29 = vadd.f32 %v616_v27, %v5264_v22 }
  0xeb   : > { %v889_v30 = vpack.c.bf16 %v615_v26, %v611_v25  ;;  %v1096_v33 = vpop.f32.mrb[0].mxu1 }
  0xec   : > { %v890_v31 = vpack.c.bf16 %v617_v29, %v613_v28  ;;  %v1098_v35 = vpop.f32.mrb[1].mxu1 }
  0xed   : > { %v1014_v32 = vunpack.c.l.bf16 %v889_v30  ;;  %v1016_v36 = vunpack.c.h.bf16 %v889_v30  ;;  %v1100_v38 = vpop.f32.mrb[2].mxu1 }
  0xee   : > { %v1015_v34 = vunpack.c.l.bf16 %v890_v31  ;;  %v1017_v39 = vunpack.c.h.bf16 %v890_v31  ;;  %v1102_v42 = vpop.f32.mrb[3].mxu1  ;;  %v620_v23 = vpop.f32.mrb[4].mxu0 }
  0xef   : > { %v1097_v37 = vadd.f32 %v1096_v33, %v1014_v32  ;;  %v1101_v41 = vadd.f32 %v1100_v38, %v1016_v36  ;;  %v621_v24 = vadd.f32 %v620_v23, %v5262_v20  ;;  %v622_v25 = vpop.f32.mrb[5].mxu0 }
  0xf0   : > { %v1099_v40 = vadd.f32 %v1098_v35, %v1015_v34  ;;  %v1103_v44 = vadd.f32 %v1102_v42, %v1017_v39  ;;  %v623_v26 = vadd.f32 %v622_v25, %v5264_v22  ;;  %v624_v27 = vpop.f32.mrb[6].mxu0 }
  0xf1   : > { %v4179_v43 = vmul.f32 -1.442695, %v1097_v37  ;;  %v4180_v45 = vmul.f32 -1.442695, %v1101_v41  ;;  %v625_v28 = vadd.f32 %v624_v27, %v5262_v20  ;;  %v626_v29 = vpop.f32.mrb[7].mxu0 }
  0xf2   : > { %v4181_v57 = vmul.f32 -1.442695, %v1099_v40  ;;  %v4182_v58 = vmul.f32 -1.442695, %v1103_v44  ;;  %v627_v30 = vadd.f32 %v626_v29, %v5264_v22 }
  0xf3   : > { %4406 = vpow2.f32 %v4179_v43  ;;  %v891_v31 = vpack.c.bf16 %v625_v28, %v621_v24 }
  0xf4   : > { %4408 = vpow2.f32 %v4180_v45  ;;  %v892_v32 = vpack.c.bf16 %v627_v30, %v623_v26 }
  0xf5   : > { %4410 = vtanh.f32 %v1099_v40  ;;  %v1155_v34 = vunpack.c.l.bf16 %v891_v31  ;;  %v1157_v39 = vunpack.c.h.bf16 %v891_v31 }
  0xf6   : > { %v1156_v35 = vunpack.c.l.bf16 %v892_v32  ;;  %v1158_v42 = vunpack.c.h.bf16 %v892_v32 }
  0xfd   : > { %v4407_v46 = vpop.eup %4406 }
  0xfe   : > { %v1111_v47 = vadd.f32 1.0, %v4407_v46  ;;  %v4409_v48 = vpop.eup %4408 }
  0xff   : > { %v1112_v49 = vadd.f32 1.0, %v4409_v48  ;;  %v4411_v50 = vpop.eup %4410 }
 0x100   : > { %4412 = vrcp.f32 %v1111_v47 }
 0x101   : > { %4414 = vtanh.f32 %v1103_v44 }
 0x102   : > { %4416 = vrcp.f32 %v1112_v49 }
 0x103   : > { %4418 = vpow2.f32 %v4181_v57 }
 0x104   : > { %4420 = vpow2.f32 %v4182_v58  ;;  %v4376_v58 = vld [vmem:[%s5225_s27 + $0x10] sm:$0xff]  }
 0x105   : > { %4145 = vmatmul.mubr.msk.bf16.gmra.mrb[8].mxu0 %vm484_vm1, %v4376_v58 }
 0x106   : > { %638 = vmatprep.mubr.bf16.mxu0 %v5116_v2 }
 0x10a   : > { %v4413_v51 = vpop.eup %4412 }
 0x10b   : > { %v4415_v52 = vpop.eup %4414  ;;  %v1133_v53 = vmul.f32 %v4413_v51, %v4411_v50  ;;  %v1131_v61 = vmul.f32 0.0, %v4413_v51 }
 0x10c   : > { %v4417_v54 = vpop.eup %4416 }
 0x10d   : > { %1137 = vrot.lane.b32.xlu0 %v1133_v53, %s5117_s8  ;;  %v1134_v55 = vmul.f32 %v4417_v54, %v4415_v52  ;;  %v4419_v59 = vpop.eup %4418  ;;  %v1132_v5 = vmul.f32 0.0, %v4417_v54 }
 0x10e   : > { %v4421_v60 = vpop.eup %4420  ;;  %v1125_v62 = vadd.f32 1.0, %v4419_v59 }
 0x10f   : > { %v1126_v3 = vadd.f32 1.0, %v4421_v60 }
 0x110   : > { %4422 = vrcp.f32 %v1125_v62 }
 0x111   : > { %1139 = vrot.lane.b32.xlu0 %v1134_v55, %s5117_s8 }
 0x11a   : > { %v4423_v13 = vpop.eup %4422 }
 0x17f   : > { %v1138_v63 = vpop.permute.xlu0 %1137 }
 0x180   : > { %v5275_v0 = vadd.f32 %v1138_v63, %v1131_v61 }
 0x182   : > { %4424 = vtanh.f32 %v5275_v0 }
 0x183   : > { %v1140_v7 = vpop.permute.xlu0 %1139  ;;  %4426 = vrcp.f32 %v1126_v3 }
 0x184   : > { %v5278_v9 = vadd.f32 %v1140_v7, %v1132_v5 }
 0x186   : > { %4428 = vtanh.f32 %v5278_v9 }
 0x18c   : > { %v4425_v15 = vpop.eup %4424 }
 0x18d   : > { %v4427_v16 = vpop.eup %4426  ;;  %v1147_v18 = vmul.f32 %v4425_v15, %v4423_v13 }
 0x190   : > { %v4429_v17 = vpop.eup %4428 }
 0x191   : > { %v1148_v19 = vmul.f32 %v4429_v17, %v4427_v16 }
 0x193   : > { %v1149_v21 = vpack.c.bf16 %v1148_v19, %v1147_v18 }
 0x195   : > { %1160 = vrot.lane.b32.xlu1 %v1149_v21, %s5117_s8 }
 0x1d8   : > { %v630_v26 = vpop.f32.mrb[8].mxu0 }
 0x1d9   : > { %v632_v27 = vpop.f32.mrb[9].mxu0 }
 0x1da   : > { %v633_v28 = vadd.f32 %v632_v27, %v5264_v22  ;;  %v634_v29 = vpop.f32.mrb[10].mxu0 }
 0x1db   : > { %v635_v30 = vadd.f32 %v634_v29, %v5262_v20  ;;  %v636_v31 = vpop.f32.mrb[11].mxu0 }
 0x1dc   : > { %v637_v32 = vadd.f32 %v636_v31, %v5264_v22 }
 0x207   : > { %v1161_v33 = vpop.permute.xlu1 %1160 }
 0x208   : > { %4183 = vmatmul.mubr.msk.bf16.vlgmr.msra.gmra.mrb[4].mxu1 %vm1058_vm2, %v1161_v33 }
 0x209   : > { %1269 = vmatpush1.bf16.msra.mxu1 %v5182_v4  ;;  %1300 = vmatprep.mubr.bf16.mxu1 %v5116_v2 }
 0x20a   : > { %1270 = vmatprep.subr.bf16.mxu1 %v5192_v6 }
 0x20d   : > { %1271 = vmatpush1.bf16.msra.mxu1 %v5200_v8 }
 0x20e   : > { %1272 = vmatprep.subr.bf16.mxu1 %v5209_v10 }
 0x211   : > { %1273 = vmatpush1.bf16.msra.mxu1 %v5214_v11 }
 0x212   : > { %1274 = vmatprep.subr.bf16.mxu1 %v5220_v12 }
 0x215   : > { %1275 = vmatpush1.bf16.msra.mxu1 %v5233_v14 }
 0x216   : > { %1371 = vmatprep.subr.bf16.mxu1 %v5171_v1 }
 0x2db   : > { %v1199_v36 = vpop.f32.mrb[4].mxu1 }
 0x2dc   : > { %v1200_v37 = vadd.f32 %v1199_v36, %v1155_v34  ;;  %v1201_v38 = vpop.f32.mrb[5].mxu1  ;;  %v894_v34 = vpack.c.bf16 %v637_v32, %v633_v28 }
 0x2dd   : > { %v1202_v40 = vadd.f32 %v1201_v38, %v1156_v35  ;;  %v1203_v41 = vpop.f32.mrb[6].mxu1 }
 0x2de   : > { %v4184_v43 = vmul.f32 -1.442695, %v1200_v37  ;;  %v1204_v44 = vadd.f32 %v1203_v41, %v1157_v39  ;;  %v1205_v45 = vpop.f32.mrb[7].mxu1  ;;  %v1259_v37 = vunpack.c.l.bf16 %v894_v34 }
 0x2df   : > { %v1206_v46 = vadd.f32 %v1205_v45, %v1158_v42  ;;  %v4186_v59 = vmul.f32 -1.442695, %v1202_v40 }
 0x2e0   : > { %4430 = vpow2.f32 %v4184_v43  ;;  %v4185_v47 = vmul.f32 -1.442695, %v1204_v44  ;;  %v1261_v44 = vunpack.c.h.bf16 %v894_v34 }
 0x2e1   : > { %v4187_v60 = vmul.f32 -1.442695, %v1206_v46 }
 0x2e2   : > { %4432 = vpow2.f32 %v4185_v47 }
 0x2e3   : > { %4434 = vtanh.f32 %v1202_v40 }
 0x2ea   : > { %v4431_v48 = vpop.eup %4430 }
 0x2eb   : > { %v1214_v49 = vadd.f32 1.0, %v4431_v48 }
 0x2ec   : > { %v4433_v50 = vpop.eup %4432 }
 0x2ed   : > { %4436 = vrcp.f32 %v1214_v49  ;;  %v1215_v51 = vadd.f32 1.0, %v4433_v50  ;;  %v4435_v52 = vpop.eup %4434 }
 0x2ee   : > { %4438 = vtanh.f32 %v1206_v46 }
 0x2ef   : > { %4440 = vrcp.f32 %v1215_v51 }
 0x2f0   : > { %4442 = vpow2.f32 %v4186_v59 }
 0x2f1   : > { %4444 = vpow2.f32 %v4187_v60  ;;  %v4377_v60 = vld [vmem:[%s5225_s27 + $0x18] sm:$0xff]  }
 0x2f2   : > { %4146 = vmatmul.mubr.msk.bf16.gmra.mrb[12].mxu0 %vm484_vm1, %v4377_v60 }
 0x2f3   : > { %648 = vmatprep.mubr.bf16.mxu0 %v5116_v2 }
 0x2f7   : > { %v4437_v53 = vpop.eup %4436 }
 0x2f8   : > { %v4439_v54 = vpop.eup %4438  ;;  %v1236_v55 = vmul.f32 %v4437_v53, %v4435_v52  ;;  %v1234_v3 = vmul.f32 %v4437_v53, %v5275_v0 }
 0x2f9   : > { %v4441_v56 = vpop.eup %4440 }
 0x2fa   : > { %1240 = vrot.lane.b32.xlu1 %v1236_v55, %s5117_s8  ;;  %v1237_v57 = vmul.f32 %v4441_v56, %v4439_v54  ;;  %v4443_v61 = vpop.eup %4442  ;;  %v1235_v15 = vmul.f32 %v4441_v56, %v5278_v9  ;;  %v631_v9 = vadd.f32 %v630_v26, %v5262_v20 }
 0x2fb   : > { %v4445_v62 = vpop.eup %4444  ;;  %v1228_v63 = vadd.f32 1.0, %v4443_v61 }
 0x2fc   : > { %1242 = vrot.lane.b32.xlu0 %v1237_v57, %s5117_s8  ;;  %v1229_v5 = vadd.f32 1.0, %v4445_v62  ;;  %v893_v33 = vpack.c.bf16 %v635_v30, %v631_v9 }
 0x2fd   : > { %4446 = vrcp.f32 %v1228_v63 }
 0x2fe   : > { %v1258_v36 = vunpack.c.l.bf16 %v893_v33  ;;  %v1260_v41 = vunpack.c.h.bf16 %v893_v33 }
 0x307   : > { %v4447_v18 = vpop.eup %4446 }
 0x36c   : > { %v1241_v7 = vpop.permute.xlu1 %1240 }
 0x36d   : > { %v5302_v13 = vadd.f32 %v1241_v7, %v1234_v3 }
 0x36e   : > { %v1243_v16 = vpop.permute.xlu0 %1242 }
 0x36f   : > { %4448 = vtanh.f32 %v5302_v13  ;;  %v5306_v17 = vadd.f32 %v1243_v16, %v1235_v15 }
 0x370   : > { %4450 = vrcp.f32 %v1229_v5 }
 0x371   : > { %4452 = vtanh.f32 %v5306_v17 }
 0x379   : > { %v4449_v19 = vpop.eup %4448 }
 0x37a   : > { %v4451_v21 = vpop.eup %4450  ;;  %v1250_v0 = vmul.f32 %v4449_v19, %v4447_v18 }
 0x37b   : > { %v4453_v23 = vpop.eup %4452 }
 0x37c   : > { %v1251_v24 = vmul.f32 %v4453_v23, %v4451_v21 }
 0x37e   : > { %v1252_v25 = vpack.c.bf16 %v1251_v24, %v1250_v0 }
 0x380   : > { %1263 = vrot.lane.b32.xlu1 %v1252_v25, %s5117_s8 }
 0x3c5   : > { %v640_v28 = vpop.f32.mrb[12].mxu0 }
 0x3c6   : > { %v642_v29 = vpop.f32.mrb[13].mxu0 }
 0x3c7   : > { %v643_v30 = vadd.f32 %v642_v29, %v5264_v22  ;;  %v644_v31 = vpop.f32.mrb[14].mxu0 }
 0x3c8   : > { %v645_v32 = vadd.f32 %v644_v31, %v5262_v20  ;;  %v646_v33 = vpop.f32.mrb[15].mxu0 }
 0x3c9   : > { %v647_v34 = vadd.f32 %v646_v33, %v5264_v22 }
 0x3f2   : > { %v1264_v35 = vpop.permute.xlu1 %1263 }
 0x3f3   : > { %4188 = vmatmul.mubr.msk.bf16.vlgmr.msra.gmra.mrb[8].mxu1 %vm1058_vm2, %v1264_v35 }
 0x3f4   : > { %1372 = vmatpush1.bf16.msra.mxu1 %v5182_v4  ;;  %1403 = vmatprep.mubr.bf16.mxu1 %v5116_v2 }
 0x3f5   : > { %1373 = vmatprep.subr.bf16.mxu1 %v5192_v6 }
 0x3f8   : > { %1374 = vmatpush1.bf16.msra.mxu1 %v5200_v8 }
 0x3f9   : > { %1375 = vmatprep.subr.bf16.mxu1 %v5209_v10 }
 0x3fc   : > { %1376 = vmatpush1.bf16.msra.mxu1 %v5214_v11 }
 0x3fd   : > { %1377 = vmatprep.subr.bf16.mxu1 %v5220_v12 }
 0x400   : > { %1378 = vmatpush1.bf16.msra.mxu1 %v5233_v14 }
 0x401   : > { %1474 = vmatprep.subr.bf16.mxu1 %v5171_v1 }
 0x4c6   : > { %v1302_v38 = vpop.f32.mrb[8].mxu1 }
 0x4c7   : > { %v1303_v39 = vadd.f32 %v1302_v38, %v1258_v36  ;;  %v1304_v40 = vpop.f32.mrb[9].mxu1  ;;  %v896_v36 = vpack.c.bf16 %v647_v34, %v643_v30 }
 0x4c8   : > { %v1305_v42 = vadd.f32 %v1304_v40, %v1259_v37  ;;  %v1306_v43 = vpop.f32.mrb[10].mxu1 }
 0x4c9   : > { %v4189_v45 = vmul.f32 -1.442695, %v1303_v39  ;;  %v1307_v46 = vadd.f32 %v1306_v43, %v1260_v41  ;;  %v1308_v47 = vpop.f32.mrb[11].mxu1  ;;  %v1362_v39 = vunpack.c.l.bf16 %v896_v36 }
 0x4ca   : > { %v1309_v48 = vadd.f32 %v1308_v47, %v1261_v44  ;;  %v4191_v61 = vmul.f32 -1.442695, %v1305_v42 }
 0x4cb   : > { %4454 = vpow2.f32 %v4189_v45  ;;  %v4190_v49 = vmul.f32 -1.442695, %v1307_v46  ;;  %v1364_v46 = vunpack.c.h.bf16 %v896_v36 }
 0x4cc   : > { %v4192_v62 = vmul.f32 -1.442695, %v1309_v48 }
 0x4cd   : > { %4456 = vpow2.f32 %v4190_v49 }
 0x4ce   : > { %4458 = vtanh.f32 %v1305_v42 }
 0x4d5   : > { %v4455_v50 = vpop.eup %4454 }
 0x4d6   : > { %v1317_v51 = vadd.f32 1.0, %v4455_v50 }
 0x4d7   : > { %v4457_v52 = vpop.eup %4456 }
 0x4d8   : > { %4460 = vrcp.f32 %v1317_v51  ;;  %v1318_v53 = vadd.f32 1.0, %v4457_v52  ;;  %v4459_v54 = vpop.eup %4458 }
 0x4d9   : > { %4462 = vtanh.f32 %v1309_v48 }
 0x4da   : > { %4464 = vrcp.f32 %v1318_v53 }
 0x4db   : > { %4466 = vpow2.f32 %v4191_v61 }
 0x4dc   : > { %4468 = vpow2.f32 %v4192_v62  ;;  %v4378_v62 = vld [vmem:[%s5225_s27 + $0x20] sm:$0xff]  }
 0x4dd   : > { %4147 = vmatmul.mubr.msk.bf16.gmra.mrb[16].mxu0 %vm484_vm1, %v4378_v62 }
 0x4de   : > { %658 = vmatprep.mubr.bf16.mxu0 %v5116_v2 }
 0x4e2   : > { %v4461_v55 = vpop.eup %4460 }
 0x4e3   : > { %v4463_v56 = vpop.eup %4462  ;;  %v1339_v57 = vmul.f32 %v4461_v55, %v4459_v54  ;;  %v1337_v7 = vmul.f32 %v4461_v55, %v5302_v13 }
 0x4e4   : > { %v4465_v58 = vpop.eup %4464 }
 0x4e5   : > { %1343 = vrot.lane.b32.xlu0 %v1339_v57, %s5117_s8  ;;  %v1340_v59 = vmul.f32 %v4465_v58, %v4463_v56  ;;  %v4467_v63 = vpop.eup %4466  ;;  %v1338_v19 = vmul.f32 %v4465_v58, %v5306_v17  ;;  %v641_v17 = vadd.f32 %v640_v28, %v5262_v20 }
 0x4e6   : > { %v4469_v3 = vpop.eup %4468  ;;  %v1331_v5 = vadd.f32 1.0, %v4467_v63 }
 0x4e7   : > { %1345 = vrot.lane.b32.xlu1 %v1340_v59, %s5117_s8  ;;  %v1332_v15 = vadd.f32 1.0, %v4469_v3  ;;  %v895_v35 = vpack.c.bf16 %v645_v32, %v641_v17 }
 0x4e8   : > { %4470 = vrcp.f32 %v1331_v5 }
 0x4e9   : > { %v1361_v38 = vunpack.c.l.bf16 %v895_v35  ;;  %v1363_v43 = vunpack.c.h.bf16 %v895_v35 }
 0x4f2   : > { %v4471_v0 = vpop.eup %4470 }
 0x557   : > { %v1344_v16 = vpop.permute.xlu0 %1343 }
 0x558   : > { %v5330_v18 = vadd.f32 %v1344_v16, %v1337_v7 }
 0x559   : > { %v1346_v21 = vpop.permute.xlu1 %1345 }
 0x55a   : > { %4472 = vtanh.f32 %v5330_v18  ;;  %v5334_v23 = vadd.f32 %v1346_v21, %v1338_v19 }
 0x55b   : > { %4474 = vrcp.f32 %v1332_v15 }
 0x55c   : > { %4476 = vtanh.f32 %v5334_v23 }
 0x564   : > { %v4473_v24 = vpop.eup %4472 }
 0x565   : > { %v4475_v25 = vpop.eup %4474  ;;  %v1353_v13 = vmul.f32 %v4473_v24, %v4471_v0 }
 0x566   : > { %v4477_v26 = vpop.eup %4476 }
 0x567   : > { %v1354_v9 = vmul.f32 %v4477_v26, %v4475_v25 }
 0x569   : > { %v1355_v27 = vpack.c.bf16 %v1354_v9, %v1353_v13 }
 0x56b   : > { %1366 = vrot.lane.b32.xlu0 %v1355_v27, %s5117_s8 }
 0x5b0   : > { %v650_v30 = vpop.f32.mrb[16].mxu0 }
 0x5b1   : > { %v652_v31 = vpop.f32.mrb[17].mxu0 }
 0x5b2   : > { %v653_v32 = vadd.f32 %v652_v31, %v5264_v22  ;;  %v654_v33 = vpop.f32.mrb[18].mxu0 }
 0x5b3   : > { %v655_v34 = vadd.f32 %v654_v33, %v5262_v20  ;;  %v656_v35 = vpop.f32.mrb[19].mxu0 }
 0x5b4   : > { %v657_v36 = vadd.f32 %v656_v35, %v5264_v22  ;;  %v5402_v35 = vld [vmem:[%s6270_s2] ss:$8 sps:$4 sm:$0xff]  }
 0x5dd   : > { %v1367_v37 = vpop.permute.xlu0 %1366 }
 0x5de   : > { %4193 = vmatmul.mubr.msk.bf16.vlgmr.msra.gmra.mrb[12].mxu1 %vm1058_vm2, %v1367_v37 }
 0x5df   : > { %1475 = vmatpush1.bf16.msra.mxu1 %v5182_v4  ;;  %1506 = vmatprep.mubr.bf16.mxu1 %v5116_v2 }
 0x5e0   : > { %1476 = vmatprep.subr.bf16.mxu1 %v5192_v6 }
 0x5e3   : > { %1477 = vmatpush1.bf16.msra.mxu1 %v5200_v8 }
 0x5e4   : > { %1478 = vmatprep.subr.bf16.mxu1 %v5209_v10 }
 0x5e7   : > { %1479 = vmatpush1.bf16.msra.mxu1 %v5214_v11 }
 0x5e8   : > { %1480 = vmatprep.subr.bf16.mxu1 %v5220_v12 }
 0x5eb   : > { %1481 = vmatpush1.bf16.msra.mxu1 %v5233_v14 }
 0x5ec   : > { %1577 = vmatprep.subr.bf16.mxu1 %v5171_v1 }
 0x6b1   : > { %v1405_v40 = vpop.f32.mrb[12].mxu1 }
 0x6b2   : > { %v1406_v41 = vadd.f32 %v1405_v40, %v1361_v38  ;;  %v1407_v42 = vpop.f32.mrb[13].mxu1  ;;  %v898_v38 = vpack.c.bf16 %v657_v36, %v653_v32  ;;  %v5409_v36 = vld [vmem:[%s6270_s2 + $0x14] ss:$8 sps:$4 sm:$0xff]  }
 0x6b3   : > { %v1408_v44 = vadd.f32 %v1407_v42, %v1362_v39  ;;  %v1409_v45 = vpop.f32.mrb[14].mxu1 }
 0x6b4   : > { %v4194_v47 = vmul.f32 -1.442695, %v1406_v41  ;;  %v1410_v48 = vadd.f32 %v1409_v45, %v1363_v43  ;;  %v1411_v49 = vpop.f32.mrb[15].mxu1  ;;  %v1465_v41 = vunpack.c.l.bf16 %v898_v38 }
 0x6b5   : > { %v1412_v50 = vadd.f32 %v1411_v49, %v1364_v46  ;;  %v4196_v63 = vmul.f32 -1.442695, %v1408_v44  ;;  %v1467_v46 = vunpack.c.h.bf16 %v898_v38  ;;  %v5421_v38 = vld [vmem:[%s6270_s2 + $0x24] ss:$8 sps:$4 sm:$0xff]  }
 0x6b6   : > { %4478 = vpow2.f32 %v4194_v47  ;;  %v4195_v51 = vmul.f32 -1.442695, %v1410_v48 }
 0x6b7   : > { %v4197_v3 = vmul.f32 -1.442695, %v1412_v50 }
 0x6b8   : > { %4480 = vpow2.f32 %v4195_v51 }
 0x6b9   : > { %4482 = vtanh.f32 %v1408_v44 }
 0x6c0   : > { %v4479_v52 = vpop.eup %4478 }
 0x6c1   : > { %v1420_v53 = vadd.f32 1.0, %v4479_v52 }
 0x6c2   : > { %v4481_v54 = vpop.eup %4480 }
 0x6c3   : > { %4484 = vrcp.f32 %v1420_v53  ;;  %v1421_v55 = vadd.f32 1.0, %v4481_v54  ;;  %v4483_v56 = vpop.eup %4482 }
 0x6c4   : > { %4486 = vtanh.f32 %v1412_v50 }
 0x6c5   : > { %4488 = vrcp.f32 %v1421_v55 }
 0x6c6   : > { %4490 = vpow2.f32 %v4196_v63 }
 0x6c7   : > { %4492 = vpow2.f32 %v4197_v3 }
 0x6cd   : > { %v4485_v57 = vpop.eup %4484 }
 0x6ce   : > { %v4487_v58 = vpop.eup %4486  ;;  %v1442_v59 = vmul.f32 %v4485_v57, %v4483_v56  ;;  %v1440_v16 = vmul.f32 %v4485_v57, %v5330_v18  ;;  %v4379_v57 = vld [vmem:[%s5225_s27 + $0x28] sm:$0xff]  }
 0x6cf   : > { %v4489_v60 = vpop.eup %4488  ;;  %4148 = vmatmul.mubr.msk.bf16.gmra.mrb[20].mxu0 %vm484_vm1, %v4379_v57 }
 0x6d0   : > { %1446 = vrot.lane.b32.xlu1 %v1442_v59, %s5117_s8  ;;  %v1443_v61 = vmul.f32 %v4489_v60, %v4487_v58  ;;  %v4491_v5 = vpop.eup %4490  ;;  %v1441_v24 = vmul.f32 %v4489_v60, %v5334_v23  ;;  %v651_v23 = vadd.f32 %v650_v30, %v5262_v20  ;;  %668 = vmatprep.mubr.bf16.mxu0 %v5116_v2 }
 0x6d1   : > { %v4493_v7 = vpop.eup %4492  ;;  %v1434_v15 = vadd.f32 1.0, %v4491_v5 }
 0x6d2   : > { %1448 = vrot.lane.b32.xlu0 %v1443_v61, %s5117_s8  ;;  %v1435_v19 = vadd.f32 1.0, %v4493_v7  ;;  %v897_v37 = vpack.c.bf16 %v655_v34, %v651_v23 }
 0x6d3   : > { %4494 = vrcp.f32 %v1434_v15 }
 0x6d4   : > { %v1464_v40 = vunpack.c.l.bf16 %v897_v37  ;;  %v1466_v44 = vunpack.c.h.bf16 %v897_v37  ;;  %v5415_v37 = vld [vmem:[%s6270_s2 + $0x10] ss:$8 sps:$4 sm:$0xff]  }
 0x6dd   : > { %v4495_v13 = vpop.eup %4494 }
 0x742   : > { %v1447_v21 = vpop.permute.xlu1 %1446 }
 0x743   : > { %v5358_v0 = vadd.f32 %v1447_v21, %v1440_v16 }
 0x744   : > { %v1449_v25 = vpop.permute.xlu0 %1448 }
 0x745   : > { %4496 = vtanh.f32 %v5358_v0  ;;  %v5362_v26 = vadd.f32 %v1449_v25, %v1441_v24 }
 0x746   : > { %4498 = vrcp.f32 %v1435_v19 }
 0x747   : > { %4500 = vtanh.f32 %v5362_v26 }
 0x74f   : > { %v4497_v9 = vpop.eup %4496 }
 0x750   : > { %v4499_v27 = vpop.eup %4498  ;;  %v1456_v18 = vmul.f32 %v4497_v9, %v4495_v13 }
 0x751   : > { %v4501_v28 = vpop.eup %4500 }
 0x752   : > { %v1457_v17 = vmul.f32 %v4501_v28, %v4499_v27 }
 0x754   : > { %v1458_v29 = vpack.c.bf16 %v1457_v17, %v1456_v18 }
 0x756   : > { %1469 = vrot.lane.b32.xlu1 %v1458_v29, %s5117_s8 }
 0x7a2   : > { %v660_v28 = vpop.f32.mrb[20].mxu0 }
 0x7a3   : > { %v662_v18 = vpop.f32.mrb[21].mxu0 }
 0x7a4   : > { %v663_v17 = vadd.f32 %v662_v18, %v5264_v22  ;;  %v664_v29 = vpop.f32.mrb[22].mxu0 }
 0x7a5   : > { %v665_v30 = vadd.f32 %v664_v29, %v5262_v20  ;;  %v666_v23 = vpop.f32.mrb[23].mxu0 }
 0x7a6   : > { %v667_v31 = vadd.f32 %v666_v23, %v5264_v22 }
 0x7a8   : > { %v900_v33 = vpack.c.bf16 %v667_v31, %v663_v17 }
 0x7c8   : > { %v1470_v39 = vpop.permute.xlu1 %1469 }
 0x7c9   : > { %4198 = vmatmul.mubr.msk.bf16.vlgmr.msra.gmra.mrb[16].mxu1 %vm1058_vm2, %v1470_v39  ;;  %v5427_v39 = vld [vmem:[%s6270_s2 + $0x20] ss:$8 sps:$4 sm:$0xff]  }
 0x7ca   : > { %1578 = vmatpush1.bf16.msra.mxu1 %v5182_v4  ;;  %1609 = vmatprep.mubr.bf16.mxu1 %v5116_v2 }
 0x7cb   : > { %1579 = vmatprep.subr.bf16.mxu1 %v5192_v6 }
 0x7ce   : > { %1580 = vmatpush1.bf16.msra.mxu1 %v5200_v8 }
 0x7cf   : > { %1581 = vmatprep.subr.bf16.mxu1 %v5209_v10 }
 0x7d2   : > { %1582 = vmatpush1.bf16.msra.mxu1 %v5214_v11 }
 0x7d3   : > { %1583 = vmatprep.subr.bf16.mxu1 %v5220_v12 }
 0x7d6   : > { %1584 = vmatpush1.bf16.msra.mxu1 %v5233_v14 }
 0x7d7   : > { %1680 = vmatprep.subr.bf16.mxu1 %v5171_v1 }
 0x89c   : > { %v1508_v42 = vpop.f32.mrb[16].mxu1 }
 0x89d   : > { %v1509_v4 = vadd.f32 %v1508_v42, %v1464_v40  ;;  %v1510_v43 = vpop.f32.mrb[17].mxu1  ;;  %v5433_v40 = vld [vmem:[%s6270_s2 + $0x34] ss:$8 sps:$4 sm:$0xff]  }
 0x89e   : > { %v1511_v45 = vadd.f32 %v1510_v43, %v1465_v41  ;;  %v1512_v6 = vpop.f32.mrb[18].mxu1  ;;  %v5440_v41 = vld [vmem:[%s6270_s2 + $0x4] ss:$8 sps:$4 sm:$0xff]  }
 0x89f   : > { %v4199_v8 = vmul.f32 -1.442695, %v1509_v4  ;;  %v1513_v47 = vadd.f32 %v1512_v6, %v1466_v44  ;;  %v1514_v10 = vpop.f32.mrb[19].mxu1  ;;  %v1568_v4 = vunpack.c.l.bf16 %v900_v33 }
 0x8a0   : > { %v1515_v48 = vadd.f32 %v1514_v10, %v1467_v46  ;;  %v4201_v58 = vmul.f32 -1.442695, %v1511_v45 }
 0x8a1   : > { %4502 = vpow2.f32 %v4199_v8  ;;  %v4200_v11 = vmul.f32 -1.442695, %v1513_v47  ;;  %v1570_v47 = vunpack.c.h.bf16 %v900_v33 }
 0x8a2   : > { %v4202_v59 = vmul.f32 -1.442695, %v1515_v48 }
 0x8a3   : > { %4504 = vpow2.f32 %v4200_v11 }
 0x8a4   : > { %4506 = vtanh.f32 %v1511_v45 }
 0x8ab   : > { %v4503_v12 = vpop.eup %4502 }
 0x8ac   : > { %v1523_v49 = vadd.f32 1.0, %v4503_v12 }
 0x8ad   : > { %v4505_v1 = vpop.eup %4504 }
 0x8ae   : > { %4508 = vrcp.f32 %v1523_v49  ;;  %v1524_v50 = vadd.f32 1.0, %v4505_v1  ;;  %v4507_v51 = vpop.eup %4506 }
 0x8af   : > { %4510 = vtanh.f32 %v1515_v48 }
 0x8b0   : > { %4512 = vrcp.f32 %v1524_v50 }
 0x8b1   : > { %4514 = vpow2.f32 %v4201_v58  ;;  %v4380_v58 = vld [vmem:[%s5225_s27 + $0x30] sm:$0xff]  }
 0x8b2   : > { %4516 = vpow2.f32 %v4202_v59  ;;  %4149 = vmatmul.mubr.msk.bf16.gmra.mrb[24].mxu0 %vm484_vm1, %v4380_v58 }
 0x8b3   : > { %678 = vmatprep.mubr.bf16.mxu0 %v5116_v2 }
 0x8b8   : > { %v4509_v52 = vpop.eup %4508 }
 0x8b9   : > { %v4511_v53 = vpop.eup %4510  ;;  %v1545_v54 = vmul.f32 %v4509_v52, %v4507_v51  ;;  %v1543_v63 = vmul.f32 %v4509_v52, %v5358_v0 }
 0x8ba   : > { %v4513_v55 = vpop.eup %4512 }
 0x8bb   : > { %1549 = vrot.lane.b32.xlu0 %v1545_v54, %s5117_s8  ;;  %v1546_v56 = vmul.f32 %v4513_v55, %v4511_v53  ;;  %v4515_v60 = vpop.eup %4514  ;;  %v1544_v15 = vmul.f32 %v4513_v55, %v5362_v26  ;;  %v661_v26 = vadd.f32 %v660_v28, %v5262_v20 }
 0x8bc   : > { %v4517_v61 = vpop.eup %4516  ;;  %v1537_v62 = vadd.f32 1.0, %v4515_v60 }
 0x8bd   : > { %1551 = vrot.lane.b32.xlu1 %v1546_v56, %s5117_s8  ;;  %v1538_v3 = vadd.f32 1.0, %v4517_v61  ;;  %v899_v32 = vpack.c.bf16 %v665_v30, %v661_v26 }
 0x8be   : > { %4518 = vrcp.f32 %v1537_v62 }
 0x8bf   : > { %v1567_v42 = vunpack.c.l.bf16 %v899_v32  ;;  %v1569_v6 = vunpack.c.h.bf16 %v899_v32 }
 0x8c8   : > { %v4519_v21 = vpop.eup %4518 }
 0x92d   : > { %v1550_v5 = vpop.permute.xlu0 %1549 }
 0x92e   : > { %v5386_v7 = vadd.f32 %v1550_v5, %v1543_v63 }
 0x92f   : > { %v1552_v16 = vpop.permute.xlu1 %1551 }
 0x930   : > { %4520 = vtanh.f32 %v5386_v7  ;;  %v5390_v19 = vadd.f32 %v1552_v16, %v1544_v15 }
 0x931   : > { %4522 = vrcp.f32 %v1538_v3 }
 0x932   : > { %4524 = vtanh.f32 %v5390_v19 }
 0x93a   : > { %v4521_v24 = vpop.eup %4520 }
 0x93b   : > { %v4523_v25 = vpop.eup %4522  ;;  %v1559_v0 = vmul.f32 %v4521_v24, %v4519_v21 }
 0x93c   : > { %v4525_v13 = vpop.eup %4524 }
 0x93d   : > { %v1560_v9 = vmul.f32 %v4525_v13, %v4523_v25 }
 0x93f   : > { %v1561_v27 = vpack.c.bf16 %v1560_v9, %v1559_v0 }
 0x941   : > { %1572 = vrot.lane.b32.xlu0 %v1561_v27, %s5117_s8 }
 0x985   : > { %v670_v18 = vpop.f32.mrb[24].mxu0 }
 0x986   : > { %v672_v17 = vpop.f32.mrb[25].mxu0 }
 0x987   : > { %v673_v29 = vadd.f32 %v672_v17, %v5264_v22  ;;  %v674_v30 = vpop.f32.mrb[26].mxu0 }
 0x988   : > { %v675_v23 = vadd.f32 %v674_v30, %v5262_v20  ;;  %v676_v31 = vpop.f32.mrb[27].mxu0 }
 0x989   : > { %v677_v32 = vadd.f32 %v676_v31, %v5264_v22 }
 0x9b3   : > { %v1573_v34 = vpop.permute.xlu0 %1572 }
 0x9b4   : > { %4203 = vmatmul.mubr.msk.bf16.vlgmr.msra.gmra.mrb[20].mxu1 %vm1058_vm2, %v1573_v34  ;;  %v902_v34 = vpack.c.bf16 %v677_v32, %v673_v29 }
 0x9b5   : > { %1681 = vmatpush1.bf16.msra.mxu1 %v5402_v35  ;;  %1712 = vmatprep.mubr.bf16.mxu1 %v5116_v2 }
 0x9b6   : > { %1682 = vmatprep.subr.bf16.mxu1 %v5409_v36 }
 0x9b9   : > { %1683 = vmatpush1.bf16.msra.mxu1 %v5415_v37 }
 0x9ba   : > { %1684 = vmatprep.subr.bf16.mxu1 %v5421_v38 }
 0x9bd   : > { %1685 = vmatpush1.bf16.msra.mxu1 %v5427_v39 }
 0x9be   : > { %1686 = vmatprep.subr.bf16.mxu1 %v5433_v40 }
 0x9c1   : > { %1687 = vmatpush1.bf16.msra.mxu1 %v5233_v14 }
 0x9c2   : > { %1783 = vmatprep.subr.bf16.mxu1 %v5440_v41 }
 0xa87   : > { %v1611_v43 = vpop.f32.mrb[20].mxu1 }
 0xa88   : > { %v1612_v44 = vadd.f32 %v1611_v43, %v1567_v42  ;;  %v1613_v45 = vpop.f32.mrb[21].mxu1 }
 0xa89   : > { %v1614_v46 = vadd.f32 %v1613_v45, %v1568_v4  ;;  %v1615_v8 = vpop.f32.mrb[22].mxu1  ;;  %v5472_v4 = vld [vmem:[%s6270_s2 + $0x30] ss:$8 sps:$4 sm:$0xff]  }
 0xa8a   : > { %v4204_v10 = vmul.f32 -1.442695, %v1612_v44  ;;  %v1616_v48 = vadd.f32 %v1615_v8, %v1569_v6  ;;  %v1617_v11 = vpop.f32.mrb[23].mxu1  ;;  %v1671_v44 = vunpack.c.l.bf16 %v902_v34 }
 0xa8b   : > { %v1618_v14 = vadd.f32 %v1617_v11, %v1570_v47  ;;  %v4206_v59 = vmul.f32 -1.442695, %v1614_v46 }
 0xa8c   : > { %4526 = vpow2.f32 %v4204_v10  ;;  %v4205_v12 = vmul.f32 -1.442695, %v1616_v48  ;;  %v1673_v48 = vunpack.c.h.bf16 %v902_v34 }
 0xa8d   : > { %v4207_v60 = vmul.f32 -1.442695, %v1618_v14 }
 0xa8e   : > { %4528 = vpow2.f32 %v4205_v12 }
 0xa8f   : > { %4530 = vtanh.f32 %v1614_v46 }
 0xa96   : > { %v4527_v49 = vpop.eup %4526 }
 0xa97   : > { %v1626_v1 = vadd.f32 1.0, %v4527_v49 }
 0xa98   : > { %v4529_v50 = vpop.eup %4528 }
 0xa99   : > { %4532 = vrcp.f32 %v1626_v1  ;;  %v1627_v51 = vadd.f32 1.0, %v4529_v50  ;;  %v4531_v52 = vpop.eup %4530 }
 0xa9a   : > { %4534 = vtanh.f32 %v1618_v14 }
 0xa9b   : > { %4536 = vrcp.f32 %v1627_v51 }
 0xa9c   : > { %4538 = vpow2.f32 %v4206_v59 }
 0xa9d   : > { %4540 = vpow2.f32 %v4207_v60  ;;  %v4381_v60 = vld [vmem:[%s5225_s27 + $0x38] sm:$0xff]  }
 0xa9e   : > { %4150 = vmatmul.mubr.msk.bf16.gmra.mrb[28].mxu0 %vm484_vm1, %v4381_v60 }
 0xa9f   : > { %688 = vmatprep.mubr.bf16.mxu0 %v5116_v2 }
 0xaa3   : > { %v4533_v53 = vpop.eup %4532 }
 0xaa4   : > { %v4535_v54 = vpop.eup %4534  ;;  %v1648_v55 = vmul.f32 %v4533_v53, %v4531_v52  ;;  %v1646_v3 = vmul.f32 %v4533_v53, %v5386_v7 }
 0xaa5   : > { %v4537_v56 = vpop.eup %4536 }
 0xaa6   : > { %1652 = vrot.lane.b32.xlu1 %v1648_v55, %s5117_s8  ;;  %v1649_v57 = vmul.f32 %v4537_v56, %v4535_v54  ;;  %v4539_v61 = vpop.eup %4538  ;;  %v1647_v21 = vmul.f32 %v4537_v56, %v5390_v19  ;;  %v671_v19 = vadd.f32 %v670_v18, %v5262_v20 }
 0xaa7   : > { %v4541_v62 = vpop.eup %4540  ;;  %v1640_v63 = vadd.f32 1.0, %v4539_v61 }
 0xaa8   : > { %1654 = vrot.lane.b32.xlu0 %v1649_v57, %s5117_s8  ;;  %v1641_v5 = vadd.f32 1.0, %v4541_v62  ;;  %v901_v33 = vpack.c.bf16 %v675_v23, %v671_v19 }
 0xaa9   : > { %4542 = vrcp.f32 %v1640_v63 }
 0xaaa   : > { %v1670_v43 = vunpack.c.l.bf16 %v901_v33  ;;  %v1672_v8 = vunpack.c.h.bf16 %v901_v33 }
 0xab3   : > { %v4543_v13 = vpop.eup %4542 }
 0xb18   : > { %v1653_v15 = vpop.permute.xlu1 %1652 }
 0xb19   : > { %v5449_v16 = vadd.f32 %v1653_v15, %v1646_v3 }
 0xb1a   : > { %v1655_v24 = vpop.permute.xlu0 %1654 }
 0xb1b   : > { %4544 = vtanh.f32 %v5449_v16  ;;  %v5453_v25 = vadd.f32 %v1655_v24, %v1647_v21 }
 0xb1c   : > { %4546 = vrcp.f32 %v1641_v5 }
 0xb1d   : > { %4548 = vtanh.f32 %v5453_v25 }
 0xb25   : > { %v4545_v0 = vpop.eup %4544 }
 0xb26   : > { %v4547_v9 = vpop.eup %4546  ;;  %v1662_v7 = vmul.f32 %v4545_v0, %v4543_v13 }
 0xb27   : > { %v4549_v27 = vpop.eup %4548 }
 0xb28   : > { %v1663_v28 = vmul.f32 %v4549_v27, %v4547_v9 }
 0xb2a   : > { %v1664_v26 = vpack.c.bf16 %v1663_v28, %v1662_v7 }
 0xb2c   : > { %1675 = vrot.lane.b32.xlu1 %v1664_v26, %s5117_s8 }
 0xb71   : > { %v680_v29 = vpop.f32.mrb[28].mxu0 }
 0xb72   : > { %v682_v30 = vpop.f32.mrb[29].mxu0 }
 0xb73   : > { %v683_v23 = vadd.f32 %v682_v30, %v5264_v22  ;;  %v684_v31 = vpop.f32.mrb[30].mxu0 }
 0xb74   : > { %v685_v32 = vadd.f32 %v684_v31, %v5262_v20  ;;  %v686_v33 = vpop.f32.mrb[31].mxu0 }
 0xb75   : > { %v687_v34 = vadd.f32 %v686_v33, %v5264_v22 }
 0xb9e   : > { %v1676_v42 = vpop.permute.xlu1 %1675 }
 0xb9f   : > { %4208 = vmatmul.mubr.msk.bf16.vlgmr.msra.gmra.mrb[24].mxu1 %vm1058_vm2, %v1676_v42 }
 0xba0   : > { %1784 = vmatpush1.bf16.msra.mxu1 %v5402_v35  ;;  %1815 = vmatprep.mubr.bf16.mxu1 %v5116_v2 }
 0xba1   : > { %1785 = vmatprep.subr.bf16.mxu1 %v5409_v36 }
 0xba4   : > { %1786 = vmatpush1.bf16.msra.mxu1 %v5415_v37 }
 0xba5   : > { %1787 = vmatprep.subr.bf16.mxu1 %v5421_v38 }
 0xba8   : > { %1788 = vmatpush1.bf16.msra.mxu1 %v5427_v39 }
 0xba9   : > { %1789 = vmatprep.subr.bf16.mxu1 %v5433_v40 }
 0xbac   : > { %1790 = vmatpush1.bf16.msra.mxu1 %v5472_v4 }
 0xbad   : > { %1886 = vmatprep.subr.bf16.mxu1 %v5440_v41 }
 0xc72   : > { %v1714_v45 = vpop.f32.mrb[24].mxu1 }
 0xc73   : > { %v1715_v6 = vadd.f32 %v1714_v45, %v1670_v43  ;;  %v1716_v46 = vpop.f32.mrb[25].mxu1  ;;  %v904_v43 = vpack.c.bf16 %v687_v34, %v683_v23 }
 0xc74   : > { %v1717_v47 = vadd.f32 %v1716_v46, %v1671_v44  ;;  %v1718_v10 = vpop.f32.mrb[26].mxu1 }
 0xc75   : > { %v4209_v11 = vmul.f32 -1.442695, %v1715_v6  ;;  %v1719_v14 = vadd.f32 %v1718_v10, %v1672_v8  ;;  %v1720_v12 = vpop.f32.mrb[27].mxu1  ;;  %v1774_v6 = vunpack.c.l.bf16 %v904_v43 }
 0xc76   : > { %v1721_v49 = vadd.f32 %v1720_v12, %v1673_v48  ;;  %v4211_v61 = vmul.f32 -1.442695, %v1717_v47 }
 0xc77   : > { %4550 = vpow2.f32 %v4209_v11  ;;  %v4210_v1 = vmul.f32 -1.442695, %v1719_v14  ;;  %v1776_v14 = vunpack.c.h.bf16 %v904_v43 }
 0xc78   : > { %v4212_v62 = vmul.f32 -1.442695, %v1721_v49 }
 0xc79   : > { %4552 = vpow2.f32 %v4210_v1 }
 0xc7a   : > { %4554 = vtanh.f32 %v1717_v47 }
 0xc81   : > { %v4551_v50 = vpop.eup %4550 }
 0xc82   : > { %v1729_v51 = vadd.f32 1.0, %v4551_v50 }
 0xc83   : > { %v4553_v52 = vpop.eup %4552 }
 0xc84   : > { %4556 = vrcp.f32 %v1729_v51  ;;  %v1730_v53 = vadd.f32 1.0, %v4553_v52  ;;  %v4555_v54 = vpop.eup %4554 }
 0xc85   : > { %4558 = vtanh.f32 %v1721_v49 }
 0xc86   : > { %4560 = vrcp.f32 %v1730_v53 }
 0xc87   : > { %4562 = vpow2.f32 %v4211_v61 }
 0xc88   : > { %4564 = vpow2.f32 %v4212_v62  ;;  %v4382_v62 = vld [vmem:[%s5225_s27 + $0x40] sm:$0xff]  }
 0xc89   : > { %4151 = vmatmul.mubr.msk.bf16.gmra.mrb[32].mxu0 %vm484_vm1, %v4382_v62 }
 0xc8a   : > { %698 = vmatprep.mubr.bf16.mxu0 %v5116_v2 }
 0xc8e   : > { %v4557_v55 = vpop.eup %4556 }
 0xc8f   : > { %v4559_v56 = vpop.eup %4558  ;;  %v1751_v57 = vmul.f32 %v4557_v55, %v4555_v54  ;;  %v1749_v15 = vmul.f32 %v4557_v55, %v5449_v16 }
 0xc90   : > { %v4561_v58 = vpop.eup %4560 }
 0xc91   : > { %1755 = vrot.lane.b32.xlu0 %v1751_v57, %s5117_s8  ;;  %v1752_v59 = vmul.f32 %v4561_v58, %v4559_v56  ;;  %v4563_v63 = vpop.eup %4562  ;;  %v1750_v0 = vmul.f32 %v4561_v58, %v5453_v25  ;;  %v681_v25 = vadd.f32 %v680_v29, %v5262_v20 }
 0xc92   : > { %v4565_v3 = vpop.eup %4564  ;;  %v1743_v5 = vadd.f32 1.0, %v4563_v63 }
 0xc93   : > { %1757 = vrot.lane.b32.xlu1 %v1752_v59, %s5117_s8  ;;  %v1744_v21 = vadd.f32 1.0, %v4565_v3  ;;  %v903_v42 = vpack.c.bf16 %v685_v32, %v681_v25 }
 0xc94   : > { %4566 = vrcp.f32 %v1743_v5 }
 0xc95   : > { %v1773_v45 = vunpack.c.l.bf16 %v903_v42  ;;  %v1775_v10 = vunpack.c.h.bf16 %v903_v42 }
 0xc9e   : > { %v4567_v7 = vpop.eup %4566 }
 0xd03   : > { %v1756_v24 = vpop.permute.xlu0 %1755 }
 0xd04   : > { %v5482_v13 = vadd.f32 %v1756_v24, %v1749_v15 }
 0xd05   : > { %v1758_v9 = vpop.permute.xlu1 %1757 }
 0xd06   : > { %4568 = vtanh.f32 %v5482_v13  ;;  %v5486_v27 = vadd.f32 %v1758_v9, %v1750_v0 }
 0xd07   : > { %4570 = vrcp.f32 %v1744_v21 }
 0xd08   : > { %4572 = vtanh.f32 %v5486_v27 }
 0xd10   : > { %v4569_v28 = vpop.eup %4568 }
 0xd11   : > { %v4571_v26 = vpop.eup %4570  ;;  %v1765_v16 = vmul.f32 %v4569_v28, %v4567_v7 }
 0xd12   : > { %v4573_v18 = vpop.eup %4572 }
 0xd13   : > { %v1766_v19 = vmul.f32 %v4573_v18, %v4571_v26 }
 0xd15   : > { %v1767_v17 = vpack.c.bf16 %v1766_v19, %v1765_v16 }
 0xd17   : > { %1778 = vrot.lane.b32.xlu0 %v1767_v17, %s5117_s8 }
 0xd5c   : > { %v690_v23 = vpop.f32.mrb[32].mxu0 }
 0xd5d   : > { %v692_v31 = vpop.f32.mrb[33].mxu0 }
 0xd5e   : > { %v693_v32 = vadd.f32 %v692_v31, %v5264_v22  ;;  %v694_v33 = vpop.f32.mrb[34].mxu0 }
 0xd5f   : > { %v695_v34 = vadd.f32 %v694_v33, %v5262_v20  ;;  %v696_v42 = vpop.f32.mrb[35].mxu0 }
 0xd60   : > { %v697_v43 = vadd.f32 %v696_v42, %v5264_v22 }
 0xd89   : > { %v1779_v44 = vpop.permute.xlu0 %1778 }
 0xd8a   : > { %4213 = vmatmul.mubr.msk.bf16.vlgmr.msra.gmra.mrb[28].mxu1 %vm1058_vm2, %v1779_v44 }
 0xd8b   : > { %1887 = vmatpush1.bf16.msra.mxu1 %v5402_v35  ;;  %1918 = vmatprep.mubr.bf16.mxu1 %v5116_v2 }
 0xd8c   : > { %1888 = vmatprep.subr.bf16.mxu1 %v5409_v36 }
 0xd8f   : > { %1889 = vmatpush1.bf16.msra.mxu1 %v5415_v37 }
 0xd90   : > { %1890 = vmatprep.subr.bf16.mxu1 %v5421_v38 }
 0xd93   : > { %1891 = vmatpush1.bf16.msra.mxu1 %v5427_v39 }
 0xd94   : > { %1892 = vmatprep.subr.bf16.mxu1 %v5433_v40 }
 0xd97   : > { %1893 = vmatpush1.bf16.msra.mxu1 %v5472_v4 }
 0xd98   : > { %1989 = vmatprep.subr.bf16.mxu1 %v5440_v41 }
 0xe5d   : > { %v1817_v46 = vpop.f32.mrb[28].mxu1 }
 0xe5e   : > { %v1818_v8 = vadd.f32 %v1817_v46, %v1773_v45  ;;  %v1819_v47 = vpop.f32.mrb[29].mxu1  ;;  %v906_v45 = vpack.c.bf16 %v697_v43, %v693_v32 }
 0xe5f   : > { %v1820_v48 = vadd.f32 %v1819_v47, %v1774_v6  ;;  %v1821_v11 = vpop.f32.mrb[30].mxu1 }
 0xe60   : > { %v4214_v12 = vmul.f32 -1.442695, %v1818_v8  ;;  %v1822_v49 = vadd.f32 %v1821_v11, %v1775_v10  ;;  %v1823_v1 = vpop.f32.mrb[31].mxu1  ;;  %v1877_v8 = vunpack.c.l.bf16 %v906_v45 }
 0xe61   : > { %v1824_v50 = vadd.f32 %v1823_v1, %v1776_v14  ;;  %v4216_v63 = vmul.f32 -1.442695, %v1820_v48 }
 0xe62   : > { %4574 = vpow2.f32 %v4214_v12  ;;  %v4215_v51 = vmul.f32 -1.442695, %v1822_v49  ;;  %v1879_v49 = vunpack.c.h.bf16 %v906_v45 }
 0xe63   : > { %v4217_v3 = vmul.f32 -1.442695, %v1824_v50 }
 0xe64   : > { %4576 = vpow2.f32 %v4215_v51 }
 0xe65   : > { %4578 = vtanh.f32 %v1820_v48 }
 0xe6c   : > { %v4575_v52 = vpop.eup %4574 }
 0xe6d   : > { %v1832_v53 = vadd.f32 1.0, %v4575_v52 }
 0xe6e   : > { %v4577_v54 = vpop.eup %4576 }
 0xe6f   : > { %4580 = vrcp.f32 %v1832_v53  ;;  %v1833_v55 = vadd.f32 1.0, %v4577_v54  ;;  %v4579_v56 = vpop.eup %4578 }
 0xe70   : > { %4582 = vtanh.f32 %v1824_v50 }
 0xe71   : > { %4584 = vrcp.f32 %v1833_v55 }
 0xe72   : > { %4586 = vpow2.f32 %v4216_v63 }
 0xe73   : > { %4588 = vpow2.f32 %v4217_v3  ;;  %v4383_v3 = vld [vmem:[%s5225_s27 + $0x48] sm:$0xff]  }
 0xe74   : > { %4152 = vmatmul.mubr.msk.bf16.gmra.mrb[36].mxu0 %vm484_vm1, %v4383_v3 }
 0xe75   : > { %708 = vmatprep.mubr.bf16.mxu0 %v5116_v2 }
 0xe79   : > { %v4581_v57 = vpop.eup %4580 }
 0xe7a   : > { %v4583_v58 = vpop.eup %4582  ;;  %v1854_v59 = vmul.f32 %v4581_v57, %v4579_v56  ;;  %v1852_v24 = vmul.f32 %v4581_v57, %v5482_v13 }
 0xe7b   : > { %v4585_v60 = vpop.eup %4584 }
 0xe7c   : > { %1858 = vrot.lane.b32.xlu1 %v1854_v59, %s5117_s8  ;;  %v1855_v61 = vmul.f32 %v4585_v60, %v4583_v58  ;;  %v4587_v5 = vpop.eup %4586  ;;  %v1853_v28 = vmul.f32 %v4585_v60, %v5486_v27  ;;  %v691_v27 = vadd.f32 %v690_v23, %v5262_v20 }
 0xe7d   : > { %v4589_v15 = vpop.eup %4588  ;;  %v1846_v21 = vadd.f32 1.0, %v4587_v5 }
 0xe7e   : > { %1860 = vrot.lane.b32.xlu0 %v1855_v61, %s5117_s8  ;;  %v1847_v0 = vadd.f32 1.0, %v4589_v15  ;;  %v905_v44 = vpack.c.bf16 %v695_v34, %v691_v27 }
 0xe7f   : > { %4590 = vrcp.f32 %v1846_v21 }
 0xe80   : > { %v1876_v46 = vunpack.c.l.bf16 %v905_v44  ;;  %v1878_v11 = vunpack.c.h.bf16 %v905_v44 }
 0xe89   : > { %v4591_v16 = vpop.eup %4590 }
 0xeee   : > { %v1859_v9 = vpop.permute.xlu1 %1858 }
 0xeef   : > { %v5510_v7 = vadd.f32 %v1859_v9, %v1852_v24 }
 0xef0   : > { %v1861_v26 = vpop.permute.xlu0 %1860 }
 0xef1   : > { %4592 = vtanh.f32 %v5510_v7  ;;  %v5514_v18 = vadd.f32 %v1861_v26, %v1853_v28 }
 0xef2   : > { %4594 = vrcp.f32 %v1847_v0 }
 0xef3   : > { %4596 = vtanh.f32 %v5514_v18 }
 0xefb   : > { %v4593_v19 = vpop.eup %4592 }
 0xefc   : > { %v4595_v17 = vpop.eup %4594  ;;  %v1868_v13 = vmul.f32 %v4593_v19, %v4591_v16 }
 0xefd   : > { %v4597_v29 = vpop.eup %4596 }
 0xefe   : > { %v1869_v25 = vmul.f32 %v4597_v29, %v4595_v17 }
 0xf00   : > { %v1870_v30 = vpack.c.bf16 %v1869_v25, %v1868_v13 }
 0xf02   : > { %1881 = vrot.lane.b32.xlu1 %v1870_v30, %s5117_s8 }
 0xf47   : > { %v700_v32 = vpop.f32.mrb[36].mxu0 }
 0xf48   : > { %v702_v33 = vpop.f32.mrb[37].mxu0 }
 0xf49   : > { %v703_v34 = vadd.f32 %v702_v33, %v5264_v22  ;;  %v704_v42 = vpop.f32.mrb[38].mxu0 }
 0xf4a   : > { %v705_v43 = vadd.f32 %v704_v42, %v5262_v20  ;;  %v706_v44 = vpop.f32.mrb[39].mxu0 }
 0xf4b   : > { %v707_v45 = vadd.f32 %v706_v44, %v5264_v22 }
 0xf74   : > { %v1882_v6 = vpop.permute.xlu1 %1881 }
 0xf75   : > { %4218 = vmatmul.mubr.msk.bf16.vlgmr.msra.gmra.mrb[32].mxu1 %vm1058_vm2, %v1882_v6 }
 0xf76   : > { %1990 = vmatpush1.bf16.msra.mxu1 %v5402_v35  ;;  %2021 = vmatprep.mubr.bf16.mxu1 %v5116_v2 }
 0xf77   : > { %1991 = vmatprep.subr.bf16.mxu1 %v5409_v36 }
 0xf7a   : > { %1992 = vmatpush1.bf16.msra.mxu1 %v5415_v37 }
 0xf7b   : > { %1993 = vmatprep.subr.bf16.mxu1 %v5421_v38 }
 0xf7e   : > { %1994 = vmatpush1.bf16.msra.mxu1 %v5427_v39 }
 0xf7f   : > { %1995 = vmatprep.subr.bf16.mxu1 %v5433_v40 }
 0xf82   : > { %1996 = vmatpush1.bf16.msra.mxu1 %v5472_v4 }
 0xf83   : > { %2092 = vmatprep.subr.bf16.mxu1 %v5440_v41 }
0x1048   : > { %v1920_v47 = vpop.f32.mrb[32].mxu1 }
0x1049   : > { %v1921_v10 = vadd.f32 %v1920_v47, %v1876_v46  ;;  %v1922_v48 = vpop.f32.mrb[33].mxu1  ;;  %v908_v46 = vpack.c.bf16 %v707_v45, %v703_v34 }
0x104a   : > { %v1923_v14 = vadd.f32 %v1922_v48, %v1877_v8  ;;  %v1924_v12 = vpop.f32.mrb[34].mxu1 }
0x104b   : > { %v4219_v1 = vmul.f32 -1.442695, %v1921_v10  ;;  %v1925_v50 = vadd.f32 %v1924_v12, %v1878_v11  ;;  %v1926_v51 = vpop.f32.mrb[35].mxu1  ;;  %v1980_v10 = vunpack.c.l.bf16 %v908_v46 }
0x104c   : > { %v1927_v52 = vadd.f32 %v1926_v51, %v1879_v49  ;;  %v4221_v5 = vmul.f32 -1.442695, %v1923_v14 }
0x104d   : > { %4598 = vpow2.f32 %v4219_v1  ;;  %v4220_v53 = vmul.f32 -1.442695, %v1925_v50  ;;  %v1982_v50 = vunpack.c.h.bf16 %v908_v46 }
0x104e   : > { %v4222_v15 = vmul.f32 -1.442695, %v1927_v52 }
0x104f   : > { %4600 = vpow2.f32 %v4220_v53 }
0x1050   : > { %4602 = vtanh.f32 %v1923_v14 }
0x1057   : > { %v4599_v54 = vpop.eup %4598 }
0x1058   : > { %v1935_v55 = vadd.f32 1.0, %v4599_v54 }
0x1059   : > { %v4601_v56 = vpop.eup %4600 }
0x105a   : > { %4604 = vrcp.f32 %v1935_v55  ;;  %v1936_v57 = vadd.f32 1.0, %v4601_v56  ;;  %v4603_v58 = vpop.eup %4602 }
0x105b   : > { %4606 = vtanh.f32 %v1927_v52 }
0x105c   : > { %4608 = vrcp.f32 %v1936_v57 }
0x105d   : > { %4610 = vpow2.f32 %v4221_v5 }
0x105e   : > { %4612 = vpow2.f32 %v4222_v15  ;;  %v4384_v15 = vld [vmem:[%s5225_s27 + $0x50] sm:$0xff]  }
0x105f   : > { %4153 = vmatmul.mubr.msk.bf16.gmra.mrb[40].mxu0 %vm484_vm1, %v4384_v15 }
0x1060   : > { %718 = vmatprep.mubr.bf16.mxu0 %v5116_v2 }
0x1064   : > { %v4605_v59 = vpop.eup %4604 }
0x1065   : > { %v4607_v60 = vpop.eup %4606  ;;  %v1957_v61 = vmul.f32 %v4605_v59, %v4603_v58  ;;  %v1955_v9 = vmul.f32 %v4605_v59, %v5510_v7 }
0x1066   : > { %v4609_v62 = vpop.eup %4608 }
0x1067   : > { %1961 = vrot.lane.b32.xlu0 %v1957_v61, %s5117_s8  ;;  %v1958_v63 = vmul.f32 %v4609_v62, %v4607_v60  ;;  %v4611_v21 = vpop.eup %4610  ;;  %v1956_v19 = vmul.f32 %v4609_v62, %v5514_v18  ;;  %v701_v18 = vadd.f32 %v700_v32, %v5262_v20 }
0x1068   : > { %v4613_v24 = vpop.eup %4612  ;;  %v1949_v0 = vadd.f32 1.0, %v4611_v21 }
0x1069   : > { %1963 = vrot.lane.b32.xlu1 %v1958_v63, %s5117_s8  ;;  %v1950_v28 = vadd.f32 1.0, %v4613_v24  ;;  %v907_v6 = vpack.c.bf16 %v705_v43, %v701_v18 }
0x106a   : > { %4614 = vrcp.f32 %v1949_v0 }
0x106b   : > { %v1979_v47 = vunpack.c.l.bf16 %v907_v6  ;;  %v1981_v12 = vunpack.c.h.bf16 %v907_v6 }
0x1074   : > { %v4615_v13 = vpop.eup %4614 }
0x10d9   : > { %v1962_v26 = vpop.permute.xlu0 %1961 }
0x10da   : > { %v5538_v16 = vadd.f32 %v1962_v26, %v1955_v9 }
0x10db   : > { %v1964_v17 = vpop.permute.xlu1 %1963 }
0x10dc   : > { %4616 = vtanh.f32 %v5538_v16  ;;  %v5542_v29 = vadd.f32 %v1964_v17, %v1956_v19 }
0x10dd   : > { %4618 = vrcp.f32 %v1950_v28 }
0x10de   : > { %4620 = vtanh.f32 %v5542_v29 }
0x10e6   : > { %v4617_v25 = vpop.eup %4616 }
0x10e7   : > { %v4619_v30 = vpop.eup %4618  ;;  %v1971_v7 = vmul.f32 %v4617_v25, %v4615_v13 }
0x10e8   : > { %v4621_v23 = vpop.eup %4620 }
0x10e9   : > { %v1972_v27 = vmul.f32 %v4621_v23, %v4619_v30 }
0x10eb   : > { %v1973_v31 = vpack.c.bf16 %v1972_v27, %v1971_v7 }
0x10ed   : > { %1984 = vrot.lane.b32.xlu0 %v1973_v31, %s5117_s8 }
0x1132   : > { %v710_v34 = vpop.f32.mrb[40].mxu0 }
0x1133   : > { %v712_v42 = vpop.f32.mrb[41].mxu0 }
0x1134   : > { %v713_v43 = vadd.f32 %v712_v42, %v5264_v22  ;;  %v714_v44 = vpop.f32.mrb[42].mxu0 }
0x1135   : > { %v715_v45 = vadd.f32 %v714_v44, %v5262_v20  ;;  %v716_v6 = vpop.f32.mrb[43].mxu0 }
0x1136   : > { %v717_v46 = vadd.f32 %v716_v6, %v5264_v22 }
0x115f   : > { %v1985_v8 = vpop.permute.xlu0 %1984 }
0x1160   : > { %4223 = vmatmul.mubr.msk.bf16.vlgmr.msra.gmra.mrb[36].mxu1 %vm1058_vm2, %v1985_v8 }
0x1161   : > { %2093 = vmatpush1.bf16.msra.mxu1 %v5402_v35  ;;  %2124 = vmatprep.mubr.bf16.mxu1 %v5116_v2 }
0x1162   : > { %2094 = vmatprep.subr.bf16.mxu1 %v5409_v36 }
0x1165   : > { %2095 = vmatpush1.bf16.msra.mxu1 %v5415_v37 }
0x1166   : > { %2096 = vmatprep.subr.bf16.mxu1 %v5421_v38 }
0x1169   : > { %2097 = vmatpush1.bf16.msra.mxu1 %v5427_v39 }
0x116a   : > { %2098 = vmatprep.subr.bf16.mxu1 %v5433_v40 }
0x116d   : > { %2099 = vmatpush1.bf16.msra.mxu1 %v5472_v4 }
0x116e   : > { %2195 = vmatprep.subr.bf16.mxu1 %v5440_v41 }
0x1233   : > { %v2023_v48 = vpop.f32.mrb[36].mxu1 }
0x1234   : > { %v2024_v11 = vadd.f32 %v2023_v48, %v1979_v47  ;;  %v2025_v14 = vpop.f32.mrb[37].mxu1  ;;  %v910_v47 = vpack.c.bf16 %v717_v46, %v713_v43 }
0x1235   : > { %v2026_v49 = vadd.f32 %v2025_v14, %v1980_v10  ;;  %v2027_v1 = vpop.f32.mrb[38].mxu1 }
0x1236   : > { %v4224_v51 = vmul.f32 -1.442695, %v2024_v11  ;;  %v2028_v52 = vadd.f32 %v2027_v1, %v1981_v12  ;;  %v2029_v53 = vpop.f32.mrb[39].mxu1  ;;  %v2083_v11 = vunpack.c.l.bf16 %v910_v47 }
0x1237   : > { %v2030_v54 = vadd.f32 %v2029_v53, %v1982_v50  ;;  %v4226_v21 = vmul.f32 -1.442695, %v2026_v49 }
0x1238   : > { %4622 = vpow2.f32 %v4224_v51  ;;  %v4225_v55 = vmul.f32 -1.442695, %v2028_v52  ;;  %v2085_v52 = vunpack.c.h.bf16 %v910_v47 }
0x1239   : > { %v4227_v24 = vmul.f32 -1.442695, %v2030_v54 }
0x123a   : > { %4624 = vpow2.f32 %v4225_v55 }
0x123b   : > { %4626 = vtanh.f32 %v2026_v49 }
0x1242   : > { %v4623_v56 = vpop.eup %4622 }
0x1243   : > { %v2038_v57 = vadd.f32 1.0, %v4623_v56 }
0x1244   : > { %v4625_v58 = vpop.eup %4624 }
0x1245   : > { %4628 = vrcp.f32 %v2038_v57  ;;  %v2039_v59 = vadd.f32 1.0, %v4625_v58  ;;  %v4627_v60 = vpop.eup %4626 }
0x1246   : > { %4630 = vtanh.f32 %v2030_v54 }
0x1247   : > { %4632 = vrcp.f32 %v2039_v59 }
0x1248   : > { %4634 = vpow2.f32 %v4226_v21 }
0x1249   : > { %4636 = vpow2.f32 %v4227_v24  ;;  %v4385_v24 = vld [vmem:[%s5225_s27 + $0x58] sm:$0xff]  }
0x124a   : > { %4154 = vmatmul.mubr.msk.bf16.gmra.mrb[44].mxu0 %vm484_vm1, %v4385_v24 }
0x124b   : > { %728 = vmatprep.mubr.bf16.mxu0 %v5116_v2 }
0x124f   : > { %v4629_v61 = vpop.eup %4628 }
0x1250   : > { %v4631_v62 = vpop.eup %4630  ;;  %v2060_v63 = vmul.f32 %v4629_v61, %v4627_v60  ;;  %v2058_v26 = vmul.f32 %v4629_v61, %v5538_v16 }
0x1251   : > { %v4633_v3 = vpop.eup %4632 }
0x1252   : > { %2064 = vrot.lane.b32.xlu1 %v2060_v63, %s5117_s8  ;;  %v2061_v5 = vmul.f32 %v4633_v3, %v4631_v62  ;;  %v4635_v0 = vpop.eup %4634  ;;  %v2059_v25 = vmul.f32 %v4633_v3, %v5542_v29  ;;  %v711_v29 = vadd.f32 %v710_v34, %v5262_v20 }
0x1253   : > { %v4637_v9 = vpop.eup %4636  ;;  %v2052_v28 = vadd.f32 1.0, %v4635_v0 }
0x1254   : > { %2066 = vrot.lane.b32.xlu0 %v2061_v5, %s5117_s8  ;;  %v2053_v19 = vadd.f32 1.0, %v4637_v9  ;;  %v909_v8 = vpack.c.bf16 %v715_v45, %v711_v29 }
0x1255   : > { %4638 = vrcp.f32 %v2052_v28 }
0x1256   : > { %v2082_v48 = vunpack.c.l.bf16 %v909_v8  ;;  %v2084_v1 = vunpack.c.h.bf16 %v909_v8 }
0x125f   : > { %v4639_v7 = vpop.eup %4638 }
0x12c4   : > { %v2065_v17 = vpop.permute.xlu1 %2064 }
0x12c5   : > { %v5566_v13 = vadd.f32 %v2065_v17, %v2058_v26 }
0x12c6   : > { %v2067_v30 = vpop.permute.xlu0 %2066 }
0x12c7   : > { %4640 = vtanh.f32 %v5566_v13  ;;  %v5570_v23 = vadd.f32 %v2067_v30, %v2059_v25 }
0x12c8   : > { %4642 = vrcp.f32 %v2053_v19 }
0x12c9   : > { %4644 = vtanh.f32 %v5570_v23 }
0x12d1   : > { %v4641_v27 = vpop.eup %4640 }
0x12d2   : > { %v4643_v31 = vpop.eup %4642  ;;  %v2074_v16 = vmul.f32 %v4641_v27, %v4639_v7 }
0x12d3   : > { %v4645_v32 = vpop.eup %4644 }
0x12d4   : > { %v2075_v18 = vmul.f32 %v4645_v32, %v4643_v31 }
0x12d6   : > { %v2076_v33 = vpack.c.bf16 %v2075_v18, %v2074_v16 }
0x12d8   : > { %2087 = vrot.lane.b32.xlu1 %v2076_v33, %s5117_s8 }
0x131d   : > { %v720_v43 = vpop.f32.mrb[44].mxu0 }
0x131e   : > { %v722_v44 = vpop.f32.mrb[45].mxu0 }
0x131f   : > { %v723_v45 = vadd.f32 %v722_v44, %v5264_v22  ;;  %v724_v6 = vpop.f32.mrb[46].mxu0 }
0x1320   : > { %v725_v46 = vadd.f32 %v724_v6, %v5262_v20  ;;  %v726_v8 = vpop.f32.mrb[47].mxu0 }
0x1321   : > { %v727_v47 = vadd.f32 %v726_v8, %v5264_v22  ;;  %v5638_v8 = vld [vmem:[%s6270_s2] ss:$8 sps:$4 sm:$0xff]  }
0x134a   : > { %v2088_v10 = vpop.permute.xlu1 %2087 }
0x134b   : > { %4228 = vmatmul.mubr.msk.bf16.vlgmr.msra.gmra.mrb[40].mxu1 %vm1058_vm2, %v2088_v10 }
0x134c   : > { %2196 = vmatpush1.bf16.msra.mxu1 %v5402_v35  ;;  %2227 = vmatprep.mubr.bf16.mxu1 %v5116_v2 }
0x134d   : > { %2197 = vmatprep.subr.bf16.mxu1 %v5409_v36 }
0x1350   : > { %2198 = vmatpush1.bf16.msra.mxu1 %v5415_v37 }
0x1351   : > { %2199 = vmatprep.subr.bf16.mxu1 %v5421_v38 }
0x1354   : > { %2200 = vmatpush1.bf16.msra.mxu1 %v5427_v39 }
0x1355   : > { %2201 = vmatprep.subr.bf16.mxu1 %v5433_v40 }
0x1358   : > { %2202 = vmatpush1.bf16.msra.mxu1 %v5472_v4 }
0x1359   : > { %2298 = vmatprep.subr.bf16.mxu1 %v5440_v41 }
0x141e   : > { %v2126_v14 = vpop.f32.mrb[40].mxu1 }
0x141f   : > { %v2127_v12 = vadd.f32 %v2126_v14, %v2082_v48  ;;  %v2128_v49 = vpop.f32.mrb[41].mxu1  ;;  %v912_v48 = vpack.c.bf16 %v727_v47, %v723_v45  ;;  %v5645_v47 = vld [vmem:[%s6270_s2 + $0x14] ss:$8 sps:$4 sm:$0xff]  }
0x1420   : > { %v2129_v50 = vadd.f32 %v2128_v49, %v2083_v11  ;;  %v2130_v51 = vpop.f32.mrb[42].mxu1 }
0x1421   : > { %v4229_v53 = vmul.f32 -1.442695, %v2127_v12  ;;  %v2131_v54 = vadd.f32 %v2130_v51, %v2084_v1  ;;  %v2132_v55 = vpop.f32.mrb[43].mxu1  ;;  %v2186_v12 = vunpack.c.l.bf16 %v912_v48 }
0x1422   : > { %v2133_v56 = vadd.f32 %v2132_v55, %v2085_v52  ;;  %v4231_v0 = vmul.f32 -1.442695, %v2129_v50  ;;  %v2188_v52 = vunpack.c.h.bf16 %v912_v48  ;;  %v5657_v48 = vld [vmem:[%s6270_s2 + $0x24] ss:$8 sps:$4 sm:$0xff]  }
0x1423   : > { %4646 = vpow2.f32 %v4229_v53  ;;  %v4230_v57 = vmul.f32 -1.442695, %v2131_v54 }
0x1424   : > { %v4232_v9 = vmul.f32 -1.442695, %v2133_v56 }
0x1425   : > { %4648 = vpow2.f32 %v4230_v57 }
0x1426   : > { %4650 = vtanh.f32 %v2129_v50 }
0x142d   : > { %v4647_v58 = vpop.eup %4646 }
0x142e   : > { %v2141_v59 = vadd.f32 1.0, %v4647_v58 }
0x142f   : > { %v4649_v60 = vpop.eup %4648 }
0x1430   : > { %4652 = vrcp.f32 %v2141_v59  ;;  %v2142_v61 = vadd.f32 1.0, %v4649_v60  ;;  %v4651_v62 = vpop.eup %4650 }
0x1431   : > { %4654 = vtanh.f32 %v2133_v56 }
0x1432   : > { %4656 = vrcp.f32 %v2142_v61 }
0x1433   : > { %4658 = vpow2.f32 %v4231_v0 }
0x1434   : > { %4660 = vpow2.f32 %v4232_v9 }
0x143a   : > { %v4653_v63 = vpop.eup %4652 }
0x143b   : > { %v4655_v3 = vpop.eup %4654  ;;  %v2163_v5 = vmul.f32 %v4653_v63, %v4651_v62  ;;  %v2161_v17 = vmul.f32 %v4653_v63, %v5566_v13  ;;  %v4386_v63 = vld [vmem:[%s5225_s27 + $0x60] sm:$0xff]  }
0x143c   : > { %v4657_v15 = vpop.eup %4656  ;;  %4155 = vmatmul.mubr.msk.bf16.gmra.mrb[48].mxu0 %vm484_vm1, %v4386_v63 }
0x143d   : > { %2167 = vrot.lane.b32.xlu0 %v2163_v5, %s5117_s8  ;;  %v2164_v21 = vmul.f32 %v4657_v15, %v4655_v3  ;;  %v4659_v28 = vpop.eup %4658  ;;  %v2162_v27 = vmul.f32 %v4657_v15, %v5570_v23  ;;  %v721_v23 = vadd.f32 %v720_v43, %v5262_v20  ;;  %738 = vmatprep.mubr.bf16.mxu0 %v5116_v2 }
0x143e   : > { %v4661_v26 = vpop.eup %4660  ;;  %v2155_v19 = vadd.f32 1.0, %v4659_v28 }
0x143f   : > { %2169 = vrot.lane.b32.xlu1 %v2164_v21, %s5117_s8  ;;  %v2156_v25 = vadd.f32 1.0, %v4661_v26  ;;  %v911_v10 = vpack.c.bf16 %v725_v46, %v721_v23 }
0x1440   : > { %4662 = vrcp.f32 %v2155_v19 }
0x1441   : > { %v2185_v14 = vunpack.c.l.bf16 %v911_v10  ;;  %v2187_v50 = vunpack.c.h.bf16 %v911_v10  ;;  %v5651_v10 = vld [vmem:[%s6270_s2 + $0x10] ss:$8 sps:$4 sm:$0xff]  }
0x144a   : > { %v4663_v16 = vpop.eup %4662 }
0x14af   : > { %v2168_v30 = vpop.permute.xlu0 %2167 }
0x14b0   : > { %v5594_v7 = vadd.f32 %v2168_v30, %v2161_v17 }
0x14b1   : > { %v2170_v31 = vpop.permute.xlu1 %2169 }
0x14b2   : > { %4664 = vtanh.f32 %v5594_v7  ;;  %v5598_v32 = vadd.f32 %v2170_v31, %v2162_v27 }
0x14b3   : > { %4666 = vrcp.f32 %v2156_v25 }
0x14b4   : > { %4668 = vtanh.f32 %v5598_v32 }
0x14bc   : > { %v4665_v18 = vpop.eup %4664 }
0x14bd   : > { %v4667_v33 = vpop.eup %4666  ;;  %v2177_v13 = vmul.f32 %v4665_v18, %v4663_v16 }
0x14be   : > { %v4669_v34 = vpop.eup %4668 }
0x14bf   : > { %v2178_v29 = vmul.f32 %v4669_v34, %v4667_v33 }
0x14c1   : > { %v2179_v42 = vpack.c.bf16 %v2178_v29, %v2177_v13 }
0x14c3   : > { %2190 = vrot.lane.b32.xlu0 %v2179_v42, %s5117_s8 }
0x150f   : > { %v730_v34 = vpop.f32.mrb[48].mxu0 }
0x1510   : > { %v732_v13 = vpop.f32.mrb[49].mxu0 }
0x1511   : > { %v733_v29 = vadd.f32 %v732_v13, %v5264_v22  ;;  %v734_v42 = vpop.f32.mrb[50].mxu0 }
0x1512   : > { %v735_v43 = vadd.f32 %v734_v42, %v5262_v20  ;;  %v736_v23 = vpop.f32.mrb[51].mxu0 }
0x1513   : > { %v737_v44 = vadd.f32 %v736_v23, %v5264_v22 }
0x1515   : > { %v914_v6 = vpack.c.bf16 %v737_v44, %v733_v29 }
0x1535   : > { %v2191_v11 = vpop.permute.xlu0 %2190 }
0x1536   : > { %4233 = vmatmul.mubr.msk.bf16.vlgmr.msra.gmra.mrb[44].mxu1 %vm1058_vm2, %v2191_v11  ;;  %v5663_v11 = vld [vmem:[%s6270_s2 + $0x20] ss:$8 sps:$4 sm:$0xff]  }
0x1537   : > { %2299 = vmatpush1.bf16.msra.mxu1 %v5402_v35  ;;  %2330 = vmatprep.mubr.bf16.mxu1 %v5116_v2 }
0x1538   : > { %2300 = vmatprep.subr.bf16.mxu1 %v5409_v36 }
0x153b   : > { %2301 = vmatpush1.bf16.msra.mxu1 %v5415_v37 }
0x153c   : > { %2302 = vmatprep.subr.bf16.mxu1 %v5421_v38 }
0x153f   : > { %2303 = vmatpush1.bf16.msra.mxu1 %v5427_v39 }
0x1540   : > { %2304 = vmatprep.subr.bf16.mxu1 %v5433_v40 }
0x1543   : > { %2305 = vmatpush1.bf16.msra.mxu1 %v5472_v4 }
0x1544   : > { %2401 = vmatprep.subr.bf16.mxu1 %v5440_v41 }
0x1609   : > { %v2229_v49 = vpop.f32.mrb[44].mxu1 }
0x160a   : > { %v2230_v35 = vadd.f32 %v2229_v49, %v2185_v14  ;;  %v2231_v1 = vpop.f32.mrb[45].mxu1  ;;  %v5669_v14 = vld [vmem:[%s6270_s2 + $0x34] ss:$8 sps:$4 sm:$0xff]  }
0x160b   : > { %v2232_v51 = vadd.f32 %v2231_v1, %v2186_v12  ;;  %v2233_v36 = vpop.f32.mrb[46].mxu1  ;;  %v5676_v12 = vld [vmem:[%s6270_s2 + $0x4] ss:$8 sps:$4 sm:$0xff]  }
0x160c   : > { %v4234_v37 = vmul.f32 -1.442695, %v2230_v35  ;;  %v2234_v53 = vadd.f32 %v2233_v36, %v2187_v50  ;;  %v2235_v38 = vpop.f32.mrb[47].mxu1  ;;  %v2289_v35 = vunpack.c.l.bf16 %v914_v6 }
0x160d   : > { %v2236_v54 = vadd.f32 %v2235_v38, %v2188_v52  ;;  %v4236_v3 = vmul.f32 -1.442695, %v2232_v51 }
0x160e   : > { %4670 = vpow2.f32 %v4234_v37  ;;  %v4235_v39 = vmul.f32 -1.442695, %v2234_v53  ;;  %v2291_v53 = vunpack.c.h.bf16 %v914_v6 }
0x160f   : > { %v4237_v5 = vmul.f32 -1.442695, %v2236_v54 }
0x1610   : > { %4672 = vpow2.f32 %v4235_v39 }
0x1611   : > { %4674 = vtanh.f32 %v2232_v51 }
0x1618   : > { %v4671_v40 = vpop.eup %4670 }
0x1619   : > { %v2244_v55 = vadd.f32 1.0, %v4671_v40 }
0x161a   : > { %v4673_v41 = vpop.eup %4672 }
0x161b   : > { %4676 = vrcp.f32 %v2244_v55  ;;  %v2245_v56 = vadd.f32 1.0, %v4673_v41  ;;  %v4675_v57 = vpop.eup %4674 }
0x161c   : > { %4678 = vtanh.f32 %v2236_v54 }
0x161d   : > { %4680 = vrcp.f32 %v2245_v56 }
0x161e   : > { %4682 = vpow2.f32 %v4236_v3  ;;  %v4387_v3 = vld [vmem:[%s5225_s27 + $0x68] sm:$0xff]  }
0x161f   : > { %4684 = vpow2.f32 %v4237_v5  ;;  %4156 = vmatmul.mubr.msk.bf16.gmra.mrb[52].mxu0 %vm484_vm1, %v4387_v3 }
0x1620   : > { %748 = vmatprep.mubr.bf16.mxu0 %v5116_v2 }
0x1625   : > { %v4677_v58 = vpop.eup %4676 }
0x1626   : > { %v4679_v59 = vpop.eup %4678  ;;  %v2266_v60 = vmul.f32 %v4677_v58, %v4675_v57  ;;  %v2264_v0 = vmul.f32 %v4677_v58, %v5594_v7 }
0x1627   : > { %v4681_v61 = vpop.eup %4680 }
0x1628   : > { %2270 = vrot.lane.b32.xlu1 %v2266_v60, %s5117_s8  ;;  %v2267_v62 = vmul.f32 %v4681_v61, %v4679_v59  ;;  %v4683_v15 = vpop.eup %4682  ;;  %v2265_v19 = vmul.f32 %v4681_v61, %v5598_v32  ;;  %v731_v32 = vadd.f32 %v730_v34, %v5262_v20 }
0x1629   : > { %v4685_v21 = vpop.eup %4684  ;;  %v2258_v24 = vadd.f32 1.0, %v4683_v15 }
0x162a   : > { %2272 = vrot.lane.b32.xlu0 %v2267_v62, %s5117_s8  ;;  %v2259_v9 = vadd.f32 1.0, %v4685_v21  ;;  %v913_v45 = vpack.c.bf16 %v735_v43, %v731_v32 }
0x162b   : > { %4686 = vrcp.f32 %v2258_v24 }
0x162c   : > { %v2288_v49 = vunpack.c.l.bf16 %v913_v45  ;;  %v2290_v36 = vunpack.c.h.bf16 %v913_v45 }
0x1635   : > { %v4687_v30 = vpop.eup %4686 }
0x169a   : > { %v2271_v28 = vpop.permute.xlu1 %2270 }
0x169b   : > { %v5622_v26 = vadd.f32 %v2271_v28, %v2264_v0 }
0x169c   : > { %v2273_v17 = vpop.permute.xlu0 %2272 }
0x169d   : > { %4688 = vtanh.f32 %v5622_v26  ;;  %v5626_v25 = vadd.f32 %v2273_v17, %v2265_v19 }
0x169e   : > { %4690 = vrcp.f32 %v2259_v9 }
0x169f   : > { %4692 = vtanh.f32 %v5626_v25 }
0x16a7   : > { %v4689_v27 = vpop.eup %4688 }
0x16a8   : > { %v4691_v31 = vpop.eup %4690  ;;  %v2280_v7 = vmul.f32 %v4689_v27, %v4687_v30 }
0x16a9   : > { %v4693_v16 = vpop.eup %4692 }
0x16aa   : > { %v2281_v18 = vmul.f32 %v4693_v16, %v4691_v31 }
0x16ac   : > { %v2282_v33 = vpack.c.bf16 %v2281_v18, %v2280_v7 }
0x16ae   : > { %2293 = vrot.lane.b32.xlu1 %v2282_v33, %s5117_s8 }
0x16f2   : > { %v740_v13 = vpop.f32.mrb[52].mxu0 }
0x16f3   : > { %v742_v29 = vpop.f32.mrb[53].mxu0 }
0x16f4   : > { %v743_v42 = vadd.f32 %v742_v29, %v5264_v22  ;;  %v744_v43 = vpop.f32.mrb[54].mxu0 }
0x16f5   : > { %v745_v23 = vadd.f32 %v744_v43, %v5262_v20  ;;  %v746_v44 = vpop.f32.mrb[55].mxu0 }
0x16f6   : > { %v747_v45 = vadd.f32 %v746_v44, %v5264_v22 }
0x1720   : > { %v2294_v46 = vpop.permute.xlu1 %2293 }
0x1721   : > { %4238 = vmatmul.mubr.msk.bf16.vlgmr.msra.gmra.mrb[48].mxu1 %vm1058_vm2, %v2294_v46  ;;  %v916_v46 = vpack.c.bf16 %v747_v45, %v743_v42 }
0x1722   : > { %2402 = vmatpush1.bf16.msra.mxu1 %v5638_v8  ;;  %2433 = vmatprep.mubr.bf16.mxu1 %v5116_v2 }
0x1723   : > { %2403 = vmatprep.subr.bf16.mxu1 %v5645_v47 }
0x1726   : > { %2404 = vmatpush1.bf16.msra.mxu1 %v5651_v10 }
0x1727   : > { %2405 = vmatprep.subr.bf16.mxu1 %v5657_v48 }
0x172a   : > { %2406 = vmatpush1.bf16.msra.mxu1 %v5663_v11 }
0x172b   : > { %2407 = vmatprep.subr.bf16.mxu1 %v5669_v14 }
0x172e   : > { %2408 = vmatpush1.bf16.msra.mxu1 %v5472_v4 }
0x172f   : > { %2607 = vmatprep.subr.bf16.mxu1 %v5676_v12 }
0x17f4   : > { %v2332_v1 = vpop.f32.mrb[48].mxu1 }
0x17f5   : > { %v2333_v50 = vadd.f32 %v2332_v1, %v2288_v49  ;;  %v2334_v51 = vpop.f32.mrb[49].mxu1 }
0x17f6   : > { %v2335_v52 = vadd.f32 %v2334_v51, %v2289_v35  ;;  %v2336_v37 = vpop.f32.mrb[50].mxu1  ;;  %v5708_v35 = vld [vmem:[%s6270_s2 + $0x30] ss:$8 sps:$4 sm:$0xff]  }
0x17f7   : > { %v4239_v38 = vmul.f32 -1.442695, %v2333_v50  ;;  %v2337_v54 = vadd.f32 %v2336_v37, %v2290_v36  ;;  %v2338_v39 = vpop.f32.mrb[51].mxu1  ;;  %v2392_v50 = vunpack.c.l.bf16 %v916_v46 }
0x17f8   : > { %v2339_v4 = vadd.f32 %v2338_v39, %v2291_v53  ;;  %v4241_v5 = vmul.f32 -1.442695, %v2335_v52 }
0x17f9   : > { %4694 = vpow2.f32 %v4239_v38  ;;  %v4240_v40 = vmul.f32 -1.442695, %v2337_v54  ;;  %v2394_v54 = vunpack.c.h.bf16 %v916_v46 }
0x17fa   : > { %v4242_v15 = vmul.f32 -1.442695, %v2339_v4 }
0x17fb   : > { %4696 = vpow2.f32 %v4240_v40 }
0x17fc   : > { %4698 = vtanh.f32 %v2335_v52 }
0x1803   : > { %v4695_v55 = vpop.eup %4694 }
0x1804   : > { %v2347_v41 = vadd.f32 1.0, %v4695_v55 }
0x1805   : > { %v4697_v56 = vpop.eup %4696 }
0x1806   : > { %4700 = vrcp.f32 %v2347_v41  ;;  %v2348_v57 = vadd.f32 1.0, %v4697_v56  ;;  %v4699_v58 = vpop.eup %4698 }
0x1807   : > { %4702 = vtanh.f32 %v2339_v4 }
0x1808   : > { %4704 = vrcp.f32 %v2348_v57 }
0x1809   : > { %4706 = vpow2.f32 %v4241_v5 }
0x180a   : > { %4708 = vpow2.f32 %v4242_v15 }
0x1810   : > { %v4701_v59 = vpop.eup %4700 }
0x1811   : > { %v4703_v60 = vpop.eup %4702  ;;  %v2369_v61 = vmul.f32 %v4701_v59, %v4699_v58  ;;  %v2367_v9 = vmul.f32 %v4701_v59, %v5622_v26 }
0x1812   : > { %v4705_v62 = vpop.eup %4704 }
0x1813   : > { %2373 = vrot.lane.b32.xlu0 %v2369_v61, %s5117_s8  ;;  %v2370_v63 = vmul.f32 %v4705_v62, %v4703_v60  ;;  %v4707_v21 = vpop.eup %4706  ;;  %v2368_v30 = vmul.f32 %v4705_v62, %v5626_v25  ;;  %v741_v25 = vadd.f32 %v740_v13, %v5262_v20  ;;  %v4388_v60 = vld [vmem:[%s5225_s27 + $0x70] sm:$0xff]  }
0x1814   : > { %v4709_v24 = vpop.eup %4708  ;;  %v2361_v0 = vadd.f32 1.0, %v4707_v21  ;;  %4157 = vmatmul.mubr.msk.bf16.gmra.mrb[56].mxu0 %vm484_vm1, %v4388_v60  ;;  %v4389_v21 = vld [vmem:[%s5225_s27 + $0x78] sm:$0xff]  }
0x1815   : > { %2375 = vrot.lane.b32.xlu1 %v2370_v63, %s5117_s8  ;;  %v2362_v28 = vadd.f32 1.0, %v4709_v24  ;;  %v915_v6 = vpack.c.bf16 %v745_v23, %v741_v25  ;;  %758 = vmatprep.mubr.bf16.mxu0 %v5116_v2  ;;  %v4390_v24 = vld [vmem:[%s5225_s27 + $0x80] sm:$0xff]  }
0x1816   : > { %4710 = vrcp.f32 %v2361_v0  ;;  %v4391_v0 = vld [vmem:[%s5225_s27 + $0x88] sm:$0xff]  }
0x1817   : > { %v2391_v1 = vunpack.c.l.bf16 %v915_v6  ;;  %v2393_v37 = vunpack.c.h.bf16 %v915_v6 }
0x181c   : > { %4158 = vmatmul.mubr.msk.bf16.gmra.mrb[60].mxu0 %vm484_vm1, %v4389_v21 }
0x181d   : > { %768 = vmatprep.mubr.bf16.mxu0 %v5116_v2 }
0x1820   : > { %v4711_v16 = vpop.eup %4710 }
0x1824   : > { %4159 = vmatmul.mubr.msk.bf16.gmra.mrb[64].mxu0 %vm484_vm1, %v4390_v24 }
0x1825   : > { %778 = vmatprep.mubr.bf16.mxu0 %v5116_v2 }
0x182c   : > { %4160 = vmatmul.mubr.msk.bf16.gmra.mrb[68].mxu0 %vm484_vm1, %v4391_v0 }
0x182d   : > { %788 = vmatprep.mubr.bf16.mxu0 %v5116_v2 }
0x1885   : > { %v2374_v19 = vpop.permute.xlu0 %2373 }
0x1886   : > { %v5685_v17 = vadd.f32 %v2374_v19, %v2367_v9  ;;  %v4392_v9 = vld [vmem:[%s5225_s27 + $0x90] sm:$0xff]   ;;  %v4394_v19 = vld [vmem:[%s5225_s27 + $0xa0] sm:$0xff]  }
0x1887   : > { %v2376_v27 = vpop.permute.xlu1 %2375  ;;  %4161 = vmatmul.mubr.msk.bf16.gmra.mrb[72].mxu0 %vm484_vm1, %v4392_v9 }
0x1888   : > { %4712 = vtanh.f32 %v5685_v17  ;;  %v5689_v31 = vadd.f32 %v2376_v27, %v2368_v30  ;;  %798 = vmatprep.mubr.bf16.mxu0 %v5116_v2  ;;  %v4395_v30 = vld [vmem:[%s5225_s27 + $0xa8] sm:$0xff]   ;;  %v4396_v27 = vld [vmem:[%s5225_s27 + $0xb0] sm:$0xff]  }
0x1889   : > { %4714 = vrcp.f32 %v2362_v28  ;;  %v4393_v28 = vld [vmem:[%s5225_s27 + $0x98] sm:$0xff]  }
0x188a   : > { %4716 = vtanh.f32 %v5689_v31 }
0x188f   : > { %4162 = vmatmul.mubr.msk.bf16.gmra.mrb[76].mxu0 %vm484_vm1, %v4393_v28 }
0x1890   : > { %808 = vmatprep.mubr.bf16.mxu0 %v5116_v2 }
0x1892   : > { %v4713_v7 = vpop.eup %4712 }
0x1893   : > { %v4715_v18 = vpop.eup %4714  ;;  %v2383_v26 = vmul.f32 %v4713_v7, %v4711_v16  ;;  %v4397_v16 = vld [vmem:[%s5225_s27 + $0xb8] sm:$0xff]   ;;  %v4398_v7 = vld [vmem:[%s5225_s27 + $0xc0] sm:$0xff]  }
0x1894   : > { %v4717_v33 = vpop.eup %4716 }
0x1895   : > { %v2384_v34 = vmul.f32 %v4717_v33, %v4715_v18  ;;  %v4399_v18 = vld [vmem:[%s5225_s27 + $0xc8] sm:$0xff]   ;;  %v4400_v33 = vld [vmem:[%s5225_s27 + $0xd0] sm:$0xff]  }
0x1897   : > { %v2385_v32 = vpack.c.bf16 %v2384_v34, %v2383_v26  ;;  %4163 = vmatmul.mubr.msk.bf16.gmra.mrb[80].mxu0 %vm484_vm1, %v4394_v19 }
0x1898   : > { %818 = vmatprep.mubr.bf16.mxu0 %v5116_v2 }
0x1899   : > { %2396 = vrot.lane.b32.xlu0 %v2385_v32, %s5117_s8  ;;  %v4401_v32 = vld [vmem:[%s5225_s27 + $0xd8] sm:$0xff]   ;;  %s251_s27 = scalar_lea.vmem %s6274_s6, %s4109_s16 }
0x189f   : > { %4164 = vmatmul.mubr.msk.bf16.gmra.mrb[84].mxu0 %vm484_vm1, %v4395_v30 }
0x18a0   : > { %828 = vmatprep.mubr.bf16.mxu0 %v5116_v2 }
0x18a7   : > { %4165 = vmatmul.mubr.msk.bf16.gmra.mrb[88].mxu0 %vm484_vm1, %v4396_v27 }
0x18a8   : > { %838 = vmatprep.mubr.bf16.mxu0 %v5116_v2 }
0x18af   : > { %4166 = vmatmul.mubr.msk.bf16.gmra.mrb[92].mxu0 %vm484_vm1, %v4397_v16 }
0x18b0   : > { %848 = vmatprep.mubr.bf16.mxu0 %v5116_v2 }
0x18b7   : > { %4167 = vmatmul.mubr.msk.bf16.gmra.mrb[96].mxu0 %vm484_vm1, %v4398_v7 }
0x18b8   : > { %858 = vmatprep.mubr.bf16.mxu0 %v5116_v2 }
0x18bf   : > { %4168 = vmatmul.mubr.msk.bf16.gmra.mrb[100].mxu0 %vm484_vm1, %v4399_v18 }
0x18c0   : > { %868 = vmatprep.mubr.bf16.mxu0 %v5116_v2 }
0x18c7   : > { %4169 = vmatmul.mubr.msk.bf16.gmra.mrb[104].mxu0 %vm484_vm1, %v4400_v33 }
0x18c8   : > { %878 = vmatprep.mubr.bf16.mxu0 %v5116_v2 }
0x18cf   : > { %4170 = vmatmul.mubr.msk.bf16.gmra.mrb[108].mxu0 %vm484_vm1, %v4401_v32 }
0x18d0   : > { %2536 = vmatprep.mubr.bf16.mxu0 %v5116_v2 }
0x190b   : > { %v2397_v49 = vpop.permute.xlu0 %2396 }
0x190c   : > { %4243 = vmatmul.mubr.msk.bf16.vlgmr.msra.gmra.mrb[52].mxu1 %vm1058_vm2, %v2397_v49 }
0x190d   : > { %2608 = vmatpush1.bf16.msra.mxu1 %v5638_v8  ;;  %2639 = vmatprep.mubr.bf16.mxu1 %v5116_v2 }
0x190e   : > { %2609 = vmatprep.subr.bf16.mxu1 %v5645_v47 }
0x1911   : > { %2610 = vmatpush1.bf16.msra.mxu1 %v5651_v10 }
0x1912   : > { %2611 = vmatprep.subr.bf16.mxu1 %v5657_v48 }
0x1915   : > { %2612 = vmatpush1.bf16.msra.mxu1 %v5663_v11 }
0x1916   : > { %2613 = vmatprep.subr.bf16.mxu1 %v5669_v14 }
0x1919   : > { %2614 = vmatpush1.bf16.msra.mxu1 %v5708_v35 }
0x191a   : > { %2813 = vmatprep.subr.bf16.mxu1 %v5676_v12 }
0x19df   : > { %v2435_v51 = vpop.f32.mrb[52].mxu1 }
0x19e0   : > { %v2436_v36 = vadd.f32 %v2435_v51, %v2391_v1  ;;  %v2437_v52 = vpop.f32.mrb[53].mxu1 }
0x19e1   : > { %v2438_v53 = vadd.f32 %v2437_v52, %v2392_v50  ;;  %v2439_v38 = vpop.f32.mrb[54].mxu1 }
0x19e2   : > { %v4244_v39 = vmul.f32 -1.442695, %v2436_v36  ;;  %v2440_v4 = vadd.f32 %v2439_v38, %v2393_v37  ;;  %v2441_v40 = vpop.f32.mrb[55].mxu1  ;;  %v750_v37 = vpop.f32.mrb[56].mxu0 }
0x19e3   : > { %v2442_v55 = vadd.f32 %v2441_v40, %v2394_v54  ;;  %v4246_v26 = vmul.f32 -1.442695, %v2438_v53 }
0x19e4   : > { %4718 = vpow2.f32 %v4244_v39  ;;  %v4245_v41 = vmul.f32 -1.442695, %v2440_v4 }
0x19e5   : > { %v4247_v34 = vmul.f32 -1.442695, %v2442_v55 }
0x19e6   : > { %4720 = vpow2.f32 %v4245_v41 }
0x19e7   : > { %4722 = vtanh.f32 %v2438_v53  ;;  %v752_v53 = vpop.f32.mrb[57].mxu0 }
0x19e8   : > { %v753_v38 = vadd.f32 %v752_v53, %v5264_v22  ;;  %v754_v54 = vpop.f32.mrb[58].mxu0 }
0x19e9   : > { %v755_v39 = vadd.f32 %v754_v54, %v5262_v20  ;;  %v756_v4 = vpop.f32.mrb[59].mxu0 }
0x19ea   : > { %v757_v40 = vadd.f32 %v756_v4, %v5264_v22 }
0x19ec   : > { %v5771_v41 = vpack.c.bf16 %v757_v40, %v753_v38 }
0x19ee   : > { %v4719_v56 = vpop.eup %4718 }
0x19ef   : > { %v2450_v57 = vadd.f32 1.0, %v4719_v56  ;;  %v760_v56 = vpop.f32.mrb[60].mxu0 }
0x19f0   : > { %v4721_v58 = vpop.eup %4720 }
0x19f1   : > { %4724 = vrcp.f32 %v2450_v57  ;;  %v2451_v59 = vadd.f32 1.0, %v4721_v58  ;;  %v4723_v61 = vpop.eup %4722  ;;  %v761_v57 = vadd.f32 %v760_v56, %v5262_v20  ;;  %v762_v58 = vpop.f32.mrb[61].mxu0 }
0x19f2   : > { %4726 = vtanh.f32 %v2442_v55  ;;  %v764_v60 = vpop.f32.mrb[62].mxu0 }
0x19f3   : > { %4728 = vrcp.f32 %v2451_v59  ;;  %v763_v59 = vadd.f32 %v762_v58, %v5264_v22 }
0x19f4   : > { %4730 = vpow2.f32 %v4246_v26 }
0x19f5   : > { %4732 = vpow2.f32 %v4247_v34 }
0x19fb   : > { %v4725_v62 = vpop.eup %4724 }
0x19fc   : > { %v4727_v63 = vpop.eup %4726  ;;  %v2472_v3 = vmul.f32 %v4725_v62, %v4723_v61  ;;  %v2470_v42 = vmul.f32 %v4725_v62, %v5685_v17  ;;  %v765_v61 = vadd.f32 %v764_v60, %v5262_v20  ;;  %v766_v62 = vpop.f32.mrb[63].mxu0 }
0x19fd   : > { %v4729_v5 = vpop.eup %4728 }
0x19fe   : > { %2476 = vrot.lane.b32.xlu1 %v2472_v3, %s5117_s8  ;;  %v2473_v15 = vmul.f32 %v4729_v5, %v4727_v63  ;;  %v4731_v13 = vpop.eup %4730  ;;  %v2471_v45 = vmul.f32 %v4729_v5, %v5689_v31  ;;  %v751_v31 = vadd.f32 %v750_v37, %v5262_v20  ;;  %v767_v63 = vadd.f32 %v766_v62, %v5264_v22 }
0x19ff   : > { %v4733_v25 = vpop.eup %4732  ;;  %v2464_v29 = vadd.f32 1.0, %v4731_v13  ;;  %v5777_v3 = vpack.c.bf16 %v765_v61, %v761_v57 }
0x1a00   : > { %2478 = vrot.lane.b32.xlu0 %v2473_v15, %s5117_s8  ;;  %v2465_v43 = vadd.f32 1.0, %v4733_v25  ;;  %v5769_v55 = vpack.c.bf16 %v755_v39, %v751_v31  ;;  %v5779_v5 = vpack.c.bf16 %v767_v63, %v763_v59  ;;  %v770_v15 = vpop.f32.mrb[64].mxu0 }
0x1a01   : > { %4734 = vrcp.f32 %v2464_v29  ;;  %v771_v21 = vadd.f32 %v770_v15, %v5262_v20  ;;  %v772_v24 = vpop.f32.mrb[65].mxu0 }
0x1a02   : > { %v773_v0 = vadd.f32 %v772_v24, %v5264_v22  ;;  %v774_v9 = vpop.f32.mrb[66].mxu0 }
0x1a03   : > { %v775_v28 = vadd.f32 %v774_v9, %v5262_v20  ;;  %v776_v19 = vpop.f32.mrb[67].mxu0 }
0x1a04   : > { %v777_v30 = vadd.f32 %v776_v19, %v5264_v22  ;;  %v780_v7 = vpop.f32.mrb[68].mxu0 }
0x1a05   : > { %v5785_v27 = vpack.c.bf16 %v775_v28, %v771_v21  ;;  %v781_v18 = vadd.f32 %v780_v7, %v5262_v20  ;;  %v782_v33 = vpop.f32.mrb[69].mxu0 }
0x1a06   : > { %v5787_v16 = vpack.c.bf16 %v777_v30, %v773_v0  ;;  %v783_v26 = vadd.f32 %v782_v33, %v5264_v22  ;;  %v784_v34 = vpop.f32.mrb[70].mxu0 }
0x1a07   : > { %v785_v32 = vadd.f32 %v784_v34, %v5262_v20  ;;  %v786_v13 = vpop.f32.mrb[71].mxu0 }
0x1a08   : > { %v787_v25 = vadd.f32 %v786_v13, %v5264_v22 }
0x1a09   : > { %v5793_v29 = vpack.c.bf16 %v785_v32, %v781_v18 }
0x1a0b   : > { %v4735_v49 = vpop.eup %4734 }
0x1a70   : > { %v2477_v23 = vpop.permute.xlu1 %2476 }
0x1a71   : > { %v5757_v44 = vadd.f32 %v2477_v23, %v2470_v42  ;;  %v5795_v42 = vpack.c.bf16 %v787_v25, %v783_v26 }
0x1a72   : > { %v2479_v6 = vpop.permute.xlu0 %2478 }
0x1a73   : > { %4736 = vtanh.f32 %v5757_v44  ;;  %v5761_v46 = vadd.f32 %v2479_v6, %v2471_v45 }
0x1a74   : > { %4738 = vrcp.f32 %v2465_v43  ;;  %v790_v43 = vpop.f32.mrb[72].mxu0 }
0x1a75   : > { %4740 = vtanh.f32 %v5761_v46  ;;  %v791_v23 = vadd.f32 %v790_v43, %v5262_v20  ;;  %v792_v45 = vpop.f32.mrb[73].mxu0 }
0x1a76   : > { %v793_v6 = vadd.f32 %v792_v45, %v5264_v22 }
0x1a7d   : > { %v4737_v1 = vpop.eup %4736 }
0x1a7e   : > { %v4739_v50 = vpop.eup %4738  ;;  %v2486_v17 = vmul.f32 %v4737_v1, %v4735_v49  ;;  %v794_v49 = vpop.f32.mrb[74].mxu0 }
0x1a7f   : > { %v4741_v51 = vpop.eup %4740  ;;  %v795_v1 = vadd.f32 %v794_v49, %v5262_v20 }
0x1a80   : > { %v2487_v36 = vmul.f32 %v4741_v51, %v4739_v50  ;;  %v796_v50 = vpop.f32.mrb[75].mxu0 }
0x1a81   : > { %v797_v51 = vadd.f32 %v796_v50, %v5264_v22  ;;  %v800_v37 = vpop.f32.mrb[76].mxu0 }
0x1a82   : > { %v2488_v52 = vpack.c.bf16 %v2487_v36, %v2486_v17  ;;  %v5801_v36 = vpack.c.bf16 %v795_v1, %v791_v23  ;;  %v801_v31 = vadd.f32 %v800_v37, %v5262_v20  ;;  %v802_v53 = vpop.f32.mrb[77].mxu0 }
0x1a83   : > { %v803_v38 = vadd.f32 %v802_v53, %v5264_v22  ;;  %v804_v54 = vpop.f32.mrb[78].mxu0 }
0x1a84   : > { %2499 = vrot.lane.b32.xlu1 %v2488_v52, %s5117_s8  ;;  %v5804_v52 = vpack.c.bf16 %v797_v51, %v793_v6  ;;  %v805_v39 = vadd.f32 %v804_v54, %v5262_v20  ;;  %v806_v4 = vpop.f32.mrb[79].mxu0 }
0x1a85   : > { %v807_v40 = vadd.f32 %v806_v4, %v5264_v22  ;;  %v810_v58 = vpop.f32.mrb[80].mxu0 }
0x1a86   : > { %v5815_v56 = vpack.c.bf16 %v805_v39, %v801_v31  ;;  %v811_v59 = vadd.f32 %v810_v58, %v5262_v20  ;;  %v812_v60 = vpop.f32.mrb[81].mxu0 }
0x1a87   : > { %v5817_v57 = vpack.c.bf16 %v807_v40, %v803_v38  ;;  %v813_v61 = vadd.f32 %v812_v60, %v5264_v22  ;;  %v814_v62 = vpop.f32.mrb[82].mxu0 }
0x1a88   : > { %v815_v63 = vadd.f32 %v814_v62, %v5262_v20  ;;  %v816_v15 = vpop.f32.mrb[83].mxu0 }
0x1a89   : > { %v817_v21 = vadd.f32 %v816_v15, %v5264_v22  ;;  %v820_v9 = vpop.f32.mrb[84].mxu0 }
0x1a8a   : > { %v5827_v24 = vpack.c.bf16 %v815_v63, %v811_v59  ;;  %v821_v28 = vadd.f32 %v820_v9, %v5262_v20  ;;  %v822_v19 = vpop.f32.mrb[85].mxu0 }
0x1a8b   : > { %v5829_v0 = vpack.c.bf16 %v817_v21, %v813_v61  ;;  %v823_v30 = vadd.f32 %v822_v19, %v5264_v22  ;;  %v824_v7 = vpop.f32.mrb[86].mxu0 }
0x1a8c   : > { %v825_v18 = vadd.f32 %v824_v7, %v5262_v20  ;;  %v826_v33 = vpop.f32.mrb[87].mxu0 }
0x1a8d   : > { %v827_v26 = vadd.f32 %v826_v33, %v5264_v22  ;;  %v830_v13 = vpop.f32.mrb[88].mxu0 }
0x1a8e   : > { %v5835_v34 = vpack.c.bf16 %v825_v18, %v821_v28  ;;  %v831_v25 = vadd.f32 %v830_v13, %v5262_v20  ;;  %v832_v43 = vpop.f32.mrb[89].mxu0 }
0x1a8f   : > { %v5837_v32 = vpack.c.bf16 %v827_v26, %v823_v30  ;;  %v833_v23 = vadd.f32 %v832_v43, %v5264_v22  ;;  %v834_v45 = vpop.f32.mrb[90].mxu0 }
0x1a90   : > { %v835_v6 = vadd.f32 %v834_v45, %v5262_v20  ;;  %v836_v49 = vpop.f32.mrb[91].mxu0 }
0x1a91   : > { %v837_v1 = vadd.f32 %v836_v49, %v5264_v22 }
0x1a92   : > { %v5843_v50 = vpack.c.bf16 %v835_v6, %v831_v25 }
0x1a93   : > { %v5845_v51 = vpack.c.bf16 %v837_v1, %v833_v23 }
0x1af6   : > { %v2500_v17 = vpop.permute.xlu1 %2499 }
0x1af7   : > { %4248 = vmatmul.mubr.msk.bf16.vlgmr.msra.gmra.mrb[112].mxu0 %vm1058_vm2, %v2500_v17  ;;  %v840_v17 = vpop.f32.mrb[92].mxu0 }
0x1af8   : > { %2711 = vmatpush1.bf16.msra.mxu0 %v5638_v8  ;;  %2742 = vmatprep.mubr.bf16.mxu0 %v5116_v2  ;;  %v841_v37 = vadd.f32 %v840_v17, %v5262_v20  ;;  %v842_v31 = vpop.f32.mrb[93].mxu0 }
0x1af9   : > { %2712 = vmatprep.subr.bf16.mxu0 %v5645_v47  ;;  %v843_v53 = vadd.f32 %v842_v31, %v5264_v22  ;;  %v844_v38 = vpop.f32.mrb[94].mxu0 }
0x1afa   : > { %v845_v54 = vadd.f32 %v844_v38, %v5262_v20  ;;  %v846_v39 = vpop.f32.mrb[95].mxu0 }
0x1afb   : > { %v847_v4 = vadd.f32 %v846_v39, %v5264_v22  ;;  %v850_v59 = vpop.f32.mrb[96].mxu0 }
0x1afc   : > { %2713 = vmatpush1.bf16.msra.mxu0 %v5651_v10  ;;  %v5851_v40 = vpack.c.bf16 %v845_v54, %v841_v37  ;;  %v851_v60 = vadd.f32 %v850_v59, %v5262_v20  ;;  %v852_v61 = vpop.f32.mrb[97].mxu0 }
0x1afd   : > { %2714 = vmatprep.subr.bf16.mxu0 %v5657_v48  ;;  %v5853_v58 = vpack.c.bf16 %v847_v4, %v843_v53  ;;  %v853_v62 = vadd.f32 %v852_v61, %v5264_v22  ;;  %v854_v63 = vpop.f32.mrb[98].mxu0 }
0x1afe   : > { %v855_v15 = vadd.f32 %v854_v63, %v5262_v20  ;;  %v856_v21 = vpop.f32.mrb[99].mxu0 }
0x1aff   : > { %v857_v9 = vadd.f32 %v856_v21, %v5264_v22  ;;  %v860_v30 = vpop.f32.mrb[100].mxu0 }
0x1b00   : > { %2715 = vmatpush1.bf16.msra.mxu0 %v5663_v11  ;;  %v5859_v28 = vpack.c.bf16 %v855_v15, %v851_v60  ;;  %v861_v7 = vadd.f32 %v860_v30, %v5262_v20  ;;  %v862_v18 = vpop.f32.mrb[101].mxu0 }
0x1b01   : > { %2716 = vmatprep.subr.bf16.mxu0 %v5669_v14  ;;  %v5861_v19 = vpack.c.bf16 %v857_v9, %v853_v62  ;;  %v863_v33 = vadd.f32 %v862_v18, %v5264_v22  ;;  %v864_v26 = vpop.f32.mrb[102].mxu0 }
0x1b02   : > { %v865_v13 = vadd.f32 %v864_v26, %v5262_v20  ;;  %v866_v25 = vpop.f32.mrb[103].mxu0 }
0x1b03   : > { %v867_v43 = vadd.f32 %v866_v25, %v5264_v22  ;;  %v870_v6 = vpop.f32.mrb[104].mxu0  ;;  %v2496_v25 = vunpack.c.h.bf16 %v5769_v55 }
0x1b04   : > { %2717 = vmatpush1.bf16.msra.mxu0 %v5708_v35  ;;  %v5867_v23 = vpack.c.bf16 %v865_v13, %v861_v7  ;;  %v871_v49 = vadd.f32 %v870_v6, %v5262_v20  ;;  %v872_v1 = vpop.f32.mrb[105].mxu0  ;;  %v2494_v7 = vunpack.c.l.bf16 %v5769_v55 }
0x1b05   : > { %2916 = vmatprep.subr.bf16.mxu0 %v5676_v12  ;;  %v5869_v45 = vpack.c.bf16 %v867_v43, %v863_v33  ;;  %v873_v17 = vadd.f32 %v872_v1, %v5264_v22  ;;  %v874_v37 = vpop.f32.mrb[106].mxu0  ;;  %v2495_v33 = vunpack.c.l.bf16 %v5771_v41 }
0x1b06   : > { %v875_v31 = vadd.f32 %v874_v37, %v5262_v20  ;;  %v876_v53 = vpop.f32.mrb[107].mxu0 }
0x1b07   : > { %v877_v38 = vadd.f32 %v876_v53, %v5264_v22  ;;  %v880_v4 = vpop.f32.mrb[108].mxu0 }
0x1b08   : > { %v5875_v54 = vpack.c.bf16 %v875_v31, %v871_v49  ;;  %v881_v59 = vadd.f32 %v880_v4, %v5262_v20  ;;  %v882_v60 = vpop.f32.mrb[109].mxu0 }
0x1b09   : > { %v5877_v39 = vpack.c.bf16 %v877_v38, %v873_v17  ;;  %v883_v61 = vadd.f32 %v882_v60, %v5264_v22  ;;  %v884_v62 = vpop.f32.mrb[110].mxu0 }
0x1b0a   : > { %v885_v63 = vadd.f32 %v884_v62, %v5262_v20  ;;  %v886_v15 = vpop.f32.mrb[111].mxu0  ;;  %v2497_v20 = vunpack.c.h.bf16 %v5771_v41 }
0x1b0b   : > { %v887_v21 = vadd.f32 %v886_v15, %v5264_v22 }
0x1b0c   : > { %v5883_v9 = vpack.c.bf16 %v885_v63, %v881_v59 }
0x1b0d   : > { %v5885_v30 = vpack.c.bf16 %v887_v21, %v883_v61 }
0x1bca   : > { %v2538_v18 = vpop.f32.mrb[112].mxu0 }
0x1bcb   : > { %v2539_v26 = vadd.f32 %v2538_v18, %v2494_v7  ;;  %v2540_v13 = vpop.f32.mrb[113].mxu0 }
0x1bcc   : > { %v2541_v43 = vadd.f32 %v2540_v13, %v2495_v33  ;;  %v2542_v6 = vpop.f32.mrb[114].mxu0 }
0x1bcd   : > { %v4249_v49 = vmul.f32 -1.442695, %v2539_v26  ;;  %v2543_v1 = vadd.f32 %v2542_v6, %v2496_v25  ;;  %v2544_v22 = vpop.f32.mrb[115].mxu0 }
0x1bce   : > { %v2545_v17 = vadd.f32 %v2544_v22, %v2497_v20  ;;  %v4251_v63 = vmul.f32 -1.442695, %v2541_v43 }
0x1bcf   : > { %4742 = vpow2.f32 %v4249_v49  ;;  %v4250_v37 = vmul.f32 -1.442695, %v2543_v1 }
0x1bd0   : > { %v4252_v15 = vmul.f32 -1.442695, %v2545_v17 }
0x1bd1   : > { %4744 = vpow2.f32 %v4250_v37 }
0x1bd2   : > { %4746 = vtanh.f32 %v2541_v43 }
0x1bd9   : > { %v4743_v31 = vpop.eup %4742 }
0x1bda   : > { %v2553_v53 = vadd.f32 1.0, %v4743_v31 }
0x1bdb   : > { %v4745_v38 = vpop.eup %4744 }
0x1bdc   : > { %4748 = vrcp.f32 %v2553_v53  ;;  %v2554_v4 = vadd.f32 1.0, %v4745_v38  ;;  %v4747_v55 = vpop.eup %4746 }
0x1bdd   : > { %4750 = vtanh.f32 %v2545_v17 }
0x1bde   : > { %4752 = vrcp.f32 %v2554_v4  ;;  %v2598_v4 = vunpack.c.l.bf16 %v5779_v5 }
0x1bdf   : > { %4754 = vpow2.f32 %v4251_v63 }
0x1be0   : > { %4756 = vpow2.f32 %v4252_v15 }
0x1be6   : > { %v4749_v59 = vpop.eup %4748 }
0x1be7   : > { %v4751_v60 = vpop.eup %4750  ;;  %v2575_v61 = vmul.f32 %v4749_v59, %v4747_v55  ;;  %v2573_v33 = vmul.f32 %v4749_v59, %v5757_v44 }
0x1be8   : > { %v4753_v41 = vpop.eup %4752 }
0x1be9   : > { %2579 = vrot.lane.b32.xlu0 %v2575_v61, %s5117_s8  ;;  %v2576_v62 = vmul.f32 %v4753_v41, %v4751_v60  ;;  %v4755_v21 = vpop.eup %4754  ;;  %v2574_v6 = vmul.f32 %v4753_v41, %v5761_v46  ;;  %v2597_v46 = vunpack.c.l.bf16 %v5777_v3  ;;  %v2599_v60 = vunpack.c.h.bf16 %v5777_v3 }
0x1bea   : > { %v4757_v7 = vpop.eup %4756  ;;  %v2567_v18 = vadd.f32 1.0, %v4755_v21 }
0x1beb   : > { %2581 = vrot.lane.b32.xlu1 %v2576_v62, %s5117_s8  ;;  %v2568_v26 = vadd.f32 1.0, %v4757_v7  ;;  %v2600_v62 = vunpack.c.h.bf16 %v5779_v5 }
0x1bec   : > { %4758 = vrcp.f32 %v2567_v18 }
0x1bf6   : > { %v4759_v43 = vpop.eup %4758 }
0x1c5b   : > { %v2580_v13 = vpop.permute.xlu0 %2579 }
0x1c5c   : > { %v5894_v25 = vadd.f32 %v2580_v13, %v2573_v33 }
0x1c5d   : > { %v2582_v20 = vpop.permute.xlu1 %2581 }
0x1c5e   : > { %4760 = vtanh.f32 %v5894_v25  ;;  %v5898_v49 = vadd.f32 %v2582_v20, %v2574_v6 }
0x1c5f   : > { %4762 = vrcp.f32 %v2568_v26 }
0x1c60   : > { %4764 = vtanh.f32 %v5898_v49 }
0x1c68   : > { %v4761_v1 = vpop.eup %4760 }
0x1c69   : > { %v4763_v22 = vpop.eup %4762  ;;  %v2589_v44 = vmul.f32 %v4761_v1, %v4759_v43 }
0x1c6a   : > { %v4765_v17 = vpop.eup %4764 }
0x1c6b   : > { %v2590_v37 = vmul.f32 %v4765_v17, %v4763_v22 }
0x1c6d   : > { %v2591_v31 = vpack.c.bf16 %v2590_v37, %v2589_v44 }
0x1c6f   : > { %2602 = vrot.lane.b32.xlu0 %v2591_v31, %s5117_s8 }
0x1ce1   : > { %v2603_v53 = vpop.permute.xlu0 %2602 }
0x1ce2   : > { %4253 = vmatmul.mubr.msk.bf16.vlgmr.msra.gmra.mrb[56].mxu1 %vm1058_vm2, %v2603_v53 }
0x1ce3   : > { %2814 = vmatpush1.bf16.msra.mxu1 %v5638_v8  ;;  %2845 = vmatprep.mubr.bf16.mxu1 %v5116_v2 }
0x1ce4   : > { %2815 = vmatprep.subr.bf16.mxu1 %v5645_v47 }
0x1ce7   : > { %2816 = vmatpush1.bf16.msra.mxu1 %v5651_v10 }
0x1ce8   : > { %2817 = vmatprep.subr.bf16.mxu1 %v5657_v48 }
0x1ceb   : > { %2818 = vmatpush1.bf16.msra.mxu1 %v5663_v11 }
0x1cec   : > { %2819 = vmatprep.subr.bf16.mxu1 %v5669_v14 }
0x1cef   : > { %2820 = vmatpush1.bf16.msra.mxu1 %v5708_v35 }
0x1cf0   : > { %3019 = vmatprep.subr.bf16.mxu1 %v5676_v12 }
0x1db5   : > { %v2641_v38 = vpop.f32.mrb[56].mxu1 }
0x1db6   : > { %v2642_v55 = vadd.f32 %v2641_v38, %v2597_v46  ;;  %v2643_v59 = vpop.f32.mrb[57].mxu1 }
0x1db7   : > { %v2644_v61 = vadd.f32 %v2643_v59, %v2598_v4  ;;  %v2645_v41 = vpop.f32.mrb[58].mxu1 }
0x1db8   : > { %v4254_v63 = vmul.f32 -1.442695, %v2642_v55  ;;  %v2646_v15 = vadd.f32 %v2645_v41, %v2599_v60  ;;  %v2647_v21 = vpop.f32.mrb[59].mxu1 }
0x1db9   : > { %v2648_v7 = vadd.f32 %v2647_v21, %v2600_v62  ;;  %v4256_v17 = vmul.f32 -1.442695, %v2644_v61 }
0x1dba   : > { %4766 = vpow2.f32 %v4254_v63  ;;  %v4255_v18 = vmul.f32 -1.442695, %v2646_v15 }
0x1dbb   : > { %v4257_v44 = vmul.f32 -1.442695, %v2648_v7 }
0x1dbc   : > { %4768 = vpow2.f32 %v4255_v18 }
0x1dbd   : > { %4770 = vtanh.f32 %v2644_v61 }
0x1dc4   : > { %v4767_v33 = vpop.eup %4766 }
0x1dc5   : > { %v2656_v26 = vadd.f32 1.0, %v4767_v33 }
0x1dc6   : > { %v4769_v13 = vpop.eup %4768 }
0x1dc7   : > { %4772 = vrcp.f32 %v2656_v26  ;;  %v2657_v6 = vadd.f32 1.0, %v4769_v13  ;;  %v4771_v3 = vpop.eup %4770 }
0x1dc8   : > { %4774 = vtanh.f32 %v2648_v7 }
0x1dc9   : > { %4776 = vrcp.f32 %v2657_v6 }
0x1dca   : > { %4778 = vpow2.f32 %v4256_v17 }
0x1dcb   : > { %4780 = vpow2.f32 %v4257_v44 }
0x1dd1   : > { %v4773_v20 = vpop.eup %4772 }
0x1dd2   : > { %v4775_v43 = vpop.eup %4774  ;;  %v2678_v1 = vmul.f32 %v4773_v20, %v4771_v3  ;;  %v2676_v46 = vmul.f32 %v4773_v20, %v5894_v25 }
0x1dd3   : > { %v4777_v5 = vpop.eup %4776 }
0x1dd4   : > { %2682 = vrot.lane.b32.xlu1 %v2678_v1, %s5117_s8  ;;  %v2679_v22 = vmul.f32 %v4777_v5, %v4775_v43  ;;  %v4779_v37 = vpop.eup %4778  ;;  %v2677_v59 = vmul.f32 %v4777_v5, %v5898_v49  ;;  %v2700_v49 = vunpack.c.l.bf16 %v5785_v27 }
0x1dd5   : > { %v4781_v31 = vpop.eup %4780  ;;  %v2670_v53 = vadd.f32 1.0, %v4779_v37 }
0x1dd6   : > { %2684 = vrot.lane.b32.xlu0 %v2679_v22, %s5117_s8  ;;  %v2671_v38 = vadd.f32 1.0, %v4781_v31 }
0x1dd7   : > { %4782 = vrcp.f32 %v2670_v53 }
0x1de1   : > { %v4783_v61 = vpop.eup %4782 }
0x1e46   : > { %v2683_v4 = vpop.permute.xlu1 %2682 }
0x1e47   : > { %v5919_v55 = vadd.f32 %v2683_v4, %v2676_v46 }
0x1e48   : > { %v2685_v60 = vpop.permute.xlu0 %2684 }
0x1e49   : > { %4784 = vtanh.f32 %v5919_v55  ;;  %v5923_v41 = vadd.f32 %v2685_v60, %v2677_v59 }
0x1e4a   : > { %4786 = vrcp.f32 %v2671_v38 }
0x1e4b   : > { %4788 = vtanh.f32 %v5923_v41 }
0x1e53   : > { %v4785_v62 = vpop.eup %4784 }
0x1e54   : > { %v4787_v63 = vpop.eup %4786  ;;  %v2692_v25 = vmul.f32 %v4785_v62, %v4783_v61 }
0x1e55   : > { %v4789_v15 = vpop.eup %4788 }
0x1e56   : > { %v2693_v21 = vmul.f32 %v4789_v15, %v4787_v63 }
0x1e58   : > { %v2694_v7 = vpack.c.bf16 %v2693_v21, %v2692_v25 }
0x1e5a   : > { %2705 = vrot.lane.b32.xlu1 %v2694_v7, %s5117_s8 }
0x1ecc   : > { %v2706_v18 = vpop.permute.xlu1 %2705 }
0x1ecd   : > { %4258 = vmatmul.mubr.msk.bf16.vlgmr.msra.gmra.mrb[116].mxu0 %vm1058_vm2, %v2706_v18 }
0x1ece   : > { %2917 = vmatpush1.bf16.msra.mxu0 %v5638_v8  ;;  %2948 = vmatprep.mubr.bf16.mxu0 %v5116_v2  ;;  %v2701_v8 = vunpack.c.l.bf16 %v5787_v16 }
0x1ecf   : > { %2918 = vmatprep.subr.bf16.mxu0 %v5645_v47  ;;  %v2702_v47 = vunpack.c.h.bf16 %v5785_v27 }
0x1ed2   : > { %2919 = vmatpush1.bf16.msra.mxu0 %v5651_v10 }
0x1ed3   : > { %2920 = vmatprep.subr.bf16.mxu0 %v5657_v48  ;;  %v2703_v48 = vunpack.c.h.bf16 %v5787_v16 }
0x1ed6   : > { %2921 = vmatpush1.bf16.msra.mxu0 %v5663_v11 }
0x1ed7   : > { %2922 = vmatprep.subr.bf16.mxu0 %v5669_v14 }
0x1eda   : > { %2923 = vmatpush1.bf16.msra.mxu0 %v5708_v35 }
0x1edb   : > { %3122 = vmatprep.subr.bf16.mxu0 %v5676_v12 }
0x1fa0   : > { %v2744_v33 = vpop.f32.mrb[116].mxu0 }
0x1fa1   : > { %v2745_v26 = vadd.f32 %v2744_v33, %v2700_v49  ;;  %v2746_v13 = vpop.f32.mrb[117].mxu0 }
0x1fa2   : > { %v2747_v10 = vadd.f32 %v2746_v13, %v2701_v8  ;;  %v2748_v6 = vpop.f32.mrb[118].mxu0 }
0x1fa3   : > { %v4259_v11 = vmul.f32 -1.442695, %v2745_v26  ;;  %v2749_v3 = vadd.f32 %v2748_v6, %v2702_v47  ;;  %v2750_v14 = vpop.f32.mrb[119].mxu0  ;;  %v5963_v47 = vld [vmem:[%s6270_s2 + $0x14] ss:$8 sps:$4 sm:$0xff]  }
0x1fa4   : > { %v2751_v20 = vadd.f32 %v2750_v14, %v2703_v48  ;;  %v4261_v53 = vmul.f32 -1.442695, %v2747_v10  ;;  %v5975_v6 = vld [vmem:[%s6270_s2 + $0x24] ss:$8 sps:$4 sm:$0xff]   ;;  %v5981_v48 = vld [vmem:[%s6270_s2 + $0x20] ss:$8 sps:$4 sm:$0xff]   ;;  %v2803_v14 = vunpack.c.l.bf16 %v5793_v29 }
0x1fa5   : > { %4790 = vpow2.f32 %v4259_v11  ;;  %v4260_v43 = vmul.f32 -1.442695, %v2749_v3  ;;  %v5987_v11 = vld [vmem:[%s6270_s2 + $0x34] ss:$8 sps:$4 sm:$0xff]   ;;  %v5994_v3 = vld [vmem:[%s6270_s2 + $0x4] ss:$8 sps:$4 sm:$0xff]  }
0x1fa6   : > { %v4262_v46 = vmul.f32 -1.442695, %v2751_v20 }
0x1fa7   : > { %4792 = vpow2.f32 %v4260_v43  ;;  %v2804_v43 = vunpack.c.l.bf16 %v5795_v42 }
0x1fa8   : > { %4794 = vtanh.f32 %v2747_v10  ;;  %v5969_v10 = vld [vmem:[%s6270_s2 + $0x10] ss:$8 sps:$4 sm:$0xff]  }
0x1faf   : > { %v4791_v12 = vpop.eup %4790 }
0x1fb0   : > { %v2759_v1 = vadd.f32 1.0, %v4791_v12 }
0x1fb1   : > { %v4793_v5 = vpop.eup %4792 }
0x1fb2   : > { %4796 = vrcp.f32 %v2759_v1  ;;  %v2760_v22 = vadd.f32 1.0, %v4793_v5  ;;  %v4795_v27 = vpop.eup %4794  ;;  %v2805_v5 = vunpack.c.h.bf16 %v5793_v29 }
0x1fb3   : > { %4798 = vtanh.f32 %v2751_v20 }
0x1fb4   : > { %4800 = vrcp.f32 %v2760_v22 }
0x1fb5   : > { %4802 = vpow2.f32 %v4261_v53 }
0x1fb6   : > { %4804 = vpow2.f32 %v4262_v46 }
0x1fbc   : > { %v4797_v17 = vpop.eup %4796 }
0x1fbd   : > { %v4799_v44 = vpop.eup %4798  ;;  %v2781_v37 = vmul.f32 %v4797_v17, %v4795_v27  ;;  %v2779_v60 = vmul.f32 %v4797_v17, %v5919_v55 }
0x1fbe   : > { %v4801_v16 = vpop.eup %4800 }
0x1fbf   : > { %2785 = vrot.lane.b32.xlu0 %v2781_v37, %s5117_s8  ;;  %v2782_v31 = vmul.f32 %v4801_v16, %v4799_v44  ;;  %v4803_v38 = vpop.eup %4802  ;;  %v2780_v15 = vmul.f32 %v4801_v16, %v5923_v41  ;;  %v5956_v41 = vld [vmem:[%s6270_s2] ss:$8 sps:$4 sm:$0xff]  }
0x1fc0   : > { %v4805_v4 = vpop.eup %4804  ;;  %v2773_v59 = vadd.f32 1.0, %v4803_v38 }
0x1fc1   : > { %2787 = vrot.lane.b32.xlu1 %v2782_v31, %s5117_s8  ;;  %v2774_v61 = vadd.f32 1.0, %v4805_v4 }
0x1fc2   : > { %4806 = vrcp.f32 %v2773_v59 }
0x1fcc   : > { %v4807_v7 = vpop.eup %4806 }
0x2031   : > { %v2786_v62 = vpop.permute.xlu0 %2785 }
0x2032   : > { %v5944_v63 = vadd.f32 %v2786_v62, %v2779_v60 }
0x2033   : > { %v2788_v25 = vpop.permute.xlu1 %2787 }
0x2034   : > { %4808 = vtanh.f32 %v5944_v63  ;;  %v5948_v21 = vadd.f32 %v2788_v25, %v2780_v15 }
0x2035   : > { %4810 = vrcp.f32 %v2774_v61 }
0x2036   : > { %4812 = vtanh.f32 %v5948_v21 }
0x203e   : > { %v4809_v18 = vpop.eup %4808 }
0x203f   : > { %v4811_v49 = vpop.eup %4810  ;;  %v2795_v55 = vmul.f32 %v4809_v18, %v4807_v7 }
0x2040   : > { %v4813_v33 = vpop.eup %4812 }
0x2041   : > { %v2796_v8 = vmul.f32 %v4813_v33, %v4811_v49 }
0x2043   : > { %v2797_v26 = vpack.c.bf16 %v2796_v8, %v2795_v55 }
0x2045   : > { %2808 = vrot.lane.b32.xlu0 %v2797_v26, %s5117_s8 }
0x20b7   : > { %v2809_v13 = vpop.permute.xlu0 %2808 }
0x20b8   : > { %4263 = vmatmul.mubr.msk.bf16.vlgmr.msra.gmra.mrb[60].mxu1 %vm1058_vm2, %v2809_v13 }
0x20b9   : > { %3020 = vmatpush1.bf16.msra.mxu1 %v5956_v41  ;;  %3051 = vmatprep.mubr.bf16.mxu1 %v5116_v2 }
0x20ba   : > { %3021 = vmatprep.subr.bf16.mxu1 %v5963_v47 }
0x20bd   : > { %3022 = vmatpush1.bf16.msra.mxu1 %v5969_v10 }
0x20be   : > { %3023 = vmatprep.subr.bf16.mxu1 %v5975_v6 }
0x20c1   : > { %3024 = vmatpush1.bf16.msra.mxu1 %v5981_v48 }
0x20c2   : > { %3025 = vmatprep.subr.bf16.mxu1 %v5987_v11 }
0x20c5   : > { %3026 = vmatpush1.bf16.msra.mxu1 %v5708_v35  ;;  %v2806_v35 = vunpack.c.h.bf16 %v5795_v42 }
0x20c6   : > { %3225 = vmatprep.subr.bf16.mxu1 %v5994_v3 }
0x218b   : > { %v2847_v20 = vpop.f32.mrb[60].mxu1 }
0x218c   : > { %v2848_v12 = vadd.f32 %v2847_v20, %v2803_v14  ;;  %v2849_v1 = vpop.f32.mrb[61].mxu1 }
0x218d   : > { %v2850_v22 = vadd.f32 %v2849_v1, %v2804_v43  ;;  %v2851_v27 = vpop.f32.mrb[62].mxu1 }
0x218e   : > { %v4264_v17 = vmul.f32 -1.442695, %v2848_v12  ;;  %v2852_v44 = vadd.f32 %v2851_v27, %v2805_v5  ;;  %v2853_v37 = vpop.f32.mrb[63].mxu1 }
0x218f   : > { %v2854_v16 = vadd.f32 %v2853_v37, %v2806_v35  ;;  %v4266_v15 = vmul.f32 -1.442695, %v2850_v22  ;;  %v2907_v37 = vunpack.c.l.bf16 %v5804_v52 }
0x2190   : > { %4814 = vpow2.f32 %v4264_v17  ;;  %v4265_v31 = vmul.f32 -1.442695, %v2852_v44  ;;  %v2906_v17 = vunpack.c.l.bf16 %v5801_v36 }
0x2191   : > { %v4267_v25 = vmul.f32 -1.442695, %v2854_v16 }
0x2192   : > { %4816 = vpow2.f32 %v4265_v31 }
0x2193   : > { %4818 = vtanh.f32 %v2850_v22 }
0x219a   : > { %v4815_v53 = vpop.eup %4814 }
0x219b   : > { %v2862_v46 = vadd.f32 1.0, %v4815_v53  ;;  %v2908_v53 = vunpack.c.h.bf16 %v5801_v36 }
0x219c   : > { %v4817_v38 = vpop.eup %4816 }
0x219d   : > { %4820 = vrcp.f32 %v2862_v46  ;;  %v2863_v4 = vadd.f32 1.0, %v4817_v38  ;;  %v4819_v29 = vpop.eup %4818 }
0x219e   : > { %4822 = vtanh.f32 %v2854_v16 }
0x219f   : > { %4824 = vrcp.f32 %v2863_v4  ;;  %v2909_v4 = vunpack.c.h.bf16 %v5804_v52 }
0x21a0   : > { %4826 = vpow2.f32 %v4266_v15 }
0x21a1   : > { %4828 = vpow2.f32 %v4267_v25 }
0x21a7   : > { %v4821_v59 = vpop.eup %4820 }
0x21a8   : > { %v4823_v60 = vpop.eup %4822  ;;  %v2884_v61 = vmul.f32 %v4821_v59, %v4819_v29  ;;  %v2882_v33 = vmul.f32 %v4821_v59, %v5944_v63 }
0x21a9   : > { %v4825_v42 = vpop.eup %4824 }
0x21aa   : > { %2888 = vrot.lane.b32.xlu1 %v2884_v61, %s5117_s8  ;;  %v2885_v62 = vmul.f32 %v4825_v42, %v4823_v60  ;;  %v4827_v7 = vpop.eup %4826  ;;  %v2883_v13 = vmul.f32 %v4825_v42, %v5948_v21  ;;  %v6023_v21 = vld [vmem:[%s6270_s2 + $0x30] ss:$8 sps:$4 sm:$0xff]  }
0x21ab   : > { %v4829_v18 = vpop.eup %4828  ;;  %v2876_v49 = vadd.f32 1.0, %v4827_v7 }
0x21ac   : > { %2890 = vrot.lane.b32.xlu0 %v2885_v62, %s5117_s8  ;;  %v2877_v55 = vadd.f32 1.0, %v4829_v18 }
0x21ad   : > { %4830 = vrcp.f32 %v2876_v49 }
0x21b7   : > { %v4831_v43 = vpop.eup %4830 }
0x221c   : > { %v2889_v8 = vpop.permute.xlu1 %2888 }
0x221d   : > { %v6004_v26 = vadd.f32 %v2889_v8, %v2882_v33 }
0x221e   : > { %v2891_v14 = vpop.permute.xlu0 %2890 }
0x221f   : > { %4832 = vtanh.f32 %v6004_v26  ;;  %v6008_v20 = vadd.f32 %v2891_v14, %v2883_v13 }
0x2220   : > { %4834 = vrcp.f32 %v2877_v55 }
0x2221   : > { %4836 = vtanh.f32 %v6008_v20 }
0x2229   : > { %v4833_v12 = vpop.eup %4832 }
0x222a   : > { %v4835_v1 = vpop.eup %4834  ;;  %v2898_v63 = vmul.f32 %v4833_v12, %v4831_v43 }
0x222b   : > { %v4837_v5 = vpop.eup %4836 }
0x222c   : > { %v2899_v22 = vmul.f32 %v4837_v5, %v4835_v1 }
0x222e   : > { %v2900_v27 = vpack.c.bf16 %v2899_v22, %v2898_v63 }
0x2230   : > { %2911 = vrot.lane.b32.xlu1 %v2900_v27, %s5117_s8 }
0x22a2   : > { %v2912_v35 = vpop.permute.xlu1 %2911 }
0x22a3   : > { %4268 = vmatmul.mubr.msk.bf16.vlgmr.msra.gmra.mrb[120].mxu0 %vm1058_vm2, %v2912_v35 }
0x22a4   : > { %3123 = vmatpush1.bf16.msra.mxu0 %v5956_v41  ;;  %3154 = vmatprep.mubr.bf16.mxu0 %v5116_v2 }
0x22a5   : > { %3124 = vmatprep.subr.bf16.mxu0 %v5963_v47 }
0x22a8   : > { %3125 = vmatpush1.bf16.msra.mxu0 %v5969_v10 }
0x22a9   : > { %3126 = vmatprep.subr.bf16.mxu0 %v5975_v6 }
0x22ac   : > { %3127 = vmatpush1.bf16.msra.mxu0 %v5981_v48 }
0x22ad   : > { %3128 = vmatprep.subr.bf16.mxu0 %v5987_v11 }
0x22b0   : > { %3129 = vmatpush1.bf16.msra.mxu0 %v6023_v21 }
0x22b1   : > { %3328 = vmatprep.subr.bf16.mxu0 %v5994_v3 }
0x2376   : > { %v2950_v44 = vpop.f32.mrb[120].mxu0 }
0x2377   : > { %v2951_v16 = vadd.f32 %v2950_v44, %v2906_v17  ;;  %v2952_v31 = vpop.f32.mrb[121].mxu0 }
0x2378   : > { %v2953_v46 = vadd.f32 %v2952_v31, %v2907_v37  ;;  %v2954_v38 = vpop.f32.mrb[122].mxu0 }
0x2379   : > { %v4269_v29 = vmul.f32 -1.442695, %v2951_v16  ;;  %v2955_v59 = vadd.f32 %v2954_v38, %v2908_v53  ;;  %v2956_v60 = vpop.f32.mrb[123].mxu0 }
0x237a   : > { %v2957_v61 = vadd.f32 %v2956_v60, %v2909_v4  ;;  %v4271_v8 = vmul.f32 -1.442695, %v2953_v46 }
0x237b   : > { %4838 = vpow2.f32 %v4269_v29  ;;  %v4270_v42 = vmul.f32 -1.442695, %v2955_v59  ;;  %v3010_v29 = vunpack.c.l.bf16 %v5817_v57 }
0x237c   : > { %v4272_v13 = vmul.f32 -1.442695, %v2957_v61 }
0x237d   : > { %4840 = vpow2.f32 %v4270_v42 }
0x237e   : > { %4842 = vtanh.f32 %v2953_v46 }
0x2385   : > { %v4839_v62 = vpop.eup %4838 }
0x2386   : > { %v2965_v15 = vadd.f32 1.0, %v4839_v62 }
0x2387   : > { %v4841_v25 = vpop.eup %4840 }
0x2388   : > { %4844 = vrcp.f32 %v2965_v15  ;;  %v2966_v7 = vadd.f32 1.0, %v4841_v25  ;;  %v4843_v36 = vpop.eup %4842  ;;  %v3012_v15 = vunpack.c.h.bf16 %v5817_v57 }
0x2389   : > { %4846 = vtanh.f32 %v2957_v61  ;;  %v3011_v61 = vunpack.c.h.bf16 %v5815_v56 }
0x238a   : > { %4848 = vrcp.f32 %v2966_v7 }
0x238b   : > { %4850 = vpow2.f32 %v4271_v8 }
0x238c   : > { %4852 = vpow2.f32 %v4272_v13 }
0x2392   : > { %v4845_v18 = vpop.eup %4844 }
0x2393   : > { %v4847_v49 = vpop.eup %4846  ;;  %v2987_v33 = vmul.f32 %v4845_v18, %v4843_v36  ;;  %v2985_v1 = vmul.f32 %v4845_v18, %v6004_v26 }
0x2394   : > { %v4849_v52 = vpop.eup %4848 }
0x2395   : > { %2991 = vrot.lane.b32.xlu0 %v2987_v33, %s5117_s8  ;;  %v2988_v55 = vmul.f32 %v4849_v52, %v4847_v49  ;;  %v4851_v14 = vpop.eup %4850  ;;  %v2986_v27 = vmul.f32 %v4849_v52, %v6008_v20  ;;  %v3009_v20 = vunpack.c.l.bf16 %v5815_v56 }
0x2396   : > { %v4853_v43 = vpop.eup %4852  ;;  %v2979_v12 = vadd.f32 1.0, %v4851_v14 }
0x2397   : > { %2993 = vrot.lane.b32.xlu1 %v2988_v55, %s5117_s8  ;;  %v2980_v5 = vadd.f32 1.0, %v4853_v43 }
0x2398   : > { %4854 = vrcp.f32 %v2979_v12 }
0x23a2   : > { %v4855_v44 = vpop.eup %4854 }
0x2407   : > { %v2992_v63 = vpop.permute.xlu0 %2991 }
0x2408   : > { %v6034_v22 = vadd.f32 %v2992_v63, %v2985_v1 }
0x2409   : > { %v2994_v35 = vpop.permute.xlu1 %2993 }
0x240a   : > { %4856 = vtanh.f32 %v6034_v22  ;;  %v6038_v17 = vadd.f32 %v2994_v35, %v2986_v27 }
0x240b   : > { %4858 = vrcp.f32 %v2980_v5 }
0x240c   : > { %4860 = vtanh.f32 %v6038_v17 }
0x2414   : > { %v4857_v37 = vpop.eup %4856 }
0x2415   : > { %v4859_v16 = vpop.eup %4858  ;;  %v3001_v26 = vmul.f32 %v4857_v37, %v4855_v44 }
0x2416   : > { %v4861_v31 = vpop.eup %4860 }
0x2417   : > { %v3002_v53 = vmul.f32 %v4861_v31, %v4859_v16 }
0x2419   : > { %v3003_v46 = vpack.c.bf16 %v3002_v53, %v3001_v26 }
0x241b   : > { %3014 = vrot.lane.b32.xlu0 %v3003_v46, %s5117_s8 }
0x248d   : > { %v3015_v38 = vpop.permute.xlu0 %3014 }
0x248e   : > { %4273 = vmatmul.mubr.msk.bf16.vlgmr.msra.gmra.mrb[64].mxu1 %vm1058_vm2, %v3015_v38 }
0x248f   : > { %3226 = vmatpush1.bf16.msra.mxu1 %v5956_v41  ;;  %3257 = vmatprep.mubr.bf16.mxu1 %v5116_v2 }
0x2490   : > { %3227 = vmatprep.subr.bf16.mxu1 %v5963_v47 }
0x2493   : > { %3228 = vmatpush1.bf16.msra.mxu1 %v5969_v10 }
0x2494   : > { %3229 = vmatprep.subr.bf16.mxu1 %v5975_v6 }
0x2497   : > { %3230 = vmatpush1.bf16.msra.mxu1 %v5981_v48 }
0x2498   : > { %3231 = vmatprep.subr.bf16.mxu1 %v5987_v11 }
0x249b   : > { %3232 = vmatpush1.bf16.msra.mxu1 %v6023_v21 }
0x249c   : > { %3431 = vmatprep.subr.bf16.mxu1 %v5994_v3 }
0x2561   : > { %v3053_v4 = vpop.f32.mrb[64].mxu1 }
0x2562   : > { %v3054_v59 = vadd.f32 %v3053_v4, %v3009_v20  ;;  %v3055_v60 = vpop.f32.mrb[65].mxu1 }
0x2563   : > { %v3056_v42 = vadd.f32 %v3055_v60, %v3010_v29  ;;  %v3057_v62 = vpop.f32.mrb[66].mxu1 }
0x2564   : > { %v4274_v25 = vmul.f32 -1.442695, %v3054_v59  ;;  %v3058_v7 = vadd.f32 %v3057_v62, %v3011_v61  ;;  %v3059_v36 = vpop.f32.mrb[67].mxu1  ;;  %v3113_v62 = vunpack.c.l.bf16 %v5829_v0 }
0x2565   : > { %v3060_v18 = vadd.f32 %v3059_v36, %v3012_v15  ;;  %v4276_v1 = vmul.f32 -1.442695, %v3056_v42 }
0x2566   : > { %4862 = vpow2.f32 %v4274_v25  ;;  %v4275_v49 = vmul.f32 -1.442695, %v3058_v7  ;;  %v3114_v7 = vunpack.c.h.bf16 %v5827_v24 }
0x2567   : > { %v4277_v5 = vmul.f32 -1.442695, %v3060_v18 }
0x2568   : > { %4864 = vpow2.f32 %v4275_v49  ;;  %v3115_v49 = vunpack.c.h.bf16 %v5829_v0 }
0x2569   : > { %4866 = vtanh.f32 %v3056_v42 }
0x2570   : > { %v4863_v33 = vpop.eup %4862 }
0x2571   : > { %v3068_v52 = vadd.f32 1.0, %v4863_v33 }
0x2572   : > { %v4865_v55 = vpop.eup %4864 }
0x2573   : > { %4868 = vrcp.f32 %v3068_v52  ;;  %v3069_v8 = vadd.f32 1.0, %v4865_v55  ;;  %v4867_v56 = vpop.eup %4866 }
0x2574   : > { %4870 = vtanh.f32 %v3060_v18 }
0x2575   : > { %4872 = vrcp.f32 %v3069_v8 }
0x2576   : > { %4874 = vpow2.f32 %v4276_v1 }
0x2577   : > { %4876 = vpow2.f32 %v4277_v5 }
0x257d   : > { %v4869_v13 = vpop.eup %4868 }
0x257e   : > { %v4871_v14 = vpop.eup %4870  ;;  %v3090_v43 = vmul.f32 %v4869_v13, %v4867_v56  ;;  %v3088_v44 = vmul.f32 %v4869_v13, %v6034_v22 }
0x257f   : > { %v4873_v57 = vpop.eup %4872 }
0x2580   : > { %3094 = vrot.lane.b32.xlu1 %v3090_v43, %s5117_s8  ;;  %v3091_v12 = vmul.f32 %v4873_v57, %v4871_v14  ;;  %v4875_v63 = vpop.eup %4874  ;;  %v3089_v26 = vmul.f32 %v4873_v57, %v6038_v17  ;;  %v3112_v17 = vunpack.c.l.bf16 %v5827_v24 }
0x2581   : > { %v4877_v27 = vpop.eup %4876  ;;  %v3082_v35 = vadd.f32 1.0, %v4875_v63 }
0x2582   : > { %3096 = vrot.lane.b32.xlu0 %v3091_v12, %s5117_s8  ;;  %v3083_v37 = vadd.f32 1.0, %v4877_v27 }
0x2583   : > { %4878 = vrcp.f32 %v3082_v35 }
0x258d   : > { %v4879_v38 = vpop.eup %4878 }
0x25f2   : > { %v3095_v16 = vpop.permute.xlu1 %3094 }
0x25f3   : > { %v6059_v31 = vadd.f32 %v3095_v16, %v3088_v44 }
0x25f4   : > { %v3097_v53 = vpop.permute.xlu0 %3096 }
0x25f5   : > { %4880 = vtanh.f32 %v6059_v31  ;;  %v6063_v46 = vadd.f32 %v3097_v53, %v3089_v26 }
0x25f6   : > { %4882 = vrcp.f32 %v3083_v37 }
0x25f7   : > { %4884 = vtanh.f32 %v6063_v46 }
0x25ff   : > { %v4881_v20 = vpop.eup %4880 }
0x2600   : > { %v4883_v4 = vpop.eup %4882  ;;  %v3104_v22 = vmul.f32 %v4881_v20, %v4879_v38 }
0x2601   : > { %v4885_v29 = vpop.eup %4884 }
0x2602   : > { %v3105_v59 = vmul.f32 %v4885_v29, %v4883_v4 }
0x2604   : > { %v3106_v60 = vpack.c.bf16 %v3105_v59, %v3104_v22 }
0x2606   : > { %3117 = vrot.lane.b32.xlu1 %v3106_v60, %s5117_s8 }
0x2678   : > { %v3118_v61 = vpop.permute.xlu1 %3117 }
0x2679   : > { %4278 = vmatmul.mubr.msk.bf16.vlgmr.msra.gmra.mrb[124].mxu0 %vm1058_vm2, %v3118_v61 }
0x267a   : > { %3329 = vmatpush1.bf16.msra.mxu0 %v5956_v41  ;;  %3360 = vmatprep.mubr.bf16.mxu0 %v5116_v2 }
0x267b   : > { %3330 = vmatprep.subr.bf16.mxu0 %v5963_v47 }
0x267e   : > { %3331 = vmatpush1.bf16.msra.mxu0 %v5969_v10 }
0x267f   : > { %3332 = vmatprep.subr.bf16.mxu0 %v5975_v6 }
0x2682   : > { %3333 = vmatpush1.bf16.msra.mxu0 %v5981_v48 }
0x2683   : > { %3334 = vmatprep.subr.bf16.mxu0 %v5987_v11 }
0x2686   : > { %3335 = vmatpush1.bf16.msra.mxu0 %v6023_v21 }
0x2687   : > { %3534 = vmatprep.subr.bf16.mxu0 %v5994_v3 }
0x274c   : > { %v3156_v42 = vpop.f32.mrb[124].mxu0 }
0x274d   : > { %v3157_v15 = vadd.f32 %v3156_v42, %v3112_v17  ;;  %v3158_v25 = vpop.f32.mrb[125].mxu0 }
0x274e   : > { %v3159_v36 = vadd.f32 %v3158_v25, %v3113_v62  ;;  %v3160_v18 = vpop.f32.mrb[126].mxu0 }
0x274f   : > { %v4279_v33 = vmul.f32 -1.442695, %v3157_v15  ;;  %v3161_v52 = vadd.f32 %v3160_v18, %v3114_v7  ;;  %v3162_v55 = vpop.f32.mrb[127].mxu0  ;;  %v3216_v7 = vunpack.c.l.bf16 %v5837_v32 }
0x2750   : > { %v3163_v8 = vadd.f32 %v3162_v55, %v3115_v49  ;;  %v4281_v27 = vmul.f32 -1.442695, %v3159_v36  ;;  %v3217_v49 = vunpack.c.h.bf16 %v5835_v34  ;;  %v3218_v55 = vunpack.c.h.bf16 %v5837_v32 }
0x2751   : > { %4886 = vpow2.f32 %v4279_v33  ;;  %v4280_v56 = vmul.f32 -1.442695, %v3161_v52 }
0x2752   : > { %v4282_v35 = vmul.f32 -1.442695, %v3163_v8 }
0x2753   : > { %4888 = vpow2.f32 %v4280_v56 }
0x2754   : > { %4890 = vtanh.f32 %v3159_v36 }
0x275b   : > { %v4887_v13 = vpop.eup %4886 }
0x275c   : > { %v3171_v14 = vadd.f32 1.0, %v4887_v13 }
0x275d   : > { %v4889_v43 = vpop.eup %4888 }
0x275e   : > { %4892 = vrcp.f32 %v3171_v14  ;;  %v3172_v57 = vadd.f32 1.0, %v4889_v43  ;;  %v4891_v24 = vpop.eup %4890 }
0x275f   : > { %4894 = vtanh.f32 %v3163_v8 }
0x2760   : > { %4896 = vrcp.f32 %v3172_v57 }
0x2761   : > { %4898 = vpow2.f32 %v4281_v27 }
0x2762   : > { %4900 = vpow2.f32 %v4282_v35 }
0x2768   : > { %v4893_v12 = vpop.eup %4892 }
0x2769   : > { %v4895_v1 = vpop.eup %4894  ;;  %v3193_v5 = vmul.f32 %v4893_v12, %v4891_v24  ;;  %v3191_v26 = vmul.f32 %v4893_v12, %v6059_v31 }
0x276a   : > { %v4897_v0 = vpop.eup %4896 }
0x276b   : > { %3197 = vrot.lane.b32.xlu0 %v3193_v5, %s5117_s8  ;;  %v3194_v63 = vmul.f32 %v4897_v0, %v4895_v1  ;;  %v4899_v44 = vpop.eup %4898  ;;  %v3192_v4 = vmul.f32 %v4897_v0, %v6063_v46  ;;  %v3215_v46 = vunpack.c.l.bf16 %v5835_v34 }
0x276c   : > { %v4901_v37 = vpop.eup %4900  ;;  %v3185_v16 = vadd.f32 1.0, %v4899_v44 }
0x276d   : > { %3199 = vrot.lane.b32.xlu1 %v3194_v63, %s5117_s8  ;;  %v3186_v53 = vadd.f32 1.0, %v4901_v37 }
0x276e   : > { %4902 = vrcp.f32 %v3185_v16 }
0x2778   : > { %v4903_v59 = vpop.eup %4902 }
0x27dd   : > { %v3198_v38 = vpop.permute.xlu0 %3197 }
0x27de   : > { %v6084_v20 = vadd.f32 %v3198_v38, %v3191_v26 }
0x27df   : > { %v3200_v29 = vpop.permute.xlu1 %3199 }
0x27e0   : > { %4904 = vtanh.f32 %v6084_v20  ;;  %v6088_v22 = vadd.f32 %v3200_v29, %v3192_v4 }
0x27e1   : > { %4906 = vrcp.f32 %v3186_v53 }
0x27e2   : > { %4908 = vtanh.f32 %v6088_v22 }
0x27ea   : > { %v4905_v60 = vpop.eup %4904 }
0x27eb   : > { %v4907_v61 = vpop.eup %4906  ;;  %v3207_v31 = vmul.f32 %v4905_v60, %v4903_v59 }
0x27ec   : > { %v4909_v17 = vpop.eup %4908 }
0x27ed   : > { %v3208_v42 = vmul.f32 %v4909_v17, %v4907_v61 }
0x27ef   : > { %v3209_v62 = vpack.c.bf16 %v3208_v42, %v3207_v31 }
0x27f1   : > { %3220 = vrot.lane.b32.xlu0 %v3209_v62, %s5117_s8 }
0x2863   : > { %v3221_v15 = vpop.permute.xlu0 %3220 }
0x2864   : > { %4283 = vmatmul.mubr.msk.bf16.vlgmr.msra.gmra.mrb[68].mxu1 %vm1058_vm2, %v3221_v15 }
0x2865   : > { %3432 = vmatpush1.bf16.msra.mxu1 %v5956_v41  ;;  %3463 = vmatprep.mubr.bf16.mxu1 %v5116_v2 }
0x2866   : > { %3433 = vmatprep.subr.bf16.mxu1 %v5963_v47 }
0x2869   : > { %3434 = vmatpush1.bf16.msra.mxu1 %v5969_v10 }
0x286a   : > { %3435 = vmatprep.subr.bf16.mxu1 %v5975_v6 }
0x286d   : > { %3436 = vmatpush1.bf16.msra.mxu1 %v5981_v48 }
0x286e   : > { %3437 = vmatprep.subr.bf16.mxu1 %v5987_v11 }
0x2871   : > { %3438 = vmatpush1.bf16.msra.mxu1 %v6023_v21 }
0x2872   : > { %3637 = vmatprep.subr.bf16.mxu1 %v5994_v3 }
0x2937   : > { %v3259_v25 = vpop.f32.mrb[68].mxu1 }
0x2938   : > { %v3260_v36 = vadd.f32 %v3259_v25, %v3215_v46  ;;  %v3261_v18 = vpop.f32.mrb[69].mxu1 }
0x2939   : > { %v3262_v33 = vadd.f32 %v3261_v18, %v3216_v7  ;;  %v3263_v52 = vpop.f32.mrb[70].mxu1 }
0x293a   : > { %v4284_v8 = vmul.f32 -1.442695, %v3260_v36  ;;  %v3264_v56 = vadd.f32 %v3263_v52, %v3217_v49  ;;  %v3265_v13 = vpop.f32.mrb[71].mxu1  ;;  %v3319_v36 = vunpack.c.l.bf16 %v5845_v51 }
0x293b   : > { %v3266_v14 = vadd.f32 %v3265_v13, %v3218_v55  ;;  %v4286_v35 = vmul.f32 -1.442695, %v3262_v33 }
0x293c   : > { %4910 = vpow2.f32 %v4284_v8  ;;  %v4285_v43 = vmul.f32 -1.442695, %v3264_v56  ;;  %v3321_v8 = vunpack.c.h.bf16 %v5845_v51 }
0x293d   : > { %v4287_v44 = vmul.f32 -1.442695, %v3266_v14 }
0x293e   : > { %4912 = vpow2.f32 %v4285_v43 }
0x293f   : > { %4914 = vtanh.f32 %v3262_v33  ;;  %v3320_v33 = vunpack.c.h.bf16 %v5843_v50 }
0x2946   : > { %v4911_v57 = vpop.eup %4910 }
0x2947   : > { %v3274_v24 = vadd.f32 1.0, %v4911_v57 }
0x2948   : > { %v4913_v12 = vpop.eup %4912 }
0x2949   : > { %4916 = vrcp.f32 %v3274_v24  ;;  %v3275_v1 = vadd.f32 1.0, %v4913_v12  ;;  %v4915_v34 = vpop.eup %4914 }
0x294a   : > { %4918 = vtanh.f32 %v3266_v14 }
0x294b   : > { %4920 = vrcp.f32 %v3275_v1 }
0x294c   : > { %4922 = vpow2.f32 %v4286_v35 }
0x294d   : > { %4924 = vpow2.f32 %v4287_v44 }
0x2953   : > { %v4917_v5 = vpop.eup %4916 }
0x2954   : > { %v4919_v0 = vpop.eup %4918  ;;  %v3296_v63 = vmul.f32 %v4917_v5, %v4915_v34  ;;  %v3294_v53 = vmul.f32 %v4917_v5, %v6084_v20 }
0x2955   : > { %v4921_v32 = vpop.eup %4920 }
0x2956   : > { %3300 = vrot.lane.b32.xlu1 %v3296_v63, %s5117_s8  ;;  %v3297_v27 = vmul.f32 %v4921_v32, %v4919_v0  ;;  %v4923_v37 = vpop.eup %4922  ;;  %v3295_v59 = vmul.f32 %v4921_v32, %v6088_v22  ;;  %v3318_v22 = vunpack.c.l.bf16 %v5843_v50 }
0x2957   : > { %v4925_v16 = vpop.eup %4924  ;;  %v3288_v26 = vadd.f32 1.0, %v4923_v37 }
0x2958   : > { %3302 = vrot.lane.b32.xlu0 %v3297_v27, %s5117_s8  ;;  %v3289_v38 = vadd.f32 1.0, %v4925_v16 }
0x2959   : > { %4926 = vrcp.f32 %v3288_v26 }
0x2963   : > { %v4927_v17 = vpop.eup %4926 }
0x29c8   : > { %v3301_v4 = vpop.permute.xlu1 %3300 }
0x29c9   : > { %v6109_v29 = vadd.f32 %v3301_v4, %v3294_v53 }
0x29ca   : > { %v3303_v60 = vpop.permute.xlu0 %3302 }
0x29cb   : > { %4928 = vtanh.f32 %v6109_v29  ;;  %v6113_v61 = vadd.f32 %v3303_v60, %v3295_v59 }
0x29cc   : > { %4930 = vrcp.f32 %v3289_v38 }
0x29cd   : > { %4932 = vtanh.f32 %v6113_v61 }
0x29d5   : > { %v4929_v31 = vpop.eup %4928 }
0x29d6   : > { %v4931_v42 = vpop.eup %4930  ;;  %v3310_v20 = vmul.f32 %v4929_v31, %v4927_v17 }
0x29d7   : > { %v4933_v62 = vpop.eup %4932 }
0x29d8   : > { %v3311_v15 = vmul.f32 %v4933_v62, %v4931_v42 }
0x29da   : > { %v3312_v46 = vpack.c.bf16 %v3311_v15, %v3310_v20 }
0x29dc   : > { %3323 = vrot.lane.b32.xlu1 %v3312_v46, %s5117_s8 }
0x2a4e   : > { %v3324_v25 = vpop.permute.xlu1 %3323 }
0x2a4f   : > { %4288 = vmatmul.mubr.msk.bf16.vlgmr.msra.gmra.mrb[128].mxu0 %vm1058_vm2, %v3324_v25 }
0x2a50   : > { %3535 = vmatpush1.bf16.msra.mxu0 %v5956_v41  ;;  %3566 = vmatprep.mubr.bf16.mxu0 %v5116_v2 }
0x2a51   : > { %3536 = vmatprep.subr.bf16.mxu0 %v5963_v47 }
0x2a54   : > { %3537 = vmatpush1.bf16.msra.mxu0 %v5969_v10 }
0x2a55   : > { %3538 = vmatprep.subr.bf16.mxu0 %v5975_v6 }
0x2a58   : > { %3539 = vmatpush1.bf16.msra.mxu0 %v5981_v48 }
0x2a59   : > { %3540 = vmatprep.subr.bf16.mxu0 %v5987_v11 }
0x2a5c   : > { %3541 = vmatpush1.bf16.msra.mxu0 %v6023_v21 }
0x2a5d   : > { %3740 = vmatprep.subr.bf16.mxu0 %v5994_v3 }
0x2b22   : > { %v3362_v7 = vpop.f32.mrb[128].mxu0 }
0x2b23   : > { %v3363_v18 = vadd.f32 %v3362_v7, %v3318_v22  ;;  %v3364_v49 = vpop.f32.mrb[129].mxu0  ;;  %v3422_v7 = vunpack.c.l.bf16 %v5853_v58 }
0x2b24   : > { %v3365_v52 = vadd.f32 %v3364_v49, %v3319_v36  ;;  %v3366_v55 = vpop.f32.mrb[130].mxu0  ;;  %v3423_v49 = vunpack.c.h.bf16 %v5851_v40 }
0x2b25   : > { %v4289_v56 = vmul.f32 -1.442695, %v3363_v18  ;;  %v3367_v13 = vadd.f32 %v3366_v55, %v3320_v33  ;;  %v3368_v14 = vpop.f32.mrb[131].mxu0  ;;  %v3424_v55 = vunpack.c.h.bf16 %v5853_v58 }
0x2b26   : > { %v3369_v43 = vadd.f32 %v3368_v14, %v3321_v8  ;;  %v4291_v27 = vmul.f32 -1.442695, %v3365_v52 }
0x2b27   : > { %4934 = vpow2.f32 %v4289_v56  ;;  %v4290_v57 = vmul.f32 -1.442695, %v3367_v13 }
0x2b28   : > { %v4292_v35 = vmul.f32 -1.442695, %v3369_v43 }
0x2b29   : > { %4936 = vpow2.f32 %v4290_v57 }
0x2b2a   : > { %4938 = vtanh.f32 %v3365_v52 }
0x2b31   : > { %v4935_v24 = vpop.eup %4934 }
0x2b32   : > { %v3377_v12 = vadd.f32 1.0, %v4935_v24 }
0x2b33   : > { %v4937_v1 = vpop.eup %4936 }
0x2b34   : > { %4940 = vrcp.f32 %v3377_v12  ;;  %v3378_v34 = vadd.f32 1.0, %v4937_v1  ;;  %v4939_v50 = vpop.eup %4938 }
0x2b35   : > { %4942 = vtanh.f32 %v3369_v43 }
0x2b36   : > { %4944 = vrcp.f32 %v3378_v34 }
0x2b37   : > { %4946 = vpow2.f32 %v4291_v27 }
0x2b38   : > { %4948 = vpow2.f32 %v4292_v35 }
0x2b3e   : > { %v4941_v5 = vpop.eup %4940 }
0x2b3f   : > { %v4943_v0 = vpop.eup %4942  ;;  %v3399_v63 = vmul.f32 %v4941_v5, %v4939_v50  ;;  %v3397_v26 = vmul.f32 %v4941_v5, %v6109_v29 }
0x2b40   : > { %v4945_v51 = vpop.eup %4944 }
0x2b41   : > { %3403 = vrot.lane.b32.xlu0 %v3399_v63, %s5117_s8  ;;  %v3400_v32 = vmul.f32 %v4945_v51, %v4943_v0  ;;  %v4947_v44 = vpop.eup %4946  ;;  %v3398_v59 = vmul.f32 %v4945_v51, %v6113_v61  ;;  %v3421_v61 = vunpack.c.l.bf16 %v5851_v40 }
0x2b42   : > { %v4949_v37 = vpop.eup %4948  ;;  %v3391_v16 = vadd.f32 1.0, %v4947_v44 }
0x2b43   : > { %3405 = vrot.lane.b32.xlu1 %v3400_v32, %s5117_s8  ;;  %v3392_v53 = vadd.f32 1.0, %v4949_v37 }
0x2b44   : > { %4950 = vrcp.f32 %v3391_v16 }
0x2b4e   : > { %v4951_v31 = vpop.eup %4950 }
0x2bb3   : > { %v3404_v38 = vpop.permute.xlu0 %3403 }
0x2bb4   : > { %v6134_v4 = vadd.f32 %v3404_v38, %v3397_v26 }
0x2bb5   : > { %v3406_v60 = vpop.permute.xlu1 %3405 }
0x2bb6   : > { %4952 = vtanh.f32 %v6134_v4  ;;  %v6138_v17 = vadd.f32 %v3406_v60, %v3398_v59 }
0x2bb7   : > { %4954 = vrcp.f32 %v3392_v53 }
0x2bb8   : > { %4956 = vtanh.f32 %v6138_v17 }
0x2bc0   : > { %v4953_v42 = vpop.eup %4952 }
0x2bc1   : > { %v4955_v62 = vpop.eup %4954  ;;  %v3413_v29 = vmul.f32 %v4953_v42, %v4951_v31 }
0x2bc2   : > { %v4957_v20 = vpop.eup %4956 }
0x2bc3   : > { %v3414_v15 = vmul.f32 %v4957_v20, %v4955_v62 }
0x2bc5   : > { %v3415_v46 = vpack.c.bf16 %v3414_v15, %v3413_v29 }
0x2bc7   : > { %3426 = vrot.lane.b32.xlu0 %v3415_v46, %s5117_s8  ;;  %v3525_v46 = vunpack.c.l.bf16 %v5861_v19 }
0x2c39   : > { %v3427_v25 = vpop.permute.xlu0 %3426 }
0x2c3a   : > { %4293 = vmatmul.mubr.msk.bf16.vlgmr.msra.gmra.mrb[72].mxu1 %vm1058_vm2, %v3427_v25 }
0x2c3b   : > { %3638 = vmatpush1.bf16.msra.mxu1 %v5956_v41  ;;  %3669 = vmatprep.mubr.bf16.mxu1 %v5116_v2 }
0x2c3c   : > { %3639 = vmatprep.subr.bf16.mxu1 %v5963_v47 }
0x2c3f   : > { %3640 = vmatpush1.bf16.msra.mxu1 %v5969_v10 }
0x2c40   : > { %3641 = vmatprep.subr.bf16.mxu1 %v5975_v6 }
0x2c43   : > { %3642 = vmatpush1.bf16.msra.mxu1 %v5981_v48 }
0x2c44   : > { %3643 = vmatprep.subr.bf16.mxu1 %v5987_v11 }
0x2c47   : > { %3644 = vmatpush1.bf16.msra.mxu1 %v6023_v21 }
0x2c48   : > { %3843 = vmatprep.subr.bf16.mxu1 %v5994_v3 }
0x2d0d   : > { %v3465_v22 = vpop.f32.mrb[72].mxu1 }
0x2d0e   : > { %v3466_v36 = vadd.f32 %v3465_v22, %v3421_v61  ;;  %v3467_v18 = vpop.f32.mrb[73].mxu1  ;;  %v3526_v61 = vunpack.c.h.bf16 %v5859_v28 }
0x2d0f   : > { %v3468_v33 = vadd.f32 %v3467_v18, %v3422_v7  ;;  %v3469_v52 = vpop.f32.mrb[74].mxu1 }
0x2d10   : > { %v4294_v8 = vmul.f32 -1.442695, %v3466_v36  ;;  %v3470_v56 = vadd.f32 %v3469_v52, %v3423_v49  ;;  %v3471_v13 = vpop.f32.mrb[75].mxu1 }
0x2d11   : > { %v3472_v14 = vadd.f32 %v3471_v13, %v3424_v55  ;;  %v4296_v0 = vmul.f32 -1.442695, %v3468_v33 }
0x2d12   : > { %4958 = vpow2.f32 %v4294_v8  ;;  %v4295_v43 = vmul.f32 -1.442695, %v3470_v56 }
0x2d13   : > { %v4297_v63 = vmul.f32 -1.442695, %v3472_v14 }
0x2d14   : > { %4960 = vpow2.f32 %v4295_v43 }
0x2d15   : > { %4962 = vtanh.f32 %v3468_v33 }
0x2d1c   : > { %v4959_v3 = vpop.eup %4958 }
0x2d1d   : > { %v3480_v57 = vadd.f32 1.0, %v4959_v3 }
0x2d1e   : > { %v4961_v24 = vpop.eup %4960 }
0x2d1f   : > { %4964 = vrcp.f32 %v3480_v57  ;;  %v3481_v12 = vadd.f32 1.0, %v4961_v24  ;;  %v4963_v40 = vpop.eup %4962 }
0x2d20   : > { %4966 = vtanh.f32 %v3472_v14 }
0x2d21   : > { %4968 = vrcp.f32 %v3481_v12 }
0x2d22   : > { %4970 = vpow2.f32 %v4296_v0 }
0x2d23   : > { %4972 = vpow2.f32 %v4297_v63 }
0x2d29   : > { %v4965_v1 = vpop.eup %4964 }
0x2d2a   : > { %v4967_v34 = vpop.eup %4966  ;;  %v3502_v50 = vmul.f32 %v4965_v1, %v4963_v40  ;;  %v3500_v35 = vmul.f32 %v4965_v1, %v6134_v4 }
0x2d2b   : > { %v4969_v58 = vpop.eup %4968 }
0x2d2c   : > { %3506 = vrot.lane.b32.xlu1 %v3502_v50, %s5117_s8  ;;  %v3503_v5 = vmul.f32 %v4969_v58, %v4967_v34  ;;  %v4971_v51 = vpop.eup %4970  ;;  %v3501_v26 = vmul.f32 %v4969_v58, %v6138_v17  ;;  %v3524_v17 = vunpack.c.l.bf16 %v5859_v28 }
0x2d2d   : > { %v4973_v32 = vpop.eup %4972  ;;  %v3494_v27 = vadd.f32 1.0, %v4971_v51 }
0x2d2e   : > { %3508 = vrot.lane.b32.xlu0 %v3503_v5, %s5117_s8  ;;  %v3495_v44 = vadd.f32 1.0, %v4973_v32 }
0x2d2f   : > { %4974 = vrcp.f32 %v3494_v27 }
0x2d39   : > { %v4975_v59 = vpop.eup %4974 }
0x2d9e   : > { %v3507_v37 = vpop.permute.xlu1 %3506 }
0x2d9f   : > { %v6159_v16 = vadd.f32 %v3507_v37, %v3500_v35 }
0x2da0   : > { %v3509_v53 = vpop.permute.xlu0 %3508 }
0x2da1   : > { %4976 = vtanh.f32 %v6159_v16  ;;  %v6163_v38 = vadd.f32 %v3509_v53, %v3501_v26  ;;  %v5103_v26 = vld [vmem:[%s6270_s2 + $0x14] ss:$8 sps:$4 sm:$0xff]   ;;  %v5104_v53 = vld [vmem:[%s6270_s2 + $0x10] ss:$8 sps:$4 sm:$0xff]  }
0x2da2   : > { %4978 = vrcp.f32 %v3495_v44 }
0x2da3   : > { %4980 = vtanh.f32 %v6163_v38 }
0x2dab   : > { %v4977_v60 = vpop.eup %4976 }
0x2dac   : > { %v4979_v31 = vpop.eup %4978  ;;  %v3516_v4 = vmul.f32 %v4977_v60, %v4975_v59  ;;  %v5106_v59 = vld [vmem:[%s6270_s2 + $0x20] ss:$8 sps:$4 sm:$0xff]   ;;  %v3627_v60 = vunpack.c.l.bf16 %v5867_v23 }
0x2dad   : > { %v4981_v42 = vpop.eup %4980 }
0x2dae   : > { %v3517_v62 = vmul.f32 %v4981_v42, %v4979_v31  ;;  %v3628_v42 = vunpack.c.l.bf16 %v5869_v45 }
0x2db0   : > { %v3518_v20 = vpack.c.bf16 %v3517_v62, %v3516_v4 }
0x2db2   : > { %3529 = vrot.lane.b32.xlu1 %v3518_v20, %s5117_s8  ;;  %v3629_v20 = vunpack.c.h.bf16 %v5867_v23 }
0x2e24   : > { %v3530_v29 = vpop.permute.xlu1 %3529 }
0x2e25   : > { %4298 = vmatmul.mubr.msk.bf16.vlgmr.msra.gmra.mrb[132].mxu0 %vm1058_vm2, %v3530_v29 }
0x2e26   : > { %3741 = vmatpush1.bf16.msra.mxu0 %v5956_v41  ;;  %3772 = vmatprep.mubr.bf16.mxu0 %v5116_v2 }
0x2e27   : > { %3742 = vmatprep.subr.bf16.mxu0 %v5963_v47 }
0x2e2a   : > { %3743 = vmatpush1.bf16.msra.mxu0 %v5969_v10  ;;  %v3527_v10 = vunpack.c.h.bf16 %v5861_v19 }
0x2e2b   : > { %3744 = vmatprep.subr.bf16.mxu0 %v5975_v6 }
0x2e2e   : > { %3745 = vmatpush1.bf16.msra.mxu0 %v5981_v48 }
0x2e2f   : > { %3746 = vmatprep.subr.bf16.mxu0 %v5987_v11 }
0x2e32   : > { %3747 = vmatpush1.bf16.msra.mxu0 %v6023_v21 }
0x2ef8   : > { %v3568_v15 = vpop.f32.mrb[132].mxu0 }
0x2ef9   : > { %v3569_v41 = vadd.f32 %v3568_v15, %v3524_v17  ;;  %v3570_v25 = vpop.f32.mrb[133].mxu0  ;;  %v3630_v15 = vunpack.c.h.bf16 %v5869_v45 }
0x2efa   : > { %v3571_v47 = vadd.f32 %v3570_v25, %v3525_v46  ;;  %v3572_v22 = vpop.f32.mrb[134].mxu0 }
0x2efb   : > { %v4299_v6 = vmul.f32 -1.442695, %v3569_v41  ;;  %v3573_v7 = vadd.f32 %v3572_v22, %v3526_v61  ;;  %v3574_v48 = vpop.f32.mrb[135].mxu0 }
0x2efc   : > { %v3575_v36 = vadd.f32 %v3574_v48, %v3527_v10  ;;  %v4301_v14 = vmul.f32 -1.442695, %v3571_v47 }
0x2efd   : > { %4982 = vpow2.f32 %v4299_v6  ;;  %v4300_v11 = vmul.f32 -1.442695, %v3573_v7 }
0x2efe   : > { %v4302_v43 = vmul.f32 -1.442695, %v3575_v36 }
0x2eff   : > { %4984 = vpow2.f32 %v4300_v11 }
0x2f00   : > { %4986 = vtanh.f32 %v3571_v47 }
0x2f07   : > { %v4983_v18 = vpop.eup %4982 }
0x2f08   : > { %v3583_v49 = vadd.f32 1.0, %v4983_v18 }
0x2f09   : > { %v4985_v33 = vpop.eup %4984 }
0x2f0a   : > { %4988 = vrcp.f32 %v3583_v49  ;;  %v3584_v52 = vadd.f32 1.0, %v4985_v33  ;;  %v4987_v28 = vpop.eup %4986 }
0x2f0b   : > { %4990 = vtanh.f32 %v3575_v36 }
0x2f0c   : > { %4992 = vrcp.f32 %v3584_v52 }
0x2f0d   : > { %4994 = vpow2.f32 %v4301_v14 }
0x2f0e   : > { %4996 = vpow2.f32 %v4302_v43 }
0x2f14   : > { %v4989_v55 = vpop.eup %4988 }
0x2f15   : > { %v4991_v8 = vpop.eup %4990  ;;  %v3605_v56 = vmul.f32 %v4989_v55, %v4987_v28  ;;  %v3603_v12 = vmul.f32 %v4989_v55, %v6159_v16  ;;  %v5102_v16 = vld [vmem:[%s6270_s2] ss:$8 sps:$4 sm:$0xff]  }
0x2f16   : > { %v4993_v19 = vpop.eup %4992 }
0x2f17   : > { %3609 = vrot.lane.b32.xlu0 %v3605_v56, %s5117_s8  ;;  %v3606_v13 = vmul.f32 %v4993_v19, %v4991_v8  ;;  %v4995_v3 = vpop.eup %4994  ;;  %v3604_v50 = vmul.f32 %v4993_v19, %v6163_v38  ;;  %v5105_v38 = vld [vmem:[%s6270_s2 + $0x24] ss:$8 sps:$4 sm:$0xff]  }
0x2f18   : > { %v4997_v57 = vpop.eup %4996  ;;  %v3597_v24 = vadd.f32 1.0, %v4995_v3 }
0x2f19   : > { %3611 = vrot.lane.b32.xlu1 %v3606_v13, %s5117_s8  ;;  %v3598_v40 = vadd.f32 1.0, %v4997_v57 }
0x2f1a   : > { %4998 = vrcp.f32 %v3597_v24 }
0x2f24   : > { %v4999_v0 = vpop.eup %4998 }
0x2f89   : > { %v3610_v1 = vpop.permute.xlu0 %3609 }
0x2f8a   : > { %v6183_v34 = vadd.f32 %v3610_v1, %v3603_v12 }
0x2f8b   : > { %v3612_v58 = vpop.permute.xlu1 %3611 }
0x2f8c   : > { %5000 = vtanh.f32 %v6183_v34  ;;  %v6187_v5 = vadd.f32 %v3612_v58, %v3604_v50  ;;  %v3730_v58 = vunpack.c.l.bf16 %v5875_v54 }
0x2f8d   : > { %5002 = vrcp.f32 %v3598_v40 }
0x2f8e   : > { %5004 = vtanh.f32 %v6187_v5 }
0x2f96   : > { %v5001_v63 = vpop.eup %5000 }
0x2f97   : > { %v5003_v51 = vpop.eup %5002  ;;  %v3619_v27 = vmul.f32 %v5001_v63, %v4999_v0  ;;  %v3731_v0 = vunpack.c.l.bf16 %v5877_v39 }
0x2f98   : > { %v5005_v32 = vpop.eup %5004 }
0x2f99   : > { %v3620_v35 = vmul.f32 %v5005_v32, %v5003_v51  ;;  %v3732_v32 = vunpack.c.h.bf16 %v5875_v54 }
0x2f9b   : > { %v3621_v44 = vpack.c.bf16 %v3620_v35, %v3619_v27 }
0x2f9d   : > { %3632 = vrot.lane.b32.xlu0 %v3621_v44, %s5117_s8  ;;  %v3733_v44 = vunpack.c.h.bf16 %v5877_v39 }
0x300f   : > { %v3633_v37 = vpop.permute.xlu0 %3632 }
0x3010   : > { %4303 = vmatmul.mubr.msk.bf16.vlgmr.msra.gmra.mrb[76].mxu1 %vm1058_vm2, %v3633_v37 }
0x3011   : > { %3844 = vmatpush1.bf16.msra.mxu1 %v5102_v16  ;;  %3875 = vmatprep.mubr.bf16.mxu1 %v5116_v2  ;;  %v5107_v2 = vld [vmem:[%s6270_s2 + $0x34] ss:$8 sps:$4 sm:$0xff]  }
0x3012   : > { %3845 = vmatprep.subr.bf16.mxu1 %v5103_v26 }
0x3015   : > { %3846 = vmatpush1.bf16.msra.mxu1 %v5104_v53 }
0x3016   : > { %3847 = vmatprep.subr.bf16.mxu1 %v5105_v38 }
0x3019   : > { %3848 = vmatpush1.bf16.msra.mxu1 %v5106_v59 }
0x301a   : > { %3849 = vmatprep.subr.bf16.mxu1 %v5107_v2 }
0x301d   : > { %3850 = vmatpush1.bf16.msra.mxu1 %v6023_v21 }
0x30e3   : > { %v3671_v31 = vpop.f32.mrb[76].mxu1 }
0x30e4   : > { %v3672_v4 = vadd.f32 %v3671_v31, %v3627_v60  ;;  %v3673_v62 = vpop.f32.mrb[77].mxu1 }
0x30e5   : > { %v3674_v29 = vadd.f32 %v3673_v62, %v3628_v42  ;;  %v3675_v17 = vpop.f32.mrb[78].mxu1 }
0x30e6   : > { %v4304_v46 = vmul.f32 -1.442695, %v3672_v4  ;;  %v3676_v41 = vadd.f32 %v3675_v17, %v3629_v20  ;;  %v3677_v25 = vpop.f32.mrb[79].mxu1 }
0x30e7   : > { %v3678_v61 = vadd.f32 %v3677_v25, %v3630_v15  ;;  %v4306_v18 = vmul.f32 -1.442695, %v3674_v29 }
0x30e8   : > { %5006 = vpow2.f32 %v4304_v46  ;;  %v4305_v47 = vmul.f32 -1.442695, %v3676_v41 }
0x30e9   : > { %v4307_v49 = vmul.f32 -1.442695, %v3678_v61 }
0x30ea   : > { %5008 = vpow2.f32 %v4305_v47 }
0x30eb   : > { %5010 = vtanh.f32 %v3674_v29 }
0x30f2   : > { %v5007_v21 = vpop.eup %5006 }
0x30f3   : > { %v3686_v22 = vadd.f32 1.0, %v5007_v21 }
0x30f4   : > { %v5009_v10 = vpop.eup %5008 }
0x30f5   : > { %5012 = vrcp.f32 %v3686_v22  ;;  %v3687_v6 = vadd.f32 1.0, %v5009_v10  ;;  %v5011_v23 = vpop.eup %5010 }
0x30f6   : > { %5014 = vtanh.f32 %v3678_v61 }
0x30f7   : > { %5016 = vrcp.f32 %v3687_v6 }
0x30f8   : > { %5018 = vpow2.f32 %v4306_v18 }
0x30f9   : > { %5020 = vpow2.f32 %v4307_v49 }
0x30ff   : > { %v5013_v7 = vpop.eup %5012 }
0x3100   : > { %v5015_v48 = vpop.eup %5014  ;;  %v3708_v36 = vmul.f32 %v5013_v7, %v5011_v23  ;;  %v3706_v55 = vmul.f32 %v5013_v7, %v6183_v34 }
0x3101   : > { %v5017_v45 = vpop.eup %5016 }
0x3102   : > { %3712 = vrot.lane.b32.xlu1 %v3708_v36, %s5117_s8  ;;  %v3709_v11 = vmul.f32 %v5017_v45, %v5015_v48  ;;  %v5019_v33 = vpop.eup %5018  ;;  %v3707_v13 = vmul.f32 %v5017_v45, %v6187_v5 }
0x3103   : > { %v5021_v52 = vpop.eup %5020  ;;  %v3700_v28 = vadd.f32 1.0, %v5019_v33  ;;  %v3833_v33 = vunpack.c.l.bf16 %v5883_v9 }
0x3104   : > { %3714 = vrot.lane.b32.xlu0 %v3709_v11, %s5117_s8  ;;  %v3701_v8 = vadd.f32 1.0, %v5021_v52 }
0x3105   : > { %5022 = vrcp.f32 %v3700_v28  ;;  %v3834_v28 = vunpack.c.l.bf16 %v5885_v30 }
0x310f   : > { %v5023_v3 = vpop.eup %5022 }
0x3174   : > { %v3713_v56 = vpop.permute.xlu1 %3712 }
0x3175   : > { %v3718_v19 = vadd.f32 %v3713_v56, %v3706_v55  ;;  %v3835_v56 = vunpack.c.h.bf16 %v5883_v9 }
0x3176   : > { %v3715_v14 = vpop.permute.xlu0 %3714 }
0x3177   : > { %5024 = vtanh.f32 %v3718_v19  ;;  %v3719_v43 = vadd.f32 %v3715_v14, %v3707_v13  ;;  %v3836_v14 = vunpack.c.h.bf16 %v5885_v30 }
0x3178   : > { %5026 = vrcp.f32 %v3701_v8 }
0x3179   : > { %5028 = vtanh.f32 %v3719_v43 }
0x3181   : > { %v5025_v57 = vpop.eup %5024 }
0x3182   : > { %v5027_v24 = vpop.eup %5026  ;;  %v3722_v40 = vmul.f32 %v5025_v57, %v5023_v3 }
0x3183   : > { %v5029_v12 = vpop.eup %5028 }
0x3184   : > { %v3723_v1 = vmul.f32 %v5029_v12, %v5027_v24 }
0x3186   : > { %v3724_v50 = vpack.c.bf16 %v3723_v1, %v3722_v40 }
0x3188   : > { %3735 = vrot.lane.b32.xlu1 %v3724_v50, %s5117_s8 }
0x31fa   : > { %v3736_v34 = vpop.permute.xlu1 %3735 }
0x31fb   : > { %4308 = vmatmul.mubr.msk.bf16.vlgmr.msra.gmra.mrb[136].mxu0 %vm1058_vm2, %v3736_v34 }
0x32ce   : > { %v3774_v5 = vpop.f32.mrb[136].mxu0 }
0x32cf   : > { %v3775_v63 = vadd.f32 %v3774_v5, %v3730_v58  ;;  %v3776_v51 = vpop.f32.mrb[137].mxu0 }
0x32d0   : > { %v3777_v27 = vadd.f32 %v3776_v51, %v3731_v0  ;;  %v3778_v35 = vpop.f32.mrb[138].mxu0  ;;  %v4402_v51 = vld [vmem:[%s6272_s4] sm:$0xff]  }
0x32d1   : > { %v4309_v37 = vmul.f32 -1.442695, %v3775_v63  ;;  %v3779_v16 = vadd.f32 %v3778_v35, %v3732_v32  ;;  %v3780_v26 = vpop.f32.mrb[139].mxu0  ;;  %v5118_v32 = vmov 0.0   ;;  %v4404_v35 = vld [vmem:[%s6272_s4 + $0x10] sm:$0xff]  }
0x32d2   : > { %v3781_v53 = vadd.f32 %v3780_v26, %v3733_v44  ;;  %v4311_v29 = vmul.f32 -1.442695, %v3777_v27  ;;  %4331 = vmatprep.subr.bf16.mxu0 %v5118_v32  ;;  %4339 = vmatprep.mubr.msk.bf16.mxu0 %vm5119_vm3, %v5118_v32  ;;  %v4405_v44 = vld [vmem:[%s6272_s4 + $0x18] sm:$0xff]  }
0x32d3   : > { %5030 = vpow2.f32 %v4309_v37  ;;  %v4310_v38 = vmul.f32 -1.442695, %v3779_v16  ;;  %4332 = vmatpush3.bf16.msra.mxu0 %v4402_v51 }
0x32d4   : > { %v4312_v17 = vmul.f32 -1.442695, %v3781_v53  ;;  %4333 = vmatprep.subr.bf16.mxu0 %v5118_v32 }
0x32d5   : > { %5032 = vpow2.f32 %v4310_v38 }
0x32d6   : > { %5034 = vtanh.f32 %v3777_v27  ;;  %v4403_v27 = vld [vmem:[%s6272_s4 + $0x8] sm:$0xff]  }
0x32d7   : > { %4334 = vmatpush3.bf16.msra.mxu0 %v4403_v27 }
0x32d8   : > { %4335 = vmatprep.subr.bf16.mxu0 %v5118_v32 }
0x32db   : > { %4336 = vmatpush3.bf16.msra.mxu0 %v4404_v35 }
0x32dc   : > { %4337 = vmatprep.subr.bf16.mxu0 %v5118_v32 }
0x32dd   : > { %v5031_v59 = vpop.eup %5030 }
0x32de   : > { %v3789_v2 = vadd.f32 1.0, %v5031_v59 }
0x32df   : > { %v5033_v60 = vpop.eup %5032  ;;  %4338 = vmatpush3.bf16.msra.mxu0 %v4405_v44 }
0x32e0   : > { %5036 = vrcp.f32 %v3789_v2  ;;  %v3790_v31 = vadd.f32 1.0, %v5033_v60  ;;  %v5035_v54 = vpop.eup %5034 }
0x32e1   : > { %5038 = vtanh.f32 %v3781_v53 }
0x32e2   : > { %5040 = vrcp.f32 %v3790_v31 }
0x32e3   : > { %5042 = vpow2.f32 %v4311_v29 }
0x32e4   : > { %5044 = vpow2.f32 %v4312_v17 }
0x32ea   : > { %v5037_v42 = vpop.eup %5036 }
0x32eb   : > { %v5039_v4 = vpop.eup %5038  ;;  %v3811_v62 = vmul.f32 %v5037_v42, %v5035_v54  ;;  %v3809_v25 = vmul.f32 %v5037_v42, %v3718_v19 }
0x32ec   : > { %v5041_v39 = vpop.eup %5040 }
0x32ed   : > { %3815 = vrot.lane.b32.xlu0 %v3811_v62, %s5117_s8  ;;  %v3812_v20 = vmul.f32 %v5041_v39, %v5039_v4  ;;  %v5043_v15 = vpop.eup %5042  ;;  %v3810_v22 = vmul.f32 %v5041_v39, %v3719_v43 }
0x32ee   : > { %v5045_v46 = vpop.eup %5044  ;;  %v3803_v41 = vadd.f32 1.0, %v5043_v15 }
0x32ef   : > { %3817 = vrot.lane.b32.xlu1 %v3812_v20, %s5117_s8  ;;  %v3804_v61 = vadd.f32 1.0, %v5045_v46 }
0x32f0   : > { %5046 = vrcp.f32 %v3803_v41 }
0x32fa   : > { %v5047_v23 = vpop.eup %5046 }
0x335f   : > { %v3816_v47 = vpop.permute.xlu0 %3815 }
0x3360   : > { %v6228_v21 = vadd.f32 %v3816_v47, %v3809_v25  ;;  %v4318_v25 = vld [vmem:[%s6273_s5] ss:$0 sm:$0xff] }
0x3361   : > { %v3818_v10 = vpop.permute.xlu1 %3817 }
0x3362   : > { %5048 = vtanh.f32 %v6228_v21  ;;  %v6231_v6 = vadd.f32 %v3818_v10, %v3810_v22 }
0x3363   : > { %5050 = vrcp.f32 %v3804_v61 }
0x3364   : > { %5052 = vtanh.f32 %v6231_v6 }
0x336c   : > { %v5049_v7 = vpop.eup %5048 }
0x336d   : > { %v5051_v48 = vpop.eup %5050  ;;  %v3825_v45 = vmul.f32 %v5049_v7, %v5047_v23 }
0x336e   : > { %v5053_v36 = vpop.eup %5052 }
0x336f   : > { %v3826_v11 = vmul.f32 %v5053_v36, %v5051_v48 }
0x3371   : > { %v3827_v18 = vpack.c.bf16 %v3826_v11, %v3825_v45 }
0x3373   : > { %3838 = vrot.lane.b32.xlu0 %v3827_v18, %s5117_s8 }
0x33e5   : > { %v3839_v49 = vpop.permute.xlu0 %3838 }
0x33e6   : > { %4313 = vmatmul.mubr.msk.bf16.vlgmr.msra.gmra.mrb[80].mxu1 %vm1058_vm2, %v3839_v49 }
0x34b9   : > { %v3877_v52 = vpop.f32.mrb[80].mxu1 }
0x34ba   : > { %v3878_v55 = vadd.f32 %v3877_v52, %v3833_v33  ;;  %v3879_v8 = vpop.f32.mrb[81].mxu1 }
0x34bb   : > { %v3880_v19 = vadd.f32 %v3879_v8, %v3834_v28  ;;  %v3881_v13 = vpop.f32.mrb[82].mxu1 }
0x34bc   : > { %v4314_v43 = vmul.f32 -1.442695, %v3878_v55  ;;  %v3882_v3 = vadd.f32 %v3881_v13, %v3835_v56  ;;  %v3883_v57 = vpop.f32.mrb[83].mxu1 }
0x34bd   : > { %v3884_v24 = vadd.f32 %v3883_v57, %v3836_v14  ;;  %v4316_v37 = vmul.f32 -1.442695, %v3880_v19 }
0x34be   : > { %5054 = vpow2.f32 %v4314_v43  ;;  %v4315_v12 = vmul.f32 -1.442695, %v3882_v3 }
0x34bf   : > { %v4317_v16 = vmul.f32 -1.442695, %v3884_v24 }
0x34c0   : > { %5056 = vpow2.f32 %v4315_v12 }
0x34c1   : > { %5058 = vtanh.f32 %v3880_v19 }
0x34c8   : > { %v5055_v40 = vpop.eup %5054 }
0x34c9   : > { %v3892_v1 = vadd.f32 1.0, %v5055_v40 }
0x34ca   : > { %v5057_v50 = vpop.eup %5056 }
0x34cb   : > { %5060 = vrcp.f32 %v3892_v1  ;;  %v3893_v34 = vadd.f32 1.0, %v5057_v50  ;;  %v5059_v9 = vpop.eup %5058 }
0x34cc   : > { %5062 = vtanh.f32 %v3884_v24 }
0x34cd   : > { %5064 = vrcp.f32 %v3893_v34 }
0x34ce   : > { %5066 = vpow2.f32 %v4316_v37 }
0x34cf   : > { %5068 = vpow2.f32 %v4317_v16 }
0x34d5   : > { %v5061_v58 = vpop.eup %5060 }
0x34d6   : > { %v5063_v5 = vpop.eup %5062  ;;  %v3914_v0 = vmul.f32 %v5061_v58, %v5059_v9  ;;  %v3912_v59 = vmul.f32 %v5061_v58, %v6228_v21 }
0x34d7   : > { %v5065_v30 = vpop.eup %5064 }
0x34d8   : > { %3918 = vrot.lane.b32.xlu1 %v3914_v0, %s5117_s8  ;;  %v3915_v63 = vmul.f32 %v5065_v30, %v5063_v5  ;;  %v5067_v26 = vpop.eup %5066  ;;  %v3913_v54 = vmul.f32 %v5065_v30, %v6231_v6 }
0x34d9   : > { %v5069_v53 = vpop.eup %5068  ;;  %v3906_v38 = vadd.f32 1.0, %v5067_v26 }
0x34da   : > { %3920 = vrot.lane.b32.xlu0 %v3915_v63, %s5117_s8  ;;  %v3907_v2 = vadd.f32 1.0, %v5069_v53 }
0x34db   : > { %5070 = vrcp.f32 %v3906_v38 }
0x34e5   : > { %v5071_v62 = vpop.eup %5070 }
0x354a   : > { %v3919_v60 = vpop.permute.xlu1 %3918 }
0x354b   : > { %v3924_v31 = vadd.f32 %v3919_v60, %v3912_v59 }
0x354c   : > { %v3921_v42 = vpop.permute.xlu0 %3920 }
0x354d   : > { %5072 = vtanh.f32 %v3924_v31  ;;  %v3925_v4 = vadd.f32 %v3921_v42, %v3913_v54 }
0x354e   : > { %5074 = vrcp.f32 %v3907_v2 }
0x354f   : > { %5076 = vtanh.f32 %v3925_v4 }
0x3557   : > { %v5073_v39 = vpop.eup %5072 }
0x3558   : > { %v5075_v20 = vpop.eup %5074  ;;  %v3928_v29 = vmul.f32 %v5073_v39, %v5071_v62 }
0x3559   : > { %v5077_v17 = vpop.eup %5076 }
0x355a   : > { %v3929_v15 = vmul.f32 %v5077_v17, %v5075_v20 }
0x355c   : > { %v3930_v46 = vpack.c.bf16 %v3929_v15, %v3928_v29 }
0x355e   : > { %3947 = vrot.lane.b32.xlu1 %v3930_v46, %s5117_s8 }
0x35d0   : > { %v3948_v41 = vpop.permute.xlu1 %3947 }
0x35d1   : > { %4340 = vmatmul.mubr.msk.bf16.vlgmr.msra.gmra.mrb[140].mxu0 %vm1058_vm2, %v3948_v41 }
0x36a4   : > { %v4010_v61 = vpop.f32.mrb[140].mxu0 }
0x36a5   : > { %v4011_v47 = vadd.f32 %v4318_v25, %v4010_v61  ;;  %v4341_v21 = vpop.f32.mrb[141].mxu0 }
0x36a6   : > { %v4013_v22 = vpop.f32.mrb[142].mxu0 }
0x36a7   : > { %4017 = vst [vmem:[%s251_s27] sm:$0xff] %v4011_v47  ;;  %v4014_v10 = vadd.f32 %v4318_v25, %v4013_v22  ;;  %v4342_v6 = vpop.f32.mrb[143].mxu0 }
0x36a9   : > { %4018 = vst [vmem:[%s251_s27 + $0x8] sm:$0xff] %v4014_v10 }
0x36aa PF: > { %s16_s21 = sadd.s32 1, %s5114_s21  }
0x36ab   : > { %p13_p5 = scmp.ge.s32.totalorder %s16_s21, 4  }
0x36ad   :  { %15 = sbr.rel (!%p13_p5) target bundleno = 1 (0x1), region = 102 }

</bundles_post_ra>
